<compile_context>
chip_gen: v7x
topology: tpu7x:2x2x1
jax: 0.10.0
libtpu: 0.0.40
codegen_flags: <defaults>
</compile_context>

<pallas_src>
from functools import partial

import jax
import jax.numpy as jnp
from jax import lax
from jax.experimental import pallas as pl
from jax.experimental.pallas import tpu as pltpu


def make_flow_kernel(reverse: bool, n_blocks: int, H: int, C: int):
    """Whole Flow chain (all FlowSteps) in one kernel invocation per batch tile."""
    Ch = C // 2
    # Packed slab layout (f32, width 3H + 256; all offsets multiples of 128):
    OFF_B1 = 0            # b1:        width H
    OFF_B2 = H            # b2:        width H
    OFF_S2 = 2 * H        # w2 scale:  width H (per output channel)
    OFF_B3 = 3 * H        # b3:        width C (segment padded to 128)
    OFF_AB = 3 * H + 128  # an_bias:   width C (segment padded to 128)

    def kernel(x_ref,          # (bb, C)       f32 input tile
               slab_ref,       # (n, 3H+256)   f32 packed per-block vectors
               W_ref,          # (n, C, C)     f32 ActNorm-folded 1x1 weight (fwd or its inverse)
               ld_const_ref,   # (1,)          f32 SMEM: batch-independent log-det (signed)
               W1_ref,         # (n, C/2, H)   bf16
               W2_ref,         # (n, H, H)     int8 (per-output-channel scale in slab)
               W3_ref,         # (n, C, H)     bf16, stored transposed (lane-dense)
               x_out_ref,      # (bb, C)       f32
               ld_out_ref):    # (bb, 1)       f32

        def coupling(xa, k):
            b1 = slab_ref[k:k + 1, OFF_B1:OFF_B1 + H]
            b2 = slab_ref[k:k + 1, OFF_B2:OFF_B2 + H]
            s2 = slab_ref[k:k + 1, OFF_S2:OFF_S2 + H]
            b3 = slab_ref[k:k + 1, OFF_B3:OFF_B3 + C]
            # bf16 only on the MXU operands; accumulation + elementwise in f32.
            h = jnp.dot(xa.astype(jnp.bfloat16), W1_ref[k],
                        preferred_element_type=jnp.float32) + b1
            h = jnp.maximum(h, 0.0)
            # int8 W2 dequantized on-chip; per-output-channel scale folded into
            # the (bb, H) f32 result (cheap) rather than the (H, H) weight.
            w2 = W2_ref[k].astype(jnp.float32).astype(jnp.bfloat16)
            h = jnp.dot(h.astype(jnp.bfloat16), w2,
                        preferred_element_type=jnp.float32) * s2 + b2
            h = jnp.maximum(h, 0.0)
            # W3 stored (C, H): contract the shared H axis (rhs-transposed matmul).
            h = lax.dot_general(h.astype(jnp.bfloat16), W3_ref[k],
                                dimension_numbers=(((1,), (1,)), ((), ())),
                                preferred_element_type=jnp.float32) + b3
            y = h[:, :Ch] + 2.0
            t = h[:, Ch:]
            e = jnp.exp(-y)                               # EUP
            one_p_e = 1.0 + e
            s = pl.reciprocal(one_p_e, approx=False)      # EXACT sigmoid(y)
            inv_s = one_p_e                               # exact 1/s (divide-free)
            log_s = -jnp.log(one_p_e)                     # exact log(sigmoid(y))
            return s, inv_s, log_s, t

        # NOTE: if B is not a multiple of the batch tile, the padded rows of the
        # last tile contain stale VMEM.  That garbage stays confined to rows that
        # are masked out of the output (there is no cross-row reduction here) —
        # add an explicit row mask before introducing any batch-wise reduction.
        x = x_ref[...]
        ld = jnp.zeros((x.shape[0], 1), jnp.float32)      # per-sample sum(log s)

        order = range(n_blocks - 1, -1, -1) if reverse else range(n_blocks)
        # n_blocks is small & static -> fully-unrolled static loop, static ref slices.
        for k in order:
            an_b = slab_ref[k:k + 1, OFF_AB:OFF_AB + C]   # (1, C)
            W = W_ref[k]                                  # (C, C), ActNorm folded in
            if not reverse:
                x = jnp.dot(x + an_b, W,                  # ActNorm + 1x1 (folded)
                            preferred_element_type=jnp.float32)
                xa, xb = x[:, :Ch], x[:, Ch:]
                s, _, log_s, t = coupling(xa, k)
                xb = (xb + t) * s                         # affine coupling
                x = jnp.concatenate([xa, xb], axis=1)
                ld = ld + jnp.sum(log_s, axis=1, keepdims=True)
            else:
                xa, xb = x[:, :Ch], x[:, Ch:]
                _, inv_s, log_s, t = coupling(xa, k)
                xb = xb * inv_s - t                       # inverse coupling
                x = jnp.concatenate([xa, xb], axis=1)
                x = jnp.dot(x, W,                         # inverse 1x1 + ActNorm (folded)
                            preferred_element_type=jnp.float32) - an_b
                ld = ld - jnp.sum(log_s, axis=1, keepdims=True)

        x_out_ref[...] = x
        ld_out_ref[...] = ld + ld_const_ref[0]   # batch-independent constant added once

    return kernel


@partial(jax.jit, static_argnames=("reverse",))
def flow_forward(x, kp, reverse: bool):
    """Pallas implementation of Flow.forward(x, reverse) -> (x, log_det_sum)."""
    B, C = x.shape
    n_blocks, _, H = kp["W1"].shape

    W_eff = kp["W_rev"] if reverse else kp["W_fwd"]
    ld_const = jnp.reshape(-kp["ld_const"] if reverse else kp["ld_const"],
                           (1,)).astype(jnp.float32)

    # Batch tiling: one tile up to 1024 rows; larger batches iterate the grid
    # while the weight stacks stay resident.  The megacore split ("parallel")
    # duplicates the resident-weight DMA per TensorCore on v7x, so only request
    # it when there is enough per-core work to amortize that.
    bb = B if B <= 1024 else 1024
    grid_b = pl.cdiv(B, bb)
    dim_sem = ("parallel",) if grid_b >= 4 else ("arbitrary",)

    def full(a):  # whole stacked parameter array as one resident VMEM block
        zeros = (0,) * a.ndim
        return pl.BlockSpec(a.shape, lambda b: zeros)

    in_specs = [
        pl.BlockSpec((bb, C), lambda b: (b, 0)),               # x
        full(kp["slab"]),                                      # packed biases/scales
        full(W_eff),                                           # folded 1x1 weights
        pl.BlockSpec(memory_space=pltpu.MemorySpace.SMEM),     # log-det constant
        full(kp["W1"]),
        full(kp["W2q"]),
        full(kp["W3T"]),
    ]
    out_specs = (
        pl.BlockSpec((bb, C), lambda b: (b, 0)),               # x_out
        pl.BlockSpec((bb, 1), lambda b: (b, 0)),               # log-det
    )

    x_out, ld = pl.pallas_call(
        make_flow_kernel(reverse, n_blocks, H, C),
        grid=(grid_b,),
        in_specs=in_specs,
        out_specs=out_specs,
        out_shape=(jax.ShapeDtypeStruct((B, C), jnp.float32),
                   jax.ShapeDtypeStruct((B, 1), jnp.float32)),
        compiler_params=pltpu.CompilerParams(dimension_semantics=dim_sem),
    )(x, kp["slab"], W_eff, ld_const, kp["W1"], kp["W2q"], kp["W3T"])
    return x_out, ld[:, 0]


def init_flow_params(key, C, H, n_blocks):
    """Raw float32 parameters analogous to the PyTorch module's FlowStep weights."""
    ks = jax.random.split(key, 6)
    an_bias = 0.1 * jax.random.normal(ks[0], (n_blocks, 1, C), jnp.float32)
    an_logs = 0.1 * jax.random.normal(ks[1], (n_blocks, 1, C), jnp.float32)
    W = (jnp.eye(C, dtype=jnp.float32)[None, :, :]
         + 0.1 * jax.random.normal(ks[2], (n_blocks, C, C), jnp.float32))
    W1 = jax.random.normal(ks[3], (n_blocks, C // 2, H), jnp.float32) / jnp.sqrt(C // 2)
    b1 = jnp.zeros((n_blocks, 1, H), jnp.float32)
    W2 = jax.random.normal(ks[4], (n_blocks, H, H), jnp.float32) / jnp.sqrt(H)
    b2 = jnp.zeros((n_blocks, 1, H), jnp.float32)
    W3 = 0.05 * jax.random.normal(ks[5], (n_blocks, H, C), jnp.float32) / jnp.sqrt(H)
    b3 = jnp.zeros((n_blocks, 1, C), jnp.float32)
    return dict(an_bias=an_bias, an_logs=an_logs, W=W,
                W1=W1, b1=b1, W2=W2, b2=b2, W3=W3, b3=b3)


def pack_flow_params(raw):
    """One-time host-side preprocessing into the kernel-ready layout."""
    an_bias, an_logs, W = raw["an_bias"], raw["an_logs"], raw["W"]
    n, _, C = an_bias.shape
    H = raw["W1"].shape[-1]
    assert H % 128 == 0, "slab packing assumes a lane-aligned hidden size"

    # Fold ActNorm into the invertible 1x1 weight:
    #   forward:  ((x + b) * exp(l)) @ W      == (x + b) @ (diag(exp(l)) @ W)
    #   reverse:  (y @ W^-1) * exp(-l) - b    ==  y @ (W^-1 @ diag(exp(-l))) - b
    W_fwd = jnp.exp(jnp.swapaxes(an_logs, 1, 2)) * W          # rows scaled
    W_inv = jnp.linalg.inv(W)
    W_rev = W_inv * jnp.exp(-an_logs)                          # columns scaled
    _, ldW = jnp.linalg.slogdet(W)
    ld_const = (jnp.sum(an_logs) + jnp.sum(ldW)).astype(jnp.float32)

    # int8 per-output-channel quantization of the dominant W2 stack.
    amax = jnp.max(jnp.abs(raw["W2"]), axis=1, keepdims=True)  # (n, 1, H)
    w2_scale = jnp.maximum(amax, 1e-12) / 127.0
    W2q = jnp.clip(jnp.round(raw["W2"] / w2_scale), -127, 127).astype(jnp.int8)

    # Lane-dense packed slab of all small per-block vectors (one DMA instead of 6).
    slab = jnp.zeros((n, 3 * H + 256), jnp.float32)
    slab = slab.at[:, 0:H].set(raw["b1"].reshape(n, H))
    slab = slab.at[:, H:2 * H].set(raw["b2"].reshape(n, H))
    slab = slab.at[:, 2 * H:3 * H].set(w2_scale.reshape(n, H))
    slab = slab.at[:, 3 * H:3 * H + C].set(raw["b3"].reshape(n, C))
    slab = slab.at[:, 3 * H + 128:3 * H + 128 + C].set(an_bias.reshape(n, C))

    return dict(
        slab=slab,
        W_fwd=W_fwd.astype(jnp.float32),
        W_rev=W_rev.astype(jnp.float32),
        ld_const=ld_const,
        W1=raw["W1"].astype(jnp.bfloat16),                     # (n, C/2, H) bf16
        W2q=W2q,                                               # (n, H, H)   int8
        W3T=jnp.swapaxes(raw["W3"], 1, 2).astype(jnp.bfloat16) # (n, C, H)   bf16, lane-dense
    )


def flow_ref(x, kp, reverse: bool):
    """Pure-JAX reference mirroring the kernel math (same packed params)."""
    n, _, H = kp["W1"].shape
    C = x.shape[1]
    Ch = C // 2
    slab = kp["slab"]
    b1, b2 = slab[:, 0:H], slab[:, H:2 * H]
    s2 = slab[:, 2 * H:3 * H]
    b3 = slab[:, 3 * H:3 * H + C]
    an_b = slab[:, 3 * H + 128:3 * H + 128 + C]
    W_eff = kp["W_rev"] if reverse else kp["W_fwd"]

    def coupling(xa, k):
        h = jnp.dot(xa.astype(jnp.bfloat16), kp["W1"][k],
                    preferred_element_type=jnp.float32) + b1[k]
        h = jnp.maximum(h, 0.0)
        w2 = kp["W2q"][k].astype(jnp.float32).astype(jnp.bfloat16)
        h = jnp.dot(h.astype(jnp.bfloat16), w2,
                    preferred_element_type=jnp.float32) * s2[k] + b2[k]
        h = jnp.maximum(h, 0.0)
        h = jnp.dot(h.astype(jnp.bfloat16), kp["W3T"][k].T,
                    preferred_element_type=jnp.float32) + b3[k]
        y = h[:, :Ch] + 2.0
        t = h[:, Ch:]
        one_p_e = 1.0 + jnp.exp(-y)
        return 1.0 / one_p_e, one_p_e, -jnp.log(one_p_e), t

    ld = jnp.zeros((x.shape[0], 1), jnp.float32)
    order = range(n - 1, -1, -1) if reverse else range(n)
    for k in order:
        if not reverse:
            x = jnp.dot(x + an_b[k], W_eff[k], preferred_element_type=jnp.float32)
            xa, xb = x[:, :Ch], x[:, Ch:]
            s, _, log_s, t = coupling(xa, k)
            x = jnp.concatenate([xa, (xb + t) * s], axis=1)
            ld = ld + jnp.sum(log_s, axis=1, keepdims=True)
        else:
            xa, xb = x[:, :Ch], x[:, Ch:]
            _, inv_s, log_s, t = coupling(xa, k)
            x = jnp.concatenate([xa, xb * inv_s - t], axis=1)
            x = jnp.dot(x, W_eff[k], preferred_element_type=jnp.float32) - an_b[k]
            ld = ld - jnp.sum(log_s, axis=1, keepdims=True)
    ld = ld + (-kp["ld_const"] if reverse else kp["ld_const"])
    return x, ld[:, 0]


if __name__ == "__main__":
    B, C, H, n_blocks = 8, 16, 512, 5     # in_channels=16, FlowStep hidden=512
    key = jax.random.PRNGKey(0)
    pkey, xkey = jax.random.split(key)
    raw = init_flow_params(pkey, C, H, n_blocks)
    kp = pack_flow_params(raw)            # one-time host-side packing/folding/quantization
    x = jax.random.normal(xkey, (B, C), jnp.float32)

    # forward(x, reverse=False) and forward(z, reverse=True)
    z, ld_fwd = flow_forward(x, kp, reverse=False)
    x_rec, ld_rev = flow_forward(z, kp, reverse=True)
    jax.block_until_ready((z, ld_fwd, x_rec, ld_rev))

    assert z.shape == (B, C) and ld_fwd.shape == (B,)

    # Kernel vs pure-JAX reference (same quantized params) — both directions.
    z_ref, ld_ref = flow_ref(x, kp, reverse=False)
    assert jnp.allclose(z, z_ref, atol=3e-2, rtol=3e-2), "forward mismatch vs reference"
    assert jnp.allclose(ld_fwd, ld_ref, atol=3e-2), "forward log-det mismatch vs reference"
    xr_ref, ldr_ref = flow_ref(z, kp, reverse=True)
    assert jnp.allclose(x_rec, xr_ref, atol=3e-2, rtol=3e-2), "reverse mismatch vs reference"
    assert jnp.allclose(ld_rev, ldr_ref, atol=3e-2), "reverse log-det mismatch vs reference"

    # Invertibility: forward and reverse use identical (quantized) weights and an
    # exact sigmoid / exact 1-over-sigmoid pair, so reconstruction is tight and
    # the log-dets cancel.
    assert jnp.allclose(x_rec, x, atol=1e-2, rtol=1e-2), "reconstruction mismatch"
    assert jnp.allclose(ld_fwd + ld_rev, 0.0, atol=1e-2), "log-det mismatch"
    print("KERNEL_OK")
</pallas_src>

<mosaic_0001>
module attributes {stable_mosaic.version = 11 : i64} {
  func.func @kernel(%arg0: i32, %arg1: memref<8x16xf32, #tpu.memory_space<vmem>>, %arg2: memref<5x1792xf32, #tpu.memory_space<vmem>>, %arg3: memref<5x16x16xf32, #tpu.memory_space<vmem>>, %arg4: memref<1xf32, #tpu.memory_space<smem>>, %arg5: memref<5x8x512xbf16, #tpu.memory_space<vmem>>, %arg6: memref<5x512x512xi8, #tpu.memory_space<vmem>>, %arg7: memref<5x16x512xbf16, #tpu.memory_space<vmem>>, %arg8: memref<8x16xf32, #tpu.memory_space<vmem>>, %arg9: memref<8x1xf32, #tpu.memory_space<vmem>>) attributes {dimension_semantics = [#tpu.dimension_semantics<arbitrary>], iteration_bounds = array<i64: 1>, scalar_prefetch = 0 : i64, scratch_operands = 0 : i64, tpu.core_type = #tpu.core_type<tc>, window_params = [{transform_indices = @transform_0, window_bounds = array<i64: 8, 16>}, {pipeline_mode = #tpu.pipeline_mode<synchronous>, transform_indices = @transform_1, window_bounds = array<i64: 5, 1792>}, {pipeline_mode = #tpu.pipeline_mode<synchronous>, transform_indices = @transform_2, window_bounds = array<i64: 5, 16, 16>}, {transform_indices = @transform_3, window_bounds = array<i64: 1>}, {pipeline_mode = #tpu.pipeline_mode<synchronous>, transform_indices = @transform_4, window_bounds = array<i64: 5, 8, 512>}, {pipeline_mode = #tpu.pipeline_mode<synchronous>, transform_indices = @transform_5, window_bounds = array<i64: 5, 512, 512>}, {pipeline_mode = #tpu.pipeline_mode<synchronous>, transform_indices = @transform_6, window_bounds = array<i64: 5, 16, 512>}, {transform_indices = @transform_7, window_bounds = array<i64: 8, 16>}, {transform_indices = @transform_8, window_bounds = array<i64: 8, 1>}]} {
    %c0 = arith.constant 0 : index
    %c0_0 = arith.constant 0 : index
    %0 = vector.load %arg1[%c0, %c0_0] : memref<8x16xf32, #tpu.memory_space<vmem>>, vector<8x16xf32>
    %cst = arith.constant 0.000000e+00 : f32
    %1 = vector.broadcast %cst : f32 to vector<8x1xf32>
    %c0_1 = arith.constant 0 : index
    %c1664 = arith.constant 1664 : index
    %2 = vector.load %arg2[%c0_1, %c1664] : memref<5x1792xf32, #tpu.memory_space<vmem>>, vector<1x16xf32>
    %c0_2 = arith.constant 0 : index
    %c0_3 = arith.constant 0 : index
    %c0_4 = arith.constant 0 : index
    %3 = vector.load %arg3[%c0_2, %c0_3, %c0_4] : memref<5x16x16xf32, #tpu.memory_space<vmem>>, vector<1x16x16xf32>
    %4 = vector.shape_cast %3 : vector<1x16x16xf32> to vector<16x16xf32>
    %5 = vector.broadcast %2 : vector<1x16xf32> to vector<8x16xf32>
    %6 = arith.addf %0, %5 : vector<8x16xf32>
    %cst_5 = arith.constant dense<0.000000e+00> : vector<8x16xf32>
    %7 = tpu.matmul %6, %4, %cst_5 {dimension_numbers = #tpu.dot_dimension_numbers<[1], [0], [0], [1], [0, 0, 1, 1], [], []>} : vector<8x16xf32>, vector<16x16xf32>, vector<8x16xf32> -> vector<8x16xf32>
    %8 = vector.extract_strided_slice %7 {offsets = [0, 0], sizes = [8, 8], strides = [1, 1]} : vector<8x16xf32> to vector<8x8xf32>
    %9 = vector.extract_strided_slice %7 {offsets = [0, 8], sizes = [8, 8], strides = [1, 1]} : vector<8x16xf32> to vector<8x8xf32>
    %c0_6 = arith.constant 0 : index
    %c0_7 = arith.constant 0 : index
    %10 = vector.load %arg2[%c0_6, %c0_7] : memref<5x1792xf32, #tpu.memory_space<vmem>>, vector<1x512xf32>
    %c0_8 = arith.constant 0 : index
    %c512 = arith.constant 512 : index
    %11 = vector.load %arg2[%c0_8, %c512] : memref<5x1792xf32, #tpu.memory_space<vmem>>, vector<1x512xf32>
    %c0_9 = arith.constant 0 : index
    %c1024 = arith.constant 1024 : index
    %12 = vector.load %arg2[%c0_9, %c1024] : memref<5x1792xf32, #tpu.memory_space<vmem>>, vector<1x512xf32>
    %c0_10 = arith.constant 0 : index
    %c1536 = arith.constant 1536 : index
    %13 = vector.load %arg2[%c0_10, %c1536] : memref<5x1792xf32, #tpu.memory_space<vmem>>, vector<1x16xf32>
    %14 = arith.truncf %8 : vector<8x8xf32> to vector<8x8xbf16>
    %c0_11 = arith.constant 0 : index
    %c0_12 = arith.constant 0 : index
    %c0_13 = arith.constant 0 : index
    %15 = vector.load %arg5[%c0_11, %c0_12, %c0_13] : memref<5x8x512xbf16, #tpu.memory_space<vmem>>, vector<1x8x512xbf16>
    %16 = vector.shape_cast %15 : vector<1x8x512xbf16> to vector<8x512xbf16>
    %cst_14 = arith.constant dense<0.000000e+00> : vector<8x512xf32>
    %17 = tpu.matmul %14, %16, %cst_14 {dimension_numbers = #tpu.dot_dimension_numbers<[1], [0], [0], [1], [0, 0, 1, 1], [], []>} : vector<8x8xbf16>, vector<8x512xbf16>, vector<8x512xf32> -> vector<8x512xf32>
    %18 = vector.broadcast %10 : vector<1x512xf32> to vector<8x512xf32>
    %19 = arith.addf %17, %18 : vector<8x512xf32>
    %cst_15 = arith.constant 0.000000e+00 : f32
    %20 = vector.broadcast %cst_15 : f32 to vector<8x512xf32>
    %21 = arith.maximumf %19, %20 : vector<8x512xf32>
    %c0_16 = arith.constant 0 : index
    %c0_17 = arith.constant 0 : index
    %c0_18 = arith.constant 0 : index
    %22 = vector.load %arg6[%c0_16, %c0_17, %c0_18] : memref<5x512x512xi8, #tpu.memory_space<vmem>>, vector<1x512x512xi8>
    %23 = vector.shape_cast %22 : vector<1x512x512xi8> to vector<512x512xi8>
    %24 = arith.sitofp %23 : vector<512x512xi8> to vector<512x512xf32>
    %25 = arith.truncf %24 : vector<512x512xf32> to vector<512x512xbf16>
    %26 = arith.truncf %21 : vector<8x512xf32> to vector<8x512xbf16>
    %cst_19 = arith.constant dense<0.000000e+00> : vector<8x512xf32>
    %27 = tpu.matmul %26, %25, %cst_19 {dimension_numbers = #tpu.dot_dimension_numbers<[1], [0], [0], [1], [0, 0, 1, 1], [], []>} : vector<8x512xbf16>, vector<512x512xbf16>, vector<8x512xf32> -> vector<8x512xf32>
    %28 = vector.broadcast %12 : vector<1x512xf32> to vector<8x512xf32>
    %29 = arith.mulf %27, %28 : vector<8x512xf32>
    %30 = vector.broadcast %11 : vector<1x512xf32> to vector<8x512xf32>
    %31 = arith.addf %29, %30 : vector<8x512xf32>
    %cst_20 = arith.constant 0.000000e+00 : f32
    %32 = vector.broadcast %cst_20 : f32 to vector<8x512xf32>
    %33 = arith.maximumf %31, %32 : vector<8x512xf32>
    %34 = arith.truncf %33 : vector<8x512xf32> to vector<8x512xbf16>
    %c0_21 = arith.constant 0 : index
    %c0_22 = arith.constant 0 : index
    %c0_23 = arith.constant 0 : index
    %35 = vector.load %arg7[%c0_21, %c0_22, %c0_23] : memref<5x16x512xbf16, #tpu.memory_space<vmem>>, vector<1x16x512xbf16>
    %36 = vector.shape_cast %35 : vector<1x16x512xbf16> to vector<16x512xbf16>
    %cst_24 = arith.constant dense<0.000000e+00> : vector<8x16xf32>
    %37 = tpu.matmul %34, %36, %cst_24 {dimension_numbers = #tpu.dot_dimension_numbers<[1], [1], [0], [0], [0, 0, 1, 0], [], []>} : vector<8x512xbf16>, vector<16x512xbf16>, vector<8x16xf32> -> vector<8x16xf32>
    %38 = vector.broadcast %13 : vector<1x16xf32> to vector<8x16xf32>
    %39 = arith.addf %37, %38 : vector<8x16xf32>
    %40 = vector.extract_strided_slice %39 {offsets = [0, 0], sizes = [8, 8], strides = [1, 1]} : vector<8x16xf32> to vector<8x8xf32>
    %cst_25 = arith.constant 2.000000e+00 : f32
    %41 = vector.broadcast %cst_25 : f32 to vector<8x8xf32>
    %42 = arith.addf %40, %41 : vector<8x8xf32>
    %43 = vector.extract_strided_slice %39 {offsets = [0, 8], sizes = [8, 8], strides = [1, 1]} : vector<8x16xf32> to vector<8x8xf32>
    %cst_26 = arith.constant 0.000000e+00 : f32
    %44 = vector.broadcast %cst_26 : f32 to vector<8x8xf32>
    %45 = arith.subf %44, %42 : vector<8x8xf32>
    %46 = math.exp %45 : vector<8x8xf32>
    %cst_27 = arith.constant 1.000000e+00 : f32
    %47 = vector.broadcast %cst_27 : f32 to vector<8x8xf32>
    %48 = arith.addf %47, %46 : vector<8x8xf32>
    %49 = tpu.reciprocal %48 : vector<8x8xf32> -> vector<8x8xf32>
    %50 = math.log %48 : vector<8x8xf32>
    %cst_28 = arith.constant 0.000000e+00 : f32
    %51 = vector.broadcast %cst_28 : f32 to vector<8x8xf32>
    %52 = arith.subf %51, %50 : vector<8x8xf32>
    %53 = arith.addf %9, %43 : vector<8x8xf32>
    %54 = arith.mulf %53, %49 : vector<8x8xf32>
    %55 = tpu.concatenate %8, %54 in 1 : vector<8x8xf32>, vector<8x8xf32> -> vector<8x16xf32>
    %cst_29 = arith.constant dense<0.000000e+00> : vector<8xf32>
    %56 = vector.multi_reduction <add>, %52, %cst_29 [1] : vector<8x8xf32> to vector<8xf32>
    %57 = vector.shape_cast %56 : vector<8xf32> to vector<8x1xf32>
    %58 = arith.addf %1, %57 : vector<8x1xf32>
    %c1 = arith.constant 1 : index
    %c1664_30 = arith.constant 1664 : index
    %59 = vector.load %arg2[%c1, %c1664_30] : memref<5x1792xf32, #tpu.memory_space<vmem>>, vector<1x16xf32>
    %c1_31 = arith.constant 1 : index
    %c0_32 = arith.constant 0 : index
    %c0_33 = arith.constant 0 : index
    %60 = vector.load %arg3[%c1_31, %c0_32, %c0_33] : memref<5x16x16xf32, #tpu.memory_space<vmem>>, vector<1x16x16xf32>
    %61 = vector.shape_cast %60 : vector<1x16x16xf32> to vector<16x16xf32>
    %62 = vector.broadcast %59 : vector<1x16xf32> to vector<8x16xf32>
    %63 = arith.addf %55, %62 : vector<8x16xf32>
    %cst_34 = arith.constant dense<0.000000e+00> : vector<8x16xf32>
    %64 = tpu.matmul %63, %61, %cst_34 {dimension_numbers = #tpu.dot_dimension_numbers<[1], [0], [0], [1], [0, 0, 1, 1], [], []>} : vector<8x16xf32>, vector<16x16xf32>, vector<8x16xf32> -> vector<8x16xf32>
    %65 = vector.extract_strided_slice %64 {offsets = [0, 0], sizes = [8, 8], strides = [1, 1]} : vector<8x16xf32> to vector<8x8xf32>
    %66 = vector.extract_strided_slice %64 {offsets = [0, 8], sizes = [8, 8], strides = [1, 1]} : vector<8x16xf32> to vector<8x8xf32>
    %c1_35 = arith.constant 1 : index
    %c0_36 = arith.constant 0 : index
    %67 = vector.load %arg2[%c1_35, %c0_36] : memref<5x1792xf32, #tpu.memory_space<vmem>>, vector<1x512xf32>
    %c1_37 = arith.constant 1 : index
    %c512_38 = arith.constant 512 : index
    %68 = vector.load %arg2[%c1_37, %c512_38] : memref<5x1792xf32, #tpu.memory_space<vmem>>, vector<1x512xf32>
    %c1_39 = arith.constant 1 : index
    %c1024_40 = arith.constant 1024 : index
    %69 = vector.load %arg2[%c1_39, %c1024_40] : memref<5x1792xf32, #tpu.memory_space<vmem>>, vector<1x512xf32>
    %c1_41 = arith.constant 1 : index
    %c1536_42 = arith.constant 1536 : index
    %70 = vector.load %arg2[%c1_41, %c1536_42] : memref<5x1792xf32, #tpu.memory_space<vmem>>, vector<1x16xf32>
    %71 = arith.truncf %65 : vector<8x8xf32> to vector<8x8xbf16>
    %c1_43 = arith.constant 1 : index
    %c0_44 = arith.constant 0 : index
    %c0_45 = arith.constant 0 : index
    %72 = vector.load %arg5[%c1_43, %c0_44, %c0_45] : memref<5x8x512xbf16, #tpu.memory_space<vmem>>, vector<1x8x512xbf16>
    %73 = vector.shape_cast %72 : vector<1x8x512xbf16> to vector<8x512xbf16>
    %cst_46 = arith.constant dense<0.000000e+00> : vector<8x512xf32>
    %74 = tpu.matmul %71, %73, %cst_46 {dimension_numbers = #tpu.dot_dimension_numbers<[1], [0], [0], [1], [0, 0, 1, 1], [], []>} : vector<8x8xbf16>, vector<8x512xbf16>, vector<8x512xf32> -> vector<8x512xf32>
    %75 = vector.broadcast %67 : vector<1x512xf32> to vector<8x512xf32>
    %76 = arith.addf %74, %75 : vector<8x512xf32>
    %cst_47 = arith.constant 0.000000e+00 : f32
    %77 = vector.broadcast %cst_47 : f32 to vector<8x512xf32>
    %78 = arith.maximumf %76, %77 : vector<8x512xf32>
    %c1_48 = arith.constant 1 : index
    %c0_49 = arith.constant 0 : index
    %c0_50 = arith.constant 0 : index
    %79 = vector.load %arg6[%c1_48, %c0_49, %c0_50] : memref<5x512x512xi8, #tpu.memory_space<vmem>>, vector<1x512x512xi8>
    %80 = vector.shape_cast %79 : vector<1x512x512xi8> to vector<512x512xi8>
    %81 = arith.sitofp %80 : vector<512x512xi8> to vector<512x512xf32>
    %82 = arith.truncf %81 : vector<512x512xf32> to vector<512x512xbf16>
    %83 = arith.truncf %78 : vector<8x512xf32> to vector<8x512xbf16>
    %cst_51 = arith.constant dense<0.000000e+00> : vector<8x512xf32>
    %84 = tpu.matmul %83, %82, %cst_51 {dimension_numbers = #tpu.dot_dimension_numbers<[1], [0], [0], [1], [0, 0, 1, 1], [], []>} : vector<8x512xbf16>, vector<512x512xbf16>, vector<8x512xf32> -> vector<8x512xf32>
    %85 = vector.broadcast %69 : vector<1x512xf32> to vector<8x512xf32>
    %86 = arith.mulf %84, %85 : vector<8x512xf32>
    %87 = vector.broadcast %68 : vector<1x512xf32> to vector<8x512xf32>
    %88 = arith.addf %86, %87 : vector<8x512xf32>
    %cst_52 = arith.constant 0.000000e+00 : f32
    %89 = vector.broadcast %cst_52 : f32 to vector<8x512xf32>
    %90 = arith.maximumf %88, %89 : vector<8x512xf32>
    %91 = arith.truncf %90 : vector<8x512xf32> to vector<8x512xbf16>
    %c1_53 = arith.constant 1 : index
    %c0_54 = arith.constant 0 : index
    %c0_55 = arith.constant 0 : index
    %92 = vector.load %arg7[%c1_53, %c0_54, %c0_55] : memref<5x16x512xbf16, #tpu.memory_space<vmem>>, vector<1x16x512xbf16>
    %93 = vector.shape_cast %92 : vector<1x16x512xbf16> to vector<16x512xbf16>
    %cst_56 = arith.constant dense<0.000000e+00> : vector<8x16xf32>
    %94 = tpu.matmul %91, %93, %cst_56 {dimension_numbers = #tpu.dot_dimension_numbers<[1], [1], [0], [0], [0, 0, 1, 0], [], []>} : vector<8x512xbf16>, vector<16x512xbf16>, vector<8x16xf32> -> vector<8x16xf32>
    %95 = vector.broadcast %70 : vector<1x16xf32> to vector<8x16xf32>
    %96 = arith.addf %94, %95 : vector<8x16xf32>
    %97 = vector.extract_strided_slice %96 {offsets = [0, 0], sizes = [8, 8], strides = [1, 1]} : vector<8x16xf32> to vector<8x8xf32>
    %cst_57 = arith.constant 2.000000e+00 : f32
    %98 = vector.broadcast %cst_57 : f32 to vector<8x8xf32>
    %99 = arith.addf %97, %98 : vector<8x8xf32>
    %100 = vector.extract_strided_slice %96 {offsets = [0, 8], sizes = [8, 8], strides = [1, 1]} : vector<8x16xf32> to vector<8x8xf32>
    %cst_58 = arith.constant 0.000000e+00 : f32
    %101 = vector.broadcast %cst_58 : f32 to vector<8x8xf32>
    %102 = arith.subf %101, %99 : vector<8x8xf32>
    %103 = math.exp %102 : vector<8x8xf32>
    %cst_59 = arith.constant 1.000000e+00 : f32
    %104 = vector.broadcast %cst_59 : f32 to vector<8x8xf32>
    %105 = arith.addf %104, %103 : vector<8x8xf32>
    %106 = tpu.reciprocal %105 : vector<8x8xf32> -> vector<8x8xf32>
    %107 = math.log %105 : vector<8x8xf32>
    %cst_60 = arith.constant 0.000000e+00 : f32
    %108 = vector.broadcast %cst_60 : f32 to vector<8x8xf32>
    %109 = arith.subf %108, %107 : vector<8x8xf32>
    %110 = arith.addf %66, %100 : vector<8x8xf32>
    %111 = arith.mulf %110, %106 : vector<8x8xf32>
    %112 = tpu.concatenate %65, %111 in 1 : vector<8x8xf32>, vector<8x8xf32> -> vector<8x16xf32>
    %cst_61 = arith.constant dense<0.000000e+00> : vector<8xf32>
    %113 = vector.multi_reduction <add>, %109, %cst_61 [1] : vector<8x8xf32> to vector<8xf32>
    %114 = vector.shape_cast %113 : vector<8xf32> to vector<8x1xf32>
    %115 = arith.addf %58, %114 : vector<8x1xf32>
    %c2 = arith.constant 2 : index
    %c1664_62 = arith.constant 1664 : index
    %116 = vector.load %arg2[%c2, %c1664_62] : memref<5x1792xf32, #tpu.memory_space<vmem>>, vector<1x16xf32>
    %c2_63 = arith.constant 2 : index
    %c0_64 = arith.constant 0 : index
    %c0_65 = arith.constant 0 : index
    %117 = vector.load %arg3[%c2_63, %c0_64, %c0_65] : memref<5x16x16xf32, #tpu.memory_space<vmem>>, vector<1x16x16xf32>
    %118 = vector.shape_cast %117 : vector<1x16x16xf32> to vector<16x16xf32>
    %119 = vector.broadcast %116 : vector<1x16xf32> to vector<8x16xf32>
    %120 = arith.addf %112, %119 : vector<8x16xf32>
    %cst_66 = arith.constant dense<0.000000e+00> : vector<8x16xf32>
    %121 = tpu.matmul %120, %118, %cst_66 {dimension_numbers = #tpu.dot_dimension_numbers<[1], [0], [0], [1], [0, 0, 1, 1], [], []>} : vector<8x16xf32>, vector<16x16xf32>, vector<8x16xf32> -> vector<8x16xf32>
    %122 = vector.extract_strided_slice %121 {offsets = [0, 0], sizes = [8, 8], strides = [1, 1]} : vector<8x16xf32> to vector<8x8xf32>
    %123 = vector.extract_strided_slice %121 {offsets = [0, 8], sizes = [8, 8], strides = [1, 1]} : vector<8x16xf32> to vector<8x8xf32>
    %c2_67 = arith.constant 2 : index
    %c0_68 = arith.constant 0 : index
    %124 = vector.load %arg2[%c2_67, %c0_68] : memref<5x1792xf32, #tpu.memory_space<vmem>>, vector<1x512xf32>
    %c2_69 = arith.constant 2 : index
    %c512_70 = arith.constant 512 : index
    %125 = vector.load %arg2[%c2_69, %c512_70] : memref<5x1792xf32, #tpu.memory_space<vmem>>, vector<1x512xf32>
    %c2_71 = arith.constant 2 : index
    %c1024_72 = arith.constant 1024 : index
    %126 = vector.load %arg2[%c2_71, %c1024_72] : memref<5x1792xf32, #tpu.memory_space<vmem>>, vector<1x512xf32>
    %c2_73 = arith.constant 2 : index
    %c1536_74 = arith.constant 1536 : index
    %127 = vector.load %arg2[%c2_73, %c1536_74] : memref<5x1792xf32, #tpu.memory_space<vmem>>, vector<1x16xf32>
    %128 = arith.truncf %122 : vector<8x8xf32> to vector<8x8xbf16>
    %c2_75 = arith.constant 2 : index
    %c0_76 = arith.constant 0 : index
    %c0_77 = arith.constant 0 : index
    %129 = vector.load %arg5[%c2_75, %c0_76, %c0_77] : memref<5x8x512xbf16, #tpu.memory_space<vmem>>, vector<1x8x512xbf16>
    %130 = vector.shape_cast %129 : vector<1x8x512xbf16> to vector<8x512xbf16>
    %cst_78 = arith.constant dense<0.000000e+00> : vector<8x512xf32>
    %131 = tpu.matmul %128, %130, %cst_78 {dimension_numbers = #tpu.dot_dimension_numbers<[1], [0], [0], [1], [0, 0, 1, 1], [], []>} : vector<8x8xbf16>, vector<8x512xbf16>, vector<8x512xf32> -> vector<8x512xf32>
    %132 = vector.broadcast %124 : vector<1x512xf32> to vector<8x512xf32>
    %133 = arith.addf %131, %132 : vector<8x512xf32>
    %cst_79 = arith.constant 0.000000e+00 : f32
    %134 = vector.broadcast %cst_79 : f32 to vector<8x512xf32>
    %135 = arith.maximumf %133, %134 : vector<8x512xf32>
    %c2_80 = arith.constant 2 : index
    %c0_81 = arith.constant 0 : index
    %c0_82 = arith.constant 0 : index
    %136 = vector.load %arg6[%c2_80, %c0_81, %c0_82] : memref<5x512x512xi8, #tpu.memory_space<vmem>>, vector<1x512x512xi8>
    %137 = vector.shape_cast %136 : vector<1x512x512xi8> to vector<512x512xi8>
    %138 = arith.sitofp %137 : vector<512x512xi8> to vector<512x512xf32>
    %139 = arith.truncf %138 : vector<512x512xf32> to vector<512x512xbf16>
    %140 = arith.truncf %135 : vector<8x512xf32> to vector<8x512xbf16>
    %cst_83 = arith.constant dense<0.000000e+00> : vector<8x512xf32>
    %141 = tpu.matmul %140, %139, %cst_83 {dimension_numbers = #tpu.dot_dimension_numbers<[1], [0], [0], [1], [0, 0, 1, 1], [], []>} : vector<8x512xbf16>, vector<512x512xbf16>, vector<8x512xf32> -> vector<8x512xf32>
    %142 = vector.broadcast %126 : vector<1x512xf32> to vector<8x512xf32>
    %143 = arith.mulf %141, %142 : vector<8x512xf32>
    %144 = vector.broadcast %125 : vector<1x512xf32> to vector<8x512xf32>
    %145 = arith.addf %143, %144 : vector<8x512xf32>
    %cst_84 = arith.constant 0.000000e+00 : f32
    %146 = vector.broadcast %cst_84 : f32 to vector<8x512xf32>
    %147 = arith.maximumf %145, %146 : vector<8x512xf32>
    %148 = arith.truncf %147 : vector<8x512xf32> to vector<8x512xbf16>
    %c2_85 = arith.constant 2 : index
    %c0_86 = arith.constant 0 : index
    %c0_87 = arith.constant 0 : index
    %149 = vector.load %arg7[%c2_85, %c0_86, %c0_87] : memref<5x16x512xbf16, #tpu.memory_space<vmem>>, vector<1x16x512xbf16>
    %150 = vector.shape_cast %149 : vector<1x16x512xbf16> to vector<16x512xbf16>
    %cst_88 = arith.constant dense<0.000000e+00> : vector<8x16xf32>
    %151 = tpu.matmul %148, %150, %cst_88 {dimension_numbers = #tpu.dot_dimension_numbers<[1], [1], [0], [0], [0, 0, 1, 0], [], []>} : vector<8x512xbf16>, vector<16x512xbf16>, vector<8x16xf32> -> vector<8x16xf32>
    %152 = vector.broadcast %127 : vector<1x16xf32> to vector<8x16xf32>
    %153 = arith.addf %151, %152 : vector<8x16xf32>
    %154 = vector.extract_strided_slice %153 {offsets = [0, 0], sizes = [8, 8], strides = [1, 1]} : vector<8x16xf32> to vector<8x8xf32>
    %cst_89 = arith.constant 2.000000e+00 : f32
    %155 = vector.broadcast %cst_89 : f32 to vector<8x8xf32>
    %156 = arith.addf %154, %155 : vector<8x8xf32>
    %157 = vector.extract_strided_slice %153 {offsets = [0, 8], sizes = [8, 8], strides = [1, 1]} : vector<8x16xf32> to vector<8x8xf32>
    %cst_90 = arith.constant 0.000000e+00 : f32
    %158 = vector.broadcast %cst_90 : f32 to vector<8x8xf32>
    %159 = arith.subf %158, %156 : vector<8x8xf32>
    %160 = math.exp %159 : vector<8x8xf32>
    %cst_91 = arith.constant 1.000000e+00 : f32
    %161 = vector.broadcast %cst_91 : f32 to vector<8x8xf32>
    %162 = arith.addf %161, %160 : vector<8x8xf32>
    %163 = tpu.reciprocal %162 : vector<8x8xf32> -> vector<8x8xf32>
    %164 = math.log %162 : vector<8x8xf32>
    %cst_92 = arith.constant 0.000000e+00 : f32
    %165 = vector.broadcast %cst_92 : f32 to vector<8x8xf32>
    %166 = arith.subf %165, %164 : vector<8x8xf32>
    %167 = arith.addf %123, %157 : vector<8x8xf32>
    %168 = arith.mulf %167, %163 : vector<8x8xf32>
    %169 = tpu.concatenate %122, %168 in 1 : vector<8x8xf32>, vector<8x8xf32> -> vector<8x16xf32>
    %cst_93 = arith.constant dense<0.000000e+00> : vector<8xf32>
    %170 = vector.multi_reduction <add>, %166, %cst_93 [1] : vector<8x8xf32> to vector<8xf32>
    %171 = vector.shape_cast %170 : vector<8xf32> to vector<8x1xf32>
    %172 = arith.addf %115, %171 : vector<8x1xf32>
    %c3 = arith.constant 3 : index
    %c1664_94 = arith.constant 1664 : index
    %173 = vector.load %arg2[%c3, %c1664_94] : memref<5x1792xf32, #tpu.memory_space<vmem>>, vector<1x16xf32>
    %c3_95 = arith.constant 3 : index
    %c0_96 = arith.constant 0 : index
    %c0_97 = arith.constant 0 : index
    %174 = vector.load %arg3[%c3_95, %c0_96, %c0_97] : memref<5x16x16xf32, #tpu.memory_space<vmem>>, vector<1x16x16xf32>
    %175 = vector.shape_cast %174 : vector<1x16x16xf32> to vector<16x16xf32>
    %176 = vector.broadcast %173 : vector<1x16xf32> to vector<8x16xf32>
    %177 = arith.addf %169, %176 : vector<8x16xf32>
    %cst_98 = arith.constant dense<0.000000e+00> : vector<8x16xf32>
    %178 = tpu.matmul %177, %175, %cst_98 {dimension_numbers = #tpu.dot_dimension_numbers<[1], [0], [0], [1], [0, 0, 1, 1], [], []>} : vector<8x16xf32>, vector<16x16xf32>, vector<8x16xf32> -> vector<8x16xf32>
    %179 = vector.extract_strided_slice %178 {offsets = [0, 0], sizes = [8, 8], strides = [1, 1]} : vector<8x16xf32> to vector<8x8xf32>
    %180 = vector.extract_strided_slice %178 {offsets = [0, 8], sizes = [8, 8], strides = [1, 1]} : vector<8x16xf32> to vector<8x8xf32>
    %c3_99 = arith.constant 3 : index
    %c0_100 = arith.constant 0 : index
    %181 = vector.load %arg2[%c3_99, %c0_100] : memref<5x1792xf32, #tpu.memory_space<vmem>>, vector<1x512xf32>
    %c3_101 = arith.constant 3 : index
    %c512_102 = arith.constant 512 : index
    %182 = vector.load %arg2[%c3_101, %c512_102] : memref<5x1792xf32, #tpu.memory_space<vmem>>, vector<1x512xf32>
    %c3_103 = arith.constant 3 : index
    %c1024_104 = arith.constant 1024 : index
    %183 = vector.load %arg2[%c3_103, %c1024_104] : memref<5x1792xf32, #tpu.memory_space<vmem>>, vector<1x512xf32>
    %c3_105 = arith.constant 3 : index
    %c1536_106 = arith.constant 1536 : index
    %184 = vector.load %arg2[%c3_105, %c1536_106] : memref<5x1792xf32, #tpu.memory_space<vmem>>, vector<1x16xf32>
    %185 = arith.truncf %179 : vector<8x8xf32> to vector<8x8xbf16>
    %c3_107 = arith.constant 3 : index
    %c0_108 = arith.constant 0 : index
    %c0_109 = arith.constant 0 : index
    %186 = vector.load %arg5[%c3_107, %c0_108, %c0_109] : memref<5x8x512xbf16, #tpu.memory_space<vmem>>, vector<1x8x512xbf16>
    %187 = vector.shape_cast %186 : vector<1x8x512xbf16> to vector<8x512xbf16>
    %cst_110 = arith.constant dense<0.000000e+00> : vector<8x512xf32>
    %188 = tpu.matmul %185, %187, %cst_110 {dimension_numbers = #tpu.dot_dimension_numbers<[1], [0], [0], [1], [0, 0, 1, 1], [], []>} : vector<8x8xbf16>, vector<8x512xbf16>, vector<8x512xf32> -> vector<8x512xf32>
    %189 = vector.broadcast %181 : vector<1x512xf32> to vector<8x512xf32>
    %190 = arith.addf %188, %189 : vector<8x512xf32>
    %cst_111 = arith.constant 0.000000e+00 : f32
    %191 = vector.broadcast %cst_111 : f32 to vector<8x512xf32>
    %192 = arith.maximumf %190, %191 : vector<8x512xf32>
    %c3_112 = arith.constant 3 : index
    %c0_113 = arith.constant 0 : index
    %c0_114 = arith.constant 0 : index
    %193 = vector.load %arg6[%c3_112, %c0_113, %c0_114] : memref<5x512x512xi8, #tpu.memory_space<vmem>>, vector<1x512x512xi8>
    %194 = vector.shape_cast %193 : vector<1x512x512xi8> to vector<512x512xi8>
    %195 = arith.sitofp %194 : vector<512x512xi8> to vector<512x512xf32>
    %196 = arith.truncf %195 : vector<512x512xf32> to vector<512x512xbf16>
    %197 = arith.truncf %192 : vector<8x512xf32> to vector<8x512xbf16>
    %cst_115 = arith.constant dense<0.000000e+00> : vector<8x512xf32>
    %198 = tpu.matmul %197, %196, %cst_115 {dimension_numbers = #tpu.dot_dimension_numbers<[1], [0], [0], [1], [0, 0, 1, 1], [], []>} : vector<8x512xbf16>, vector<512x512xbf16>, vector<8x512xf32> -> vector<8x512xf32>
    %199 = vector.broadcast %183 : vector<1x512xf32> to vector<8x512xf32>
    %200 = arith.mulf %198, %199 : vector<8x512xf32>
    %201 = vector.broadcast %182 : vector<1x512xf32> to vector<8x512xf32>
    %202 = arith.addf %200, %201 : vector<8x512xf32>
    %cst_116 = arith.constant 0.000000e+00 : f32
    %203 = vector.broadcast %cst_116 : f32 to vector<8x512xf32>
    %204 = arith.maximumf %202, %203 : vector<8x512xf32>
    %205 = arith.truncf %204 : vector<8x512xf32> to vector<8x512xbf16>
    %c3_117 = arith.constant 3 : index
    %c0_118 = arith.constant 0 : index
    %c0_119 = arith.constant 0 : index
    %206 = vector.load %arg7[%c3_117, %c0_118, %c0_119] : memref<5x16x512xbf16, #tpu.memory_space<vmem>>, vector<1x16x512xbf16>
    %207 = vector.shape_cast %206 : vector<1x16x512xbf16> to vector<16x512xbf16>
    %cst_120 = arith.constant dense<0.000000e+00> : vector<8x16xf32>
    %208 = tpu.matmul %205, %207, %cst_120 {dimension_numbers = #tpu.dot_dimension_numbers<[1], [1], [0], [0], [0, 0, 1, 0], [], []>} : vector<8x512xbf16>, vector<16x512xbf16>, vector<8x16xf32> -> vector<8x16xf32>
    %209 = vector.broadcast %184 : vector<1x16xf32> to vector<8x16xf32>
    %210 = arith.addf %208, %209 : vector<8x16xf32>
    %211 = vector.extract_strided_slice %210 {offsets = [0, 0], sizes = [8, 8], strides = [1, 1]} : vector<8x16xf32> to vector<8x8xf32>
    %cst_121 = arith.constant 2.000000e+00 : f32
    %212 = vector.broadcast %cst_121 : f32 to vector<8x8xf32>
    %213 = arith.addf %211, %212 : vector<8x8xf32>
    %214 = vector.extract_strided_slice %210 {offsets = [0, 8], sizes = [8, 8], strides = [1, 1]} : vector<8x16xf32> to vector<8x8xf32>
    %cst_122 = arith.constant 0.000000e+00 : f32
    %215 = vector.broadcast %cst_122 : f32 to vector<8x8xf32>
    %216 = arith.subf %215, %213 : vector<8x8xf32>
    %217 = math.exp %216 : vector<8x8xf32>
    %cst_123 = arith.constant 1.000000e+00 : f32
    %218 = vector.broadcast %cst_123 : f32 to vector<8x8xf32>
    %219 = arith.addf %218, %217 : vector<8x8xf32>
    %220 = tpu.reciprocal %219 : vector<8x8xf32> -> vector<8x8xf32>
    %221 = math.log %219 : vector<8x8xf32>
    %cst_124 = arith.constant 0.000000e+00 : f32
    %222 = vector.broadcast %cst_124 : f32 to vector<8x8xf32>
    %223 = arith.subf %222, %221 : vector<8x8xf32>
    %224 = arith.addf %180, %214 : vector<8x8xf32>
    %225 = arith.mulf %224, %220 : vector<8x8xf32>
    %226 = tpu.concatenate %179, %225 in 1 : vector<8x8xf32>, vector<8x8xf32> -> vector<8x16xf32>
    %cst_125 = arith.constant dense<0.000000e+00> : vector<8xf32>
    %227 = vector.multi_reduction <add>, %223, %cst_125 [1] : vector<8x8xf32> to vector<8xf32>
    %228 = vector.shape_cast %227 : vector<8xf32> to vector<8x1xf32>
    %229 = arith.addf %172, %228 : vector<8x1xf32>
    %c4 = arith.constant 4 : index
    %c1664_126 = arith.constant 1664 : index
    %230 = vector.load %arg2[%c4, %c1664_126] : memref<5x1792xf32, #tpu.memory_space<vmem>>, vector<1x16xf32>
    %c4_127 = arith.constant 4 : index
    %c0_128 = arith.constant 0 : index
    %c0_129 = arith.constant 0 : index
    %231 = vector.load %arg3[%c4_127, %c0_128, %c0_129] : memref<5x16x16xf32, #tpu.memory_space<vmem>>, vector<1x16x16xf32>
    %232 = vector.shape_cast %231 : vector<1x16x16xf32> to vector<16x16xf32>
    %233 = vector.broadcast %230 : vector<1x16xf32> to vector<8x16xf32>
    %234 = arith.addf %226, %233 : vector<8x16xf32>
    %cst_130 = arith.constant dense<0.000000e+00> : vector<8x16xf32>
    %235 = tpu.matmul %234, %232, %cst_130 {dimension_numbers = #tpu.dot_dimension_numbers<[1], [0], [0], [1], [0, 0, 1, 1], [], []>} : vector<8x16xf32>, vector<16x16xf32>, vector<8x16xf32> -> vector<8x16xf32>
    %236 = vector.extract_strided_slice %235 {offsets = [0, 0], sizes = [8, 8], strides = [1, 1]} : vector<8x16xf32> to vector<8x8xf32>
    %237 = vector.extract_strided_slice %235 {offsets = [0, 8], sizes = [8, 8], strides = [1, 1]} : vector<8x16xf32> to vector<8x8xf32>
    %c4_131 = arith.constant 4 : index
    %c0_132 = arith.constant 0 : index
    %238 = vector.load %arg2[%c4_131, %c0_132] : memref<5x1792xf32, #tpu.memory_space<vmem>>, vector<1x512xf32>
    %c4_133 = arith.constant 4 : index
    %c512_134 = arith.constant 512 : index
    %239 = vector.load %arg2[%c4_133, %c512_134] : memref<5x1792xf32, #tpu.memory_space<vmem>>, vector<1x512xf32>
    %c4_135 = arith.constant 4 : index
    %c1024_136 = arith.constant 1024 : index
    %240 = vector.load %arg2[%c4_135, %c1024_136] : memref<5x1792xf32, #tpu.memory_space<vmem>>, vector<1x512xf32>
    %c4_137 = arith.constant 4 : index
    %c1536_138 = arith.constant 1536 : index
    %241 = vector.load %arg2[%c4_137, %c1536_138] : memref<5x1792xf32, #tpu.memory_space<vmem>>, vector<1x16xf32>
    %242 = arith.truncf %236 : vector<8x8xf32> to vector<8x8xbf16>
    %c4_139 = arith.constant 4 : index
    %c0_140 = arith.constant 0 : index
    %c0_141 = arith.constant 0 : index
    %243 = vector.load %arg5[%c4_139, %c0_140, %c0_141] : memref<5x8x512xbf16, #tpu.memory_space<vmem>>, vector<1x8x512xbf16>
    %244 = vector.shape_cast %243 : vector<1x8x512xbf16> to vector<8x512xbf16>
    %cst_142 = arith.constant dense<0.000000e+00> : vector<8x512xf32>
    %245 = tpu.matmul %242, %244, %cst_142 {dimension_numbers = #tpu.dot_dimension_numbers<[1], [0], [0], [1], [0, 0, 1, 1], [], []>} : vector<8x8xbf16>, vector<8x512xbf16>, vector<8x512xf32> -> vector<8x512xf32>
    %246 = vector.broadcast %238 : vector<1x512xf32> to vector<8x512xf32>
    %247 = arith.addf %245, %246 : vector<8x512xf32>
    %cst_143 = arith.constant 0.000000e+00 : f32
    %248 = vector.broadcast %cst_143 : f32 to vector<8x512xf32>
    %249 = arith.maximumf %247, %248 : vector<8x512xf32>
    %c4_144 = arith.constant 4 : index
    %c0_145 = arith.constant 0 : index
    %c0_146 = arith.constant 0 : index
    %250 = vector.load %arg6[%c4_144, %c0_145, %c0_146] : memref<5x512x512xi8, #tpu.memory_space<vmem>>, vector<1x512x512xi8>
    %251 = vector.shape_cast %250 : vector<1x512x512xi8> to vector<512x512xi8>
    %252 = arith.sitofp %251 : vector<512x512xi8> to vector<512x512xf32>
    %253 = arith.truncf %252 : vector<512x512xf32> to vector<512x512xbf16>
    %254 = arith.truncf %249 : vector<8x512xf32> to vector<8x512xbf16>
    %cst_147 = arith.constant dense<0.000000e+00> : vector<8x512xf32>
    %255 = tpu.matmul %254, %253, %cst_147 {dimension_numbers = #tpu.dot_dimension_numbers<[1], [0], [0], [1], [0, 0, 1, 1], [], []>} : vector<8x512xbf16>, vector<512x512xbf16>, vector<8x512xf32> -> vector<8x512xf32>
    %256 = vector.broadcast %240 : vector<1x512xf32> to vector<8x512xf32>
    %257 = arith.mulf %255, %256 : vector<8x512xf32>
    %258 = vector.broadcast %239 : vector<1x512xf32> to vector<8x512xf32>
    %259 = arith.addf %257, %258 : vector<8x512xf32>
    %cst_148 = arith.constant 0.000000e+00 : f32
    %260 = vector.broadcast %cst_148 : f32 to vector<8x512xf32>
    %261 = arith.maximumf %259, %260 : vector<8x512xf32>
    %262 = arith.truncf %261 : vector<8x512xf32> to vector<8x512xbf16>
    %c4_149 = arith.constant 4 : index
    %c0_150 = arith.constant 0 : index
    %c0_151 = arith.constant 0 : index
    %263 = vector.load %arg7[%c4_149, %c0_150, %c0_151] : memref<5x16x512xbf16, #tpu.memory_space<vmem>>, vector<1x16x512xbf16>
    %264 = vector.shape_cast %263 : vector<1x16x512xbf16> to vector<16x512xbf16>
    %cst_152 = arith.constant dense<0.000000e+00> : vector<8x16xf32>
    %265 = tpu.matmul %262, %264, %cst_152 {dimension_numbers = #tpu.dot_dimension_numbers<[1], [1], [0], [0], [0, 0, 1, 0], [], []>} : vector<8x512xbf16>, vector<16x512xbf16>, vector<8x16xf32> -> vector<8x16xf32>
    %266 = vector.broadcast %241 : vector<1x16xf32> to vector<8x16xf32>
    %267 = arith.addf %265, %266 : vector<8x16xf32>
    %268 = vector.extract_strided_slice %267 {offsets = [0, 0], sizes = [8, 8], strides = [1, 1]} : vector<8x16xf32> to vector<8x8xf32>
    %cst_153 = arith.constant 2.000000e+00 : f32
    %269 = vector.broadcast %cst_153 : f32 to vector<8x8xf32>
    %270 = arith.addf %268, %269 : vector<8x8xf32>
    %271 = vector.extract_strided_slice %267 {offsets = [0, 8], sizes = [8, 8], strides = [1, 1]} : vector<8x16xf32> to vector<8x8xf32>
    %cst_154 = arith.constant 0.000000e+00 : f32
    %272 = vector.broadcast %cst_154 : f32 to vector<8x8xf32>
    %273 = arith.subf %272, %270 : vector<8x8xf32>
    %274 = math.exp %273 : vector<8x8xf32>
    %cst_155 = arith.constant 1.000000e+00 : f32
    %275 = vector.broadcast %cst_155 : f32 to vector<8x8xf32>
    %276 = arith.addf %275, %274 : vector<8x8xf32>
    %277 = tpu.reciprocal %276 : vector<8x8xf32> -> vector<8x8xf32>
    %278 = math.log %276 : vector<8x8xf32>
    %cst_156 = arith.constant 0.000000e+00 : f32
    %279 = vector.broadcast %cst_156 : f32 to vector<8x8xf32>
    %280 = arith.subf %279, %278 : vector<8x8xf32>
    %281 = arith.addf %237, %271 : vector<8x8xf32>
    %282 = arith.mulf %281, %277 : vector<8x8xf32>
    %283 = tpu.concatenate %236, %282 in 1 : vector<8x8xf32>, vector<8x8xf32> -> vector<8x16xf32>
    %cst_157 = arith.constant dense<0.000000e+00> : vector<8xf32>
    %284 = vector.multi_reduction <add>, %280, %cst_157 [1] : vector<8x8xf32> to vector<8xf32>
    %285 = vector.shape_cast %284 : vector<8xf32> to vector<8x1xf32>
    %286 = arith.addf %229, %285 : vector<8x1xf32>
    %c0_158 = arith.constant 0 : index
    %c0_159 = arith.constant 0 : index
    %287 = vector.load %arg8[%c0_158, %c0_159] : memref<8x16xf32, #tpu.memory_space<vmem>>, vector<8x16xf32>
    tpu.vector_store %arg8[%c0_158, %c0_159], %283 {strides = array<i32>} : memref<8x16xf32, #tpu.memory_space<vmem>>, vector<8x16xf32>,
    %c0_160 = arith.constant 0 : index
    %288 = memref.load %arg4[%c0_160] : memref<1xf32, #tpu.memory_space<smem>>
    %289 = vector.broadcast %288 : f32 to vector<8x1xf32>
    %290 = arith.addf %286, %289 : vector<8x1xf32>
    %c0_161 = arith.constant 0 : index
    %c0_162 = arith.constant 0 : index
    %291 = vector.load %arg9[%c0_161, %c0_162] : memref<8x1xf32, #tpu.memory_space<vmem>>, vector<8x1xf32>
    tpu.vector_store %arg9[%c0_161, %c0_162], %290 {strides = array<i32>} : memref<8x1xf32, #tpu.memory_space<vmem>>, vector<8x1xf32>,
    return
  }
  func.func @transform_0(%arg0: i32) -> (i32, i32) {
    %c0_i32 = arith.constant 0 : i32
    %c0_i32_0 = arith.constant 0 : i32
    return %arg0, %c0_i32 : i32, i32
  }
  func.func @transform_1(%arg0: i32) -> (i32, i32) {
    %c0_i32 = arith.constant 0 : i32
    %c0_i32_0 = arith.constant 0 : i32
    %c0_i32_1 = arith.constant 0 : i32
    return %c0_i32, %c0_i32_0 : i32, i32
  }
  func.func @transform_2(%arg0: i32) -> (i32, i32, i32) {
    %c0_i32 = arith.constant 0 : i32
    %c0_i32_0 = arith.constant 0 : i32
    %c0_i32_1 = arith.constant 0 : i32
    %c0_i32_2 = arith.constant 0 : i32
    return %c0_i32, %c0_i32_0, %c0_i32_1 : i32, i32, i32
  }
  func.func @transform_3(%arg0: i32) -> i32 {
    %c0_i32 = arith.constant 0 : i32
    %c0_i32_0 = arith.constant 0 : i32
    return %c0_i32 : i32
  }
  func.func @transform_4(%arg0: i32) -> (i32, i32, i32) {
    %c0_i32 = arith.constant 0 : i32
    %c0_i32_0 = arith.constant 0 : i32
    %c0_i32_1 = arith.constant 0 : i32
    %c0_i32_2 = arith.constant 0 : i32
    return %c0_i32, %c0_i32_0, %c0_i32_1 : i32, i32, i32
  }
  func.func @transform_5(%arg0: i32) -> (i32, i32, i32) {
    %c0_i32 = arith.constant 0 : i32
    %c0_i32_0 = arith.constant 0 : i32
    %c0_i32_1 = arith.constant 0 : i32
    %c0_i32_2 = arith.constant 0 : i32
    return %c0_i32, %c0_i32_0, %c0_i32_1 : i32, i32, i32
  }
  func.func @transform_6(%arg0: i32) -> (i32, i32, i32) {
    %c0_i32 = arith.constant 0 : i32
    %c0_i32_0 = arith.constant 0 : i32
    %c0_i32_1 = arith.constant 0 : i32
    %c0_i32_2 = arith.constant 0 : i32
    return %c0_i32, %c0_i32_0, %c0_i32_1 : i32, i32, i32
  }
  func.func @transform_7(%arg0: i32) -> (i32, i32) {
    %c0_i32 = arith.constant 0 : i32
    %c0_i32_0 = arith.constant 0 : i32
    return %arg0, %c0_i32 : i32, i32
  }
  func.func @transform_8(%arg0: i32) -> (i32, i32) {
    %c0_i32 = arith.constant 0 : i32
    %c0_i32_0 = arith.constant 0 : i32
    return %arg0, %c0_i32 : i32, i32
  }
}

</mosaic_0001>

<bundles_post_ra>
// kernel: flow_forward.1
= control target key start
LH: loop header
LB: loop body
LE: loop exit
PB: predicated region body
PF: predicated region fallthrough
CT: control target
= control target key end

     0   :  { %15 = vsyncpa [#allocation4], 0  ;;  %s4829_s0 = inlined_call_operand.hbm [shape: f32[8,16], index: 0, kind: input, shape index: {}]   ;;  %s4830_s1 = inlined_call_operand.hbm [shape: f32[5,1792], index: 1, kind: input, shape index: {}]   ;;  %s4831_s2 = inlined_call_operand.hbm [shape: f32[5,16,16], index: 2, kind: input, shape index: {}]   ;;  %s4832_s3 = inlined_call_operand.<no memory space> [shape: f32[1], index: 3, kind: input, shape index: {}]   ;;  %s4833_s4 = inlined_call_operand.hbm [shape: bf16[5,8,512], index: 4, kind: input, shape index: {}]   ;;  %s4834_s5 = inlined_call_operand.hbm [shape: s8[5,512,512], index: 5, kind: input, shape index: {}]   ;;  %s4835_s6 = inlined_call_operand.hbm [shape: bf16[5,16,512], index: 6, kind: input, shape index: {}]   ;;  %s4836_s7 = inlined_call_operand.hbm [shape: f32[8,16], index: 7, kind: output, shape index: {0}]   ;;  %s4837_s8 = inlined_call_operand.vmem [shape: f32[8,1], index: 8, kind: output, shape index: {1}]  }
   0x1   :  { %16 = vsyncpa [#allocation7], 0 }
   0x2   :  { %17 = vsyncpa [#allocation10], 0 }
   0x3   :  { %18 = vsyncpa [#allocation13], 0 }
   0x4   :  { %19 = vsyncpa [#allocation5], 0  ;;  %s4417_s27 = smov [#allocation6]   ;;  %s4418_s29 = smov [#allocation9]  }
   0x5   :  { %s36_s28 = sshll.u32 %s4417_s27, 4  ;;  %s59_s30 = sshll.u32 %s4418_s29, 4  ;;  %s37_s28 = int_to_ptr.vmem [resolvable:$true] %s36_s28  ;;  %s4479_s30 = int_to_ptr.vmem [resolvable:$true] %s59_s30 }
   0x6   :  { %s4253_s11 = scalar_lea.hbm %s4830_s1, 1792 }
   0x7   :  { %p4254_p0 = scmp.ne.s32.totalorder %s4830_s1, %s4253_s11  ;;  %p4257_p1 = scmp.lt.u32.totalorder %s4253_s11, %s4830_s1 }
   0x9   :  { %p4259_p2 = pnand %p4257_p1, %p4254_p0 }
   0xb   :  { %4262 = shalt.err (!%p4259_p2)
}
   0xc   :  { %s4263_s16 = scalar_lea.vmem %s37_s28, 1792  ;;  %p4268_p4 = scmp.lt.s32.totalorder %s37_s28, %s37_s28 }
   0xd   :  { %p4264_p3 = scmp.ne.s32.totalorder %s37_s28, %s4263_s16  ;;  %p4269_p5 = scmp.lt.s32.totalorder %s4263_s16, %s4263_s16 }
   0xf   :  { %p4270_p6 = por %p4269_p5, %p4268_p4 }
  0x11   :  { %p4271_p7 = pnand %p4270_p6, %p4264_p3 }
  0x13   :  { %4274 = shalt.err (!%p4271_p7)
}
  0x14   :  { %39 = dma.hbm_to_vmem [thread:$0]  %s4830_s1, 1792, %s37_s28, [#allocation7]  }
  0x15   :  { %s4275_s21 = scalar_lea.hbm %s4833_s4, 1280 }
  0x16   :  { %p4276_p8 = scmp.ne.s32.totalorder %s4833_s4, %s4275_s21  ;;  %p4279_p9 = scmp.lt.u32.totalorder %s4275_s21, %s4833_s4 }
  0x18   :  { %p4281_p10 = pnand %p4279_p9, %p4276_p8 }
  0x1a   :  { %4284 = shalt.err (!%p4281_p10)
}
  0x1b   :  { %s4285_s26 = scalar_lea.vmem %s4479_s30, 1280  ;;  %p4290_p12 = scmp.lt.s32.totalorder %s4479_s30, %s4479_s30 }
  0x1c   :  { %p4286_p11 = scmp.ne.s32.totalorder %s4479_s30, %s4285_s26  ;;  %p4291_p13 = scmp.lt.s32.totalorder %s4285_s26, %s4285_s26 }
  0x1e   :  { %p4292_p0 = por %p4291_p13, %p4290_p12 }
  0x20   :  { %p4293_p1 = pnand %p4292_p0, %p4286_p11 }
  0x22   :  { %4296 = shalt.err (!%p4293_p1)
}
  0x23   :  { %s4419_s1 = smov 256   ;;  %s4420_s27 = smov 16  }
  0x24   :  { %65 = dma.hbm_to_vmem [thread:$0]  %s4833_s4, 1280, %s4479_s30, [#allocation10], %s4419_s1, %s4419_s1, %s4420_s27  }
  0x25   :  { %s4421_s9 = smov [#allocation3]   ;;  %s4422_s11 = smov [#allocation8]  }
  0x26   :  { %s26_s10 = sshll.u32 %s4421_s9, 4  ;;  %s45_s12 = sshll.u32 %s4422_s11, 4  ;;  %s27_s10 = int_to_ptr.vmem [resolvable:$true] %s26_s10  ;;  %s4513_s12 = int_to_ptr.vmem [resolvable:$true] %s45_s12 }
  0x27   :  { %s4297_s15 = scalar_lea.hbm %s4829_s0, 128 }
  0x28   :  { %p4298_p2 = scmp.ne.s32.totalorder %s4829_s0, %s4297_s15  ;;  %p4301_p3 = scmp.lt.u32.totalorder %s4297_s15, %s4829_s0 }
  0x2a   :  { %p4303_p4 = pnand %p4301_p3, %p4298_p2 }
  0x2c   :  { %4306 = shalt.err (!%p4303_p4)
}
  0x2d   :  { %s4307_s4 = scalar_lea.vmem %s27_s10, 128  ;;  %p4312_p6 = scmp.lt.s32.totalorder %s27_s10, %s27_s10 }
  0x2e   :  { %p4308_p5 = scmp.ne.s32.totalorder %s27_s10, %s4307_s4  ;;  %p4313_p7 = scmp.lt.s32.totalorder %s4307_s4, %s4307_s4 }
  0x30   :  { %p4314_p8 = por %p4313_p7, %p4312_p6 }
  0x32   :  { %p4315_p9 = pnand %p4314_p8, %p4308_p5 }
  0x34   :  { %4318 = shalt.err (!%p4315_p9)
}
  0x35   :  { %29 = dma.hbm_to_vmem [thread:$0]  %s4829_s0, 128, %s27_s10, [#allocation4]  }
  0x36   :  { %s4319_s23 = scalar_lea.hbm %s4831_s2, 1280 }
  0x37   :  { %p4320_p10 = scmp.ne.s32.totalorder %s4831_s2, %s4319_s23  ;;  %p4323_p11 = scmp.lt.u32.totalorder %s4319_s23, %s4831_s2 }
  0x39   :  { %p4325_p12 = pnand %p4323_p11, %p4320_p10 }
  0x3b   :  { %4328 = shalt.err (!%p4325_p12)
}
  0x3c   :  { %s4329_s29 = scalar_lea.vmem %s4513_s12, 1280  ;;  %p4334_p0 = scmp.lt.s32.totalorder %s4513_s12, %s4513_s12 }
  0x3d   :  { %p4330_p13 = scmp.ne.s32.totalorder %s4513_s12, %s4329_s29  ;;  %p4335_p1 = scmp.lt.s32.totalorder %s4329_s29, %s4329_s29 }
  0x3f   :  { %p4336_p2 = por %p4335_p1, %p4334_p0 }
  0x41   :  { %p4337_p3 = pnand %p4336_p2, %p4330_p13 }
  0x43   :  { %4340 = shalt.err (!%p4337_p3)
}
  0x44   :  { %s4423_s0 = smov 128   ;;  %s4424_s9 = smov 8  }
  0x45   :  { %51 = dma.hbm_to_vmem [thread:$0]  %s4831_s2, 1280, %s4513_s12, [#allocation7], %s4423_s0, %s4423_s0, %s4424_s9  }
  0x46   :  { %s4425_s13 = smov [#allocation11]   ;;  %s4341_s17 = scalar_lea.hbm %s4834_s5, 40960 }
  0x47   :  { %s71_s14 = sshll.u32 %s4425_s13, 4  ;;  %p4342_p4 = scmp.ne.s32.totalorder %s4834_s5, %s4341_s17  ;;  %s72_s14 = int_to_ptr.vmem [resolvable:$true] %s71_s14 }
  0x48   :  { %p4345_p5 = scmp.lt.u32.totalorder %s4341_s17, %s4834_s5 }
  0x4a   :  { %p4347_p6 = pnand %p4345_p5, %p4342_p4 }
  0x4c   :  { %4350 = shalt.err (!%p4347_p6)
}
  0x4d   :  { %s4351_s20 = scalar_lea.vmem %s72_s14, 40960  ;;  %p4356_p8 = scmp.lt.s32.totalorder %s72_s14, %s72_s14 }
  0x4e   :  { %p4352_p7 = scmp.ne.s32.totalorder %s72_s14, %s4351_s20  ;;  %p4357_p9 = scmp.lt.s32.totalorder %s4351_s20, %s4351_s20 }
  0x50   :  { %p4358_p10 = por %p4357_p9, %p4356_p8 }
  0x52   :  { %p4359_p11 = pnand %p4358_p10, %p4352_p7 }
  0x54   :  { %4362 = shalt.err (!%p4359_p11)
}
  0x55   :  { %s4426_s2 = smov 512   ;;  %s4427_s12 = smov 32  }
  0x56   :  { %77 = dma.hbm_to_vmem [thread:$0]  %s4834_s5, 40960, %s72_s14, [#allocation10], %s4426_s2, %s4426_s2, %s4427_s12  }
  0x57   :  { %s4428_s23 = smov [#allocation12]   ;;  %s4363_s28 = scalar_lea.hbm %s4835_s6, 2560 }
  0x58   :  { %s83_s24 = sshll.u32 %s4428_s23, 4  ;;  %p4364_p12 = scmp.ne.s32.totalorder %s4835_s6, %s4363_s28  ;;  %s84_s24 = int_to_ptr.vmem [resolvable:$true] %s83_s24 }
  0x59   :  { %p4367_p13 = scmp.lt.u32.totalorder %s4363_s28, %s4835_s6 }
  0x5b   :  { %p4369_p0 = pnand %p4367_p13, %p4364_p12 }
  0x5d   :  { %4372 = shalt.err (!%p4369_p0)
}
  0x5e   :  { %s4373_s13 = scalar_lea.vmem %s84_s24, 2560  ;;  %p4378_p2 = scmp.lt.s32.totalorder %s84_s24, %s84_s24 }
  0x5f   :  { %p4374_p1 = scmp.ne.s32.totalorder %s84_s24, %s4373_s13  ;;  %p4379_p3 = scmp.lt.s32.totalorder %s4373_s13, %s4373_s13 }
  0x61   :  { %p4380_p4 = por %p4379_p3, %p4378_p2 }
  0x63   :  { %p4381_p5 = pnand %p4380_p4, %p4374_p1 }
  0x65   :  { %4384 = shalt.err (!%p4381_p5)
}
  0x66   :  { %89 = dma.hbm_to_vmem [thread:$0]  %s4835_s6, 2560, %s84_s24, [#allocation13], %s4419_s1, %s4419_s1, %s4420_s27  }
  0x67   :  { %4407 = dma.done.wait [#allocation4], 128  }
  0x68   :  { %4408 = vsyncadd [#allocation4], 4294967168 }
  0x69   :  { %4409 = dma.done.wait [#allocation7], 3072  }
  0x6a   :  { %4410 = vsyncadd [#allocation7], 4294964224 }
  0x6b   :  { %4411 = dma.done.wait [#allocation10], 42240  }
  0x6c   :  { %4412 = vsyncadd [#allocation10], 4294925056 }
  0x6d   :  { %4413 = dma.done.wait [#allocation13], 2560  }
  0x6e   :  { %4414 = vsyncadd [#allocation13], 4294964736  ;;  %v4429_v0 = vmov 0.0|0.0   ;;  %vm4430_vm0 = vmmov 0   ;;  %v4431_v1 = vmov 0.0   ;;  %v111_v2 = vld [vmem:[#allocation8] sm:$0xff] }
  0x6f   :  { %4076 = vmatprep.subr.bf16.mxu1 %v4429_v0  ;;  %4045 = vmatprep.mubr.msk.f32.mxu1 %vm4430_vm0, %v4431_v1  ;;  %v112_v3 = vld [vmem:[#allocation8 + $0x8] sm:$0xff]  ;;  %v110_v6 = vld [vmem:[#allocation6 + $0x68] ss:$0 sm:$0xff]  ;;  %v195_v7 = vld [vmem:[#allocation9] sm:$0xff]  ;;  %vm232_vm1 = vcmask 1043456   ;;  %vm114_vm2 = vcmask 130048  }
  0x70   :  { %v109_v4 = vld [vmem:[#allocation3] sm:$0xff]  ;;  %v4077_v5 = vpack.c.bf16 %v112_v3, %v111_v2  ;;  %v196_v8 = vld [vmem:[#allocation9 + $0x8] sm:$0xff]  ;;  %v3963_v10 = vcombine.high %v195_v7, %v195_v7  ;;  %v3962_v11 = vcombine.low %v195_v7, %v195_v7  ;;  %v4432_v16 = vmov 0   ;;  %v331_v21 = vld [vmem:[#allocation11] sm:$0xff]  ;;  %s4433_s6 = smov [#allocation14]  }
  0x71   :  { %v113_v9 = vadd.f32 %v110_v6, %v109_v4  ;;  %v3965_v12 = vcombine.high %v196_v8, %v196_v8  ;;  %v3964_v14 = vcombine.low %v196_v8, %v196_v8  ;;  %318 = vmatprep.mubr.bf16.mxu0 %v4432_v16  ;;  %v332_v17 = vld [vmem:[#allocation11 + $0x8] sm:$0xff]  ;;  %v334_v18 = vld [vmem:[#allocation11 + $0x18] sm:$0xff]  ;;  %v333_v22 = vld [vmem:[#allocation11 + $0x10] sm:$0xff]  ;;  %vm228_vm3 = vcmask 64512   ;;  %s3945_s1 = sshll.u32 %s4433_s6, 4  ;;  %s3946_s1 = int_to_ptr.vmem [resolvable:$true] %s3945_s1 }
  0x72   :  { %4078 = vmatpush3.bf16.msra.mxu1 %v4077_v5  ;;  %v234_v13 = vsel %vm232_vm1, %v3962_v11, 0  ;;  %v396_v19 = vunpack.c.l.s8.bf16 %v332_v17  ;;  %v398_v20 = vunpack.c.l.s8.bf16 %v334_v18  ;;  %v395_v24 = vunpack.c.l.s8.bf16 %v331_v21  ;;  %v336_v30 = vld [vmem:[#allocation11 + $0x28] sm:$0xff]  ;;  %v338_v31 = vld [vmem:[#allocation11 + $0x38] sm:$0xff]  ;;  %v335_v36 = vld [vmem:[#allocation11 + $0x20] sm:$0xff]  ;;  %s4385_s27 = scalar_lea.vmem %s3946_s1, 128  ;;  %p4390_p7 = scmp.lt.s32.totalorder %s3946_s1, %s3946_s1 }
  0x73   :  { %3966 = vmatprep.subr.msk.bf16.mxu1 %vm232_vm1, %v3963_v10  ;;  %3968 = vmatprep.subr.msk.bf16.mxu0 %vm232_vm1, %v3965_v12  ;;  %v240_v15 = vsel %vm232_vm1, %v3964_v14, 0  ;;  %v397_v25 = vunpack.c.l.s8.bf16 %v333_v22  ;;  %v400_v28 = vunpack.c.h.s8.bf16 %v332_v17  ;;  %v402_v29 = vunpack.c.h.s8.bf16 %v334_v18  ;;  %v337_v37 = vld [vmem:[#allocation11 + $0x30] sm:$0xff]  ;;  %v340_v42 = vld [vmem:[#allocation11 + $0x48] sm:$0xff]  ;;  %v342_v43 = vld [vmem:[#allocation11 + $0x58] sm:$0xff]  ;;  %p4386_p6 = scmp.ne.s32.totalorder %s3946_s1, %s4385_s27  ;;  %p4391_p8 = scmp.lt.s32.totalorder %s4385_s27, %s4385_s27 }
  0x74   :  { %287 = vmatpush1.bf16.msra.mxu0 %v240_v15  ;;  %v399_v32 = vunpack.c.h.s8.bf16 %v331_v21  ;;  %v401_v33 = vunpack.c.h.s8.bf16 %v333_v22  ;;  %v404_v34 = vunpack.c.l.s8.bf16 %v336_v30  ;;  %v406_v35 = vunpack.c.l.s8.bf16 %v338_v31  ;;  %v339_v48 = vld [vmem:[#allocation11 + $0x40] sm:$0xff]  ;;  %v341_v49 = vld [vmem:[#allocation11 + $0x50] sm:$0xff]  ;;  %v344_v54 = vld [vmem:[#allocation11 + $0x68] sm:$0xff] }
  0x75   :  { %4046 = vmatmul.mubr.msk.f32.vlgmr.msra.gmra.mrb[0].mxu1 %vm114_vm2, %v113_v9  ;;  %609 = vmatprep.subr.bf16.mxu0 %v398_v20  ;;  %v403_v38 = vunpack.c.l.s8.bf16 %v335_v36  ;;  %v405_v39 = vunpack.c.l.s8.bf16 %v337_v37  ;;  %v408_v40 = vunpack.c.h.s8.bf16 %v336_v30  ;;  %v410_v41 = vunpack.c.h.s8.bf16 %v338_v31  ;;  %v346_v55 = vld [vmem:[#allocation11 + $0x78] sm:$0xff]  ;;  %v343_v60 = vld [vmem:[#allocation11 + $0x60] sm:$0xff]  ;;  %v345_v61 = vld [vmem:[#allocation11 + $0x70] sm:$0xff]  ;;  %p4392_p9 = por %p4391_p8, %p4390_p7 }
  0x76   :  { %246 = vmatpush1.bf16.msra.mxu1 %v234_v13  ;;  %277 = vmatprep.mubr.bf16.mxu1 %v4432_v16  ;;  %v407_v44 = vunpack.c.h.s8.bf16 %v335_v36  ;;  %v409_v45 = vunpack.c.h.s8.bf16 %v337_v37  ;;  %v412_v46 = vunpack.c.l.s8.bf16 %v340_v42  ;;  %v414_v47 = vunpack.c.l.s8.bf16 %v342_v43  ;;  %v348_v4 = vld [vmem:[#allocation11 + $0x88] sm:$0xff]  ;;  %v350_v5 = vld [vmem:[#allocation11 + $0x98] sm:$0xff]  ;;  %v347_v10 = vld [vmem:[#allocation11 + $0x80] sm:$0xff] }
  0x77   :  { %527 = vmatprep.subr.bf16.mxu1 %v396_v19  ;;  %v411_v50 = vunpack.c.l.s8.bf16 %v339_v48  ;;  %v413_v51 = vunpack.c.l.s8.bf16 %v341_v49  ;;  %v416_v52 = vunpack.c.h.s8.bf16 %v340_v42  ;;  %v418_v53 = vunpack.c.h.s8.bf16 %v342_v43  ;;  %v349_v11 = vld [vmem:[#allocation11 + $0x90] sm:$0xff]  ;;  %v352_v17 = vld [vmem:[#allocation11 + $0xa8] sm:$0xff]  ;;  %v354_v18 = vld [vmem:[#allocation11 + $0xb8] sm:$0xff]  ;;  %p4393_p10 = pnand %p4392_p9, %p4386_p6 }
  0x78   :  { %v415_v56 = vunpack.c.h.s8.bf16 %v339_v48  ;;  %v417_v57 = vunpack.c.h.s8.bf16 %v341_v49  ;;  %v420_v58 = vunpack.c.l.s8.bf16 %v344_v54  ;;  %v422_v59 = vunpack.c.l.s8.bf16 %v346_v55  ;;  %v356_v30 = vld [vmem:[#allocation11 + $0xc8] sm:$0xff]  ;;  %v358_v31 = vld [vmem:[#allocation11 + $0xd8] sm:$0xff]  ;;  %v355_v36 = vld [vmem:[#allocation11 + $0xc0] sm:$0xff] }
  0x79   :  { %v419_v62 = vunpack.c.l.s8.bf16 %v343_v60  ;;  %v421_v63 = vunpack.c.l.s8.bf16 %v345_v61  ;;  %v424_v2 = vunpack.c.h.s8.bf16 %v344_v54  ;;  %v426_v3 = vunpack.c.h.s8.bf16 %v346_v55  ;;  %v357_v37 = vld [vmem:[#allocation11 + $0xd0] sm:$0xff]  ;;  %v359_v48 = vld [vmem:[#allocation11 + $0xe0] sm:$0xff] }
  0x7a   :  { %v423_v6 = vunpack.c.h.s8.bf16 %v343_v60  ;;  %v425_v7 = vunpack.c.h.s8.bf16 %v345_v61  ;;  %v428_v8 = vunpack.c.l.s8.bf16 %v348_v4  ;;  %v430_v9 = vunpack.c.l.s8.bf16 %v350_v5  ;;  %v361_v49 = vld [vmem:[#allocation11 + $0xf0] sm:$0xff] }
  0x7b   :  { %v427_v12 = vunpack.c.l.s8.bf16 %v347_v10  ;;  %v429_v13 = vunpack.c.l.s8.bf16 %v349_v11  ;;  %v432_v14 = vunpack.c.h.s8.bf16 %v348_v4  ;;  %v434_v15 = vunpack.c.h.s8.bf16 %v350_v5 }
  0x7c   :  { %v431_v19 = vunpack.c.h.s8.bf16 %v347_v10  ;;  %v433_v20 = vunpack.c.h.s8.bf16 %v349_v11  ;;  %v436_v21 = vunpack.c.l.s8.bf16 %v352_v17  ;;  %v438_v22 = vunpack.c.l.s8.bf16 %v354_v18 }
  0x7d   :  { %v447_v42 = vunpack.c.h.s8.bf16 %v355_v36  ;;  %v449_v43 = vunpack.c.h.s8.bf16 %v357_v37  ;;  %v455_v54 = vunpack.c.h.s8.bf16 %v359_v48  ;;  %v457_v55 = vunpack.c.h.s8.bf16 %v361_v49 }
  0x7e   :  { %v198_v60 = vlaneseq }
  0x80   :  { %v4588_v61 = vshrl.u32 %v198_v60, 7 }
 0x148   :  { %v4582_v23 = vpop.f32.mrb[0].mxu1 }
 0x149   :  { %v194_v26 = vpack.c.bf16 %v4582_v23, %v4582_v23  ;;  %v4047_v27 = vpop.f32.mrb[1].mxu1 }
 0x14b   :  { %3967 = vmatmul.mubr.msk.bf16.vlgmr.msra.gmra.mrb[4].mxu1 %vm228_vm3, %v194_v26  ;;  %3969 = vmatmul.mubr.msk.bf16.vlgmr.msra.gmra.mrb[0].mxu0 %vm228_vm3, %v194_v26 }
 0x14c   :  { %528 = vmatpush1.bf16.msra.mxu1 %v395_v24  ;;  %610 = vmatpush1.bf16.msra.mxu0 %v397_v25  ;;  %v351_v24 = vld [vmem:[#allocation11 + $0xa0] sm:$0xff]  ;;  %v353_v25 = vld [vmem:[#allocation11 + $0xb0] sm:$0xff] }
 0x14d   :  { %529 = vmatprep.subr.bf16.mxu1 %v400_v28  ;;  %611 = vmatprep.subr.bf16.mxu0 %v402_v29  ;;  %v435_v26 = vunpack.c.l.s8.bf16 %v351_v24  ;;  %v437_v27 = vunpack.c.l.s8.bf16 %v353_v25  ;;  %v440_v28 = vunpack.c.h.s8.bf16 %v352_v17  ;;  %v442_v29 = vunpack.c.h.s8.bf16 %v354_v18 }
 0x150   :  { %530 = vmatpush1.bf16.msra.mxu1 %v399_v32  ;;  %612 = vmatpush1.bf16.msra.mxu0 %v401_v33  ;;  %v439_v32 = vunpack.c.h.s8.bf16 %v351_v24  ;;  %v441_v33 = vunpack.c.h.s8.bf16 %v353_v25 }
 0x151   :  { %531 = vmatprep.subr.bf16.mxu1 %v404_v34  ;;  %613 = vmatprep.subr.bf16.mxu0 %v406_v35  ;;  %v444_v34 = vunpack.c.l.s8.bf16 %v356_v30  ;;  %v446_v35 = vunpack.c.l.s8.bf16 %v358_v31 }
 0x154   :  { %532 = vmatpush1.bf16.msra.mxu1 %v403_v38  ;;  %614 = vmatpush1.bf16.msra.mxu0 %v405_v39  ;;  %v443_v38 = vunpack.c.l.s8.bf16 %v355_v36  ;;  %v445_v39 = vunpack.c.l.s8.bf16 %v357_v37 }
 0x155   :  { %533 = vmatprep.subr.bf16.mxu1 %v408_v40  ;;  %615 = vmatprep.subr.bf16.mxu0 %v410_v41  ;;  %v448_v40 = vunpack.c.h.s8.bf16 %v356_v30  ;;  %v450_v41 = vunpack.c.h.s8.bf16 %v358_v31  ;;  %v368_v31 = vld [vmem:[#allocation11 + $0x128] sm:$0xff] }
 0x156   :  { %v468_v36 = vunpack.c.l.s8.bf16 %v368_v31 }
 0x158   :  { %534 = vmatpush1.bf16.msra.mxu1 %v407_v44  ;;  %616 = vmatpush1.bf16.msra.mxu0 %v409_v45  ;;  %v360_v44 = vld [vmem:[#allocation11 + $0xe8] sm:$0xff]  ;;  %v362_v45 = vld [vmem:[#allocation11 + $0xf8] sm:$0xff] }
 0x159   :  { %535 = vmatprep.subr.bf16.mxu1 %v412_v46  ;;  %617 = vmatprep.subr.bf16.mxu0 %v414_v47  ;;  %v452_v46 = vunpack.c.l.s8.bf16 %v360_v44  ;;  %v454_v47 = vunpack.c.l.s8.bf16 %v362_v45 }
 0x15c   :  { %536 = vmatpush1.bf16.msra.mxu1 %v411_v50  ;;  %618 = vmatpush1.bf16.msra.mxu0 %v413_v51  ;;  %v451_v50 = vunpack.c.l.s8.bf16 %v359_v48  ;;  %v453_v51 = vunpack.c.l.s8.bf16 %v361_v49 }
 0x15d   :  { %537 = vmatprep.subr.bf16.mxu1 %v416_v52  ;;  %619 = vmatprep.subr.bf16.mxu0 %v418_v53  ;;  %v456_v52 = vunpack.c.h.s8.bf16 %v360_v44  ;;  %v458_v53 = vunpack.c.h.s8.bf16 %v362_v45  ;;  %v372_v44 = vld [vmem:[#allocation11 + $0x148] sm:$0xff]  ;;  %v374_v45 = vld [vmem:[#allocation11 + $0x158] sm:$0xff] }
 0x15e   :  { %v476_v48 = vunpack.c.l.s8.bf16 %v372_v44  ;;  %v478_v49 = vunpack.c.l.s8.bf16 %v374_v45 }
 0x160   :  { %538 = vmatpush1.bf16.msra.mxu1 %v415_v56  ;;  %620 = vmatpush1.bf16.msra.mxu0 %v417_v57  ;;  %v364_v56 = vld [vmem:[#allocation11 + $0x108] sm:$0xff]  ;;  %v366_v57 = vld [vmem:[#allocation11 + $0x118] sm:$0xff] }
 0x161   :  { %539 = vmatprep.subr.bf16.mxu1 %v420_v58  ;;  %621 = vmatprep.subr.bf16.mxu0 %v422_v59  ;;  %v460_v58 = vunpack.c.l.s8.bf16 %v364_v56  ;;  %v462_v59 = vunpack.c.l.s8.bf16 %v366_v57  ;;  %v466_v30 = vunpack.c.h.s8.bf16 %v366_v57  ;;  %v378_v57 = vld [vmem:[#allocation11 + $0x178] sm:$0xff] }
 0x164   :  { %540 = vmatpush1.bf16.msra.mxu1 %v419_v62  ;;  %622 = vmatpush1.bf16.msra.mxu0 %v421_v63  ;;  %v4591_v62 = vsub.s32 0, %v4588_v61  ;;  %v4593_v63 = vld [vmem:[#allocation6] ss:$8 sm:$0xf] }
 0x165   :  { %541 = vmatprep.subr.bf16.mxu1 %v424_v2  ;;  %623 = vmatprep.subr.bf16.mxu0 %v426_v3  ;;  %v4596_v2 = vsub.s32 1, %v4588_v61  ;;  %v4599_v3 = vsub.s32 3, %v4588_v61 }
 0x166   :  { %v201_v4 = vrot.slane %v4593_v63, %v4591_v62 }
 0x167   :  { %v205_v5 = vrot.slane %v4593_v63, %v4596_v2 }
 0x168   :  { %542 = vmatpush1.bf16.msra.mxu1 %v423_v6  ;;  %624 = vmatpush1.bf16.msra.mxu0 %v425_v7  ;;  %v213_v6 = vrot.slane %v4593_v63, %v4599_v3 }
 0x169   :  { %543 = vmatprep.subr.bf16.mxu1 %v428_v8  ;;  %625 = vmatprep.subr.bf16.mxu0 %v430_v9 }
 0x16c   :  { %544 = vmatpush1.bf16.msra.mxu1 %v427_v12  ;;  %626 = vmatpush1.bf16.msra.mxu0 %v429_v13 }
 0x16d   :  { %545 = vmatprep.subr.bf16.mxu1 %v432_v14  ;;  %627 = vmatprep.subr.bf16.mxu0 %v434_v15 }
 0x170   :  { %546 = vmatpush1.bf16.msra.mxu1 %v431_v19  ;;  %628 = vmatpush1.bf16.msra.mxu0 %v433_v20  ;;  %v363_v20 = vld [vmem:[#allocation11 + $0x100] sm:$0xff] }
 0x171   :  { %547 = vmatprep.subr.bf16.mxu1 %v436_v21  ;;  %629 = vmatprep.subr.bf16.mxu0 %v438_v22  ;;  %v365_v21 = vld [vmem:[#allocation11 + $0x110] sm:$0xff] }
 0x174   :  { %548 = vmatpush1.bf16.msra.mxu1 %v435_v26  ;;  %630 = vmatpush1.bf16.msra.mxu0 %v437_v27  ;;  %v459_v26 = vunpack.c.l.s8.bf16 %v363_v20  ;;  %v461_v27 = vunpack.c.l.s8.bf16 %v365_v21 }
 0x175   :  { %549 = vmatprep.subr.bf16.mxu1 %v440_v28  ;;  %631 = vmatprep.subr.bf16.mxu0 %v442_v29  ;;  %v464_v29 = vunpack.c.h.s8.bf16 %v364_v56  ;;  %v376_v56 = vld [vmem:[#allocation11 + $0x168] sm:$0xff] }
 0x176   :  { %v484_v60 = vunpack.c.l.s8.bf16 %v376_v56 }
 0x178   :  { %550 = vmatpush1.bf16.msra.mxu1 %v439_v32  ;;  %632 = vmatpush1.bf16.msra.mxu0 %v441_v33  ;;  %v370_v32 = vld [vmem:[#allocation11 + $0x138] sm:$0xff] }
 0x179   :  { %551 = vmatprep.subr.bf16.mxu1 %v444_v34  ;;  %633 = vmatprep.subr.bf16.mxu0 %v446_v35  ;;  %v463_v34 = vunpack.c.h.s8.bf16 %v363_v20  ;;  %v465_v35 = vunpack.c.h.s8.bf16 %v365_v21  ;;  %v470_v37 = vunpack.c.l.s8.bf16 %v370_v32  ;;  %v381_v20 = vld [vmem:[#allocation11 + $0x190] sm:$0xff] }
 0x17c   :  { %552 = vmatpush1.bf16.msra.mxu1 %v443_v38  ;;  %634 = vmatpush1.bf16.msra.mxu0 %v445_v39  ;;  %v367_v38 = vld [vmem:[#allocation11 + $0x120] sm:$0xff]  ;;  %v369_v39 = vld [vmem:[#allocation11 + $0x130] sm:$0xff] }
 0x17d   :  { %553 = vmatprep.subr.bf16.mxu1 %v448_v40  ;;  %635 = vmatprep.subr.bf16.mxu0 %v450_v41  ;;  %v467_v40 = vunpack.c.l.s8.bf16 %v367_v38  ;;  %v469_v41 = vunpack.c.l.s8.bf16 %v369_v39 }
 0x180   :  { %554 = vmatpush1.bf16.msra.mxu1 %v447_v42  ;;  %636 = vmatpush1.bf16.msra.mxu0 %v449_v43  ;;  %v472_v42 = vunpack.c.h.s8.bf16 %v368_v31  ;;  %v474_v43 = vunpack.c.h.s8.bf16 %v370_v32  ;;  %v383_v32 = vld [vmem:[#allocation11 + $0x1a0] sm:$0xff] }
 0x181   :  { %555 = vmatprep.subr.bf16.mxu1 %v452_v46  ;;  %637 = vmatprep.subr.bf16.mxu0 %v454_v47  ;;  %v471_v46 = vunpack.c.h.s8.bf16 %v367_v38  ;;  %v473_v47 = vunpack.c.h.s8.bf16 %v369_v39  ;;  %v388_v38 = vld [vmem:[#allocation11 + $0x1c8] sm:$0xff]  ;;  %v390_v39 = vld [vmem:[#allocation11 + $0x1d8] sm:$0xff] }
 0x184   :  { %556 = vmatpush1.bf16.msra.mxu1 %v451_v50  ;;  %638 = vmatpush1.bf16.msra.mxu0 %v453_v51  ;;  %v371_v50 = vld [vmem:[#allocation11 + $0x140] sm:$0xff]  ;;  %v373_v51 = vld [vmem:[#allocation11 + $0x150] sm:$0xff] }
 0x185   :  { %557 = vmatprep.subr.bf16.mxu1 %v456_v52  ;;  %639 = vmatprep.subr.bf16.mxu0 %v458_v53  ;;  %v475_v52 = vunpack.c.l.s8.bf16 %v371_v50  ;;  %v477_v53 = vunpack.c.l.s8.bf16 %v373_v51 }
 0x188   :  { %558 = vmatpush1.bf16.msra.mxu1 %v455_v54  ;;  %640 = vmatpush1.bf16.msra.mxu0 %v457_v55  ;;  %v480_v54 = vunpack.c.h.s8.bf16 %v372_v44  ;;  %v482_v55 = vunpack.c.h.s8.bf16 %v374_v45  ;;  %v387_v44 = vld [vmem:[#allocation11 + $0x1c0] sm:$0xff]  ;;  %v389_v45 = vld [vmem:[#allocation11 + $0x1d0] sm:$0xff] }
 0x189   :  { %568 = vmatprep.subr.bf16.mxu1 %v460_v58  ;;  %650 = vmatprep.subr.bf16.mxu0 %v462_v59  ;;  %v479_v58 = vunpack.c.h.s8.bf16 %v371_v50  ;;  %v481_v59 = vunpack.c.h.s8.bf16 %v373_v51  ;;  %v514_v50 = vunpack.c.h.s8.bf16 %v390_v39  ;;  %v392_v51 = vld [vmem:[#allocation11 + $0x1e8] sm:$0xff] }
 0x21e   :  { %v279_v7 = vpop.f32.mrb[4].mxu1  ;;  %v4607_v8 = vpop.f32.mrb[0].mxu0 }
 0x21f   :  { %v280_v9 = vadd.f32 %v279_v7, %v201_v4  ;;  %v281_v10 = vpop.f32.mrb[5].mxu1  ;;  %v322_v11 = vpop.f32.mrb[1].mxu0  ;;  %v486_v4 = vunpack.c.l.s8.bf16 %v378_v57 }
 0x220   :  { %v282_v12 = vadd.f32 %v281_v10, %v205_v5  ;;  %v323_v13 = vadd.f32 %v322_v11, %v213_v6  ;;  %v283_v14 = vpop.f32.mrb[6].mxu1  ;;  %v324_v15 = vpop.f32.mrb[2].mxu0  ;;  %v375_v5 = vld [vmem:[#allocation11 + $0x160] sm:$0xff]  ;;  %v377_v6 = vld [vmem:[#allocation11 + $0x170] sm:$0xff]  ;;  %v488_v10 = vunpack.c.h.s8.bf16 %v376_v56  ;;  %v490_v11 = vunpack.c.h.s8.bf16 %v378_v57 }
 0x221   :  { %v327_v17 = vmax.f32 %v280_v9, 0.0  ;;  %v284_v18 = vpop.f32.mrb[7].mxu1  ;;  %v325_v19 = vpop.f32.mrb[3].mxu0  ;;  %v483_v7 = vunpack.c.l.s8.bf16 %v375_v5  ;;  %v485_v9 = vunpack.c.l.s8.bf16 %v377_v6  ;;  %v487_v14 = vunpack.c.h.s8.bf16 %v375_v5 }
 0x222   :  { %v328_v22 = vmax.f32 %v282_v12, 0.0  ;;  %v330_v24 = vmax.f32 %v323_v13, 0.0  ;;  %v380_v12 = vld [vmem:[#allocation11 + $0x188] sm:$0xff]  ;;  %v382_v13 = vld [vmem:[#allocation11 + $0x198] sm:$0xff]  ;;  %v489_v15 = vunpack.c.h.s8.bf16 %v377_v6  ;;  %v379_v19 = vld [vmem:[#allocation11 + $0x180] sm:$0xff]  ;;  %v516_v56 = vunpack.c.l.s8.bf16 %v392_v51 }
 0x223   :  { %v523_v28 = vpack.c.bf16 %v327_v17, %v327_v17  ;;  %v492_v17 = vunpack.c.l.s8.bf16 %v380_v12  ;;  %v494_v18 = vunpack.c.l.s8.bf16 %v382_v13  ;;  %v491_v21 = vunpack.c.l.s8.bf16 %v379_v19 }
 0x224   :  { %v524_v25 = vpack.c.bf16 %v328_v22, %v328_v22  ;;  %v526_v33 = vpack.c.bf16 %v330_v24, %v330_v24  ;;  %v493_v22 = vunpack.c.l.s8.bf16 %v381_v20  ;;  %v496_v24 = vunpack.c.h.s8.bf16 %v380_v12  ;;  %v4182_v12 = vld [vmem:[#allocation12 + $0xc] ss:$16 sps:$4 sm:$0xff]  }
 0x225   :  { %v520_v5 = vunpack.c.h.s8.bf16 %v392_v51  ;;  %v875_v51 = vld [vmem:[#allocation8 + $0x10] sm:$0xff] }
 0x226   :  { %559 = vmatprep.mubr.bf16.mxu1 %v524_v25  ;;  %641 = vmatprep.mubr.bf16.mxu0 %v524_v25  ;;  %v498_v25 = vunpack.c.h.s8.bf16 %v382_v13  ;;  %v192_v13 = vld [vmem:[#allocation6 + $0x40] ss:$8 sm:$0xf] }
 0x227   :  { %560 = vmatmul.mubr.bf16.vlgmr.msra.gmra.mrb[8].mxu1 %v523_v28  ;;  %642 = vmatmul.mubr.bf16.vlgmr.msra.gmra.mrb[4].mxu0 %v523_v28  ;;  %v495_v28 = vunpack.c.h.s8.bf16 %v379_v19 }
 0x228   :  { %569 = vmatpush1.bf16.msra.mxu1 %v459_v26  ;;  %651 = vmatpush1.bf16.msra.mxu0 %v461_v27  ;;  %v384_v26 = vld [vmem:[#allocation11 + $0x1a8] sm:$0xff]  ;;  %v386_v27 = vld [vmem:[#allocation11 + $0x1b8] sm:$0xff] }
 0x229   :  { %600 = vmatprep.mubr.bf16.mxu1 %v526_v33  ;;  %682 = vmatprep.mubr.bf16.mxu0 %v526_v33  ;;  %v502_v31 = vunpack.c.l.s8.bf16 %v386_v27  ;;  %v385_v33 = vld [vmem:[#allocation11 + $0x1b0] sm:$0xff] }
 0x22a   :  { %570 = vmatprep.subr.bf16.mxu1 %v464_v29  ;;  %652 = vmatprep.subr.bf16.mxu0 %v466_v30  ;;  %v497_v29 = vunpack.c.h.s8.bf16 %v381_v20  ;;  %v500_v30 = vunpack.c.l.s8.bf16 %v384_v26 }
 0x22c   :  { %571 = vmatpush1.bf16.msra.mxu1 %v463_v34  ;;  %653 = vmatpush1.bf16.msra.mxu0 %v465_v35  ;;  %v499_v34 = vunpack.c.l.s8.bf16 %v383_v32  ;;  %v501_v35 = vunpack.c.l.s8.bf16 %v385_v33 }
 0x22d   :  { %572 = vmatprep.subr.bf16.mxu1 %v468_v36  ;;  %654 = vmatprep.subr.bf16.mxu0 %v470_v37  ;;  %v504_v36 = vunpack.c.h.s8.bf16 %v384_v26  ;;  %v506_v37 = vunpack.c.h.s8.bf16 %v386_v27 }
 0x230   :  { %573 = vmatpush1.bf16.msra.mxu1 %v467_v40  ;;  %655 = vmatpush1.bf16.msra.mxu0 %v469_v41  ;;  %v503_v40 = vunpack.c.h.s8.bf16 %v383_v32  ;;  %v505_v41 = vunpack.c.h.s8.bf16 %v385_v33 }
 0x231   :  { %574 = vmatprep.subr.bf16.mxu1 %v472_v42  ;;  %656 = vmatprep.subr.bf16.mxu0 %v474_v43  ;;  %v508_v42 = vunpack.c.l.s8.bf16 %v388_v38  ;;  %v510_v43 = vunpack.c.l.s8.bf16 %v390_v39 }
 0x234   :  { %575 = vmatpush1.bf16.msra.mxu1 %v471_v46  ;;  %657 = vmatpush1.bf16.msra.mxu0 %v473_v47  ;;  %v507_v46 = vunpack.c.l.s8.bf16 %v387_v44  ;;  %v509_v47 = vunpack.c.l.s8.bf16 %v389_v45 }
 0x235   :  { %576 = vmatprep.subr.bf16.mxu1 %v476_v48  ;;  %658 = vmatprep.subr.bf16.mxu0 %v478_v49  ;;  %v4610_v48 = vsub.s32 2, %v4588_v61  ;;  %v512_v49 = vunpack.c.h.s8.bf16 %v388_v38  ;;  %v393_v61 = vld [vmem:[#allocation11 + $0x1f0] sm:$0xff] }
 0x237   :  { %v703_v38 = vrot.slane %v192_v13, %v4610_v48 }
 0x238   :  { %577 = vmatpush1.bf16.msra.mxu1 %v475_v52  ;;  %659 = vmatpush1.bf16.msra.mxu0 %v477_v53  ;;  %v394_v52 = vld [vmem:[#allocation11 + $0x1f8] sm:$0xff]  ;;  %v511_v53 = vunpack.c.h.s8.bf16 %v387_v44 }
 0x239   :  { %578 = vmatprep.subr.bf16.mxu1 %v480_v54  ;;  %660 = vmatprep.subr.bf16.mxu0 %v482_v55  ;;  %v513_v54 = vunpack.c.h.s8.bf16 %v389_v45  ;;  %v209_v55 = vrot.slane %v4593_v63, %v4610_v48  ;;  %v518_v57 = vunpack.c.l.s8.bf16 %v394_v52  ;;  %v522_v6 = vunpack.c.h.s8.bf16 %v394_v52  ;;  %v876_v52 = vld [vmem:[#allocation8 + $0x18] sm:$0xff] }
 0x23a   :  { %v521_v63 = vunpack.c.h.s8.bf16 %v393_v61 }
 0x23c   :  { %579 = vmatpush1.bf16.msra.mxu1 %v479_v58  ;;  %661 = vmatpush1.bf16.msra.mxu0 %v481_v59  ;;  %v391_v58 = vld [vmem:[#allocation11 + $0x1e0] sm:$0xff] }
 0x23d   :  { %580 = vmatprep.subr.bf16.mxu1 %v484_v60  ;;  %662 = vmatprep.subr.bf16.mxu0 %v486_v4  ;;  %v515_v59 = vunpack.c.l.s8.bf16 %v391_v58  ;;  %v517_v60 = vunpack.c.l.s8.bf16 %v393_v61  ;;  %v321_v4 = vadd.f32 %v4607_v8, %v209_v55  ;;  %v4179_v8 = vld [vmem:[#allocation12 + $0x4] ss:$16 sps:$4 sm:$0xff]  }
 0x240   :  { %581 = vmatpush1.bf16.msra.mxu1 %v483_v7  ;;  %663 = vmatpush1.bf16.msra.mxu0 %v485_v9  ;;  %v519_v7 = vunpack.c.h.s8.bf16 %v391_v58  ;;  %v329_v9 = vmax.f32 %v321_v4, 0.0 }
 0x241   :  { %582 = vmatprep.subr.bf16.mxu1 %v488_v10  ;;  %664 = vmatprep.subr.bf16.mxu0 %v490_v11  ;;  %v4177_v11 = vld [vmem:[#allocation12] ss:$16 sps:$4 sm:$0xff]  }
 0x242   :  { %v525_v10 = vpack.c.bf16 %v329_v9, %v329_v9 }
 0x244   :  { %583 = vmatpush1.bf16.msra.mxu1 %v487_v14  ;;  %665 = vmatpush1.bf16.msra.mxu0 %v489_v15  ;;  %v190_v14 = vld [vmem:[#allocation6 + $0x20] ss:$8 sm:$0xf]  ;;  %v695_v15 = vrot.slane %v192_v13, %v4591_v62 }
 0x245   :  { %584 = vmatprep.subr.bf16.mxu1 %v492_v17  ;;  %666 = vmatprep.subr.bf16.mxu0 %v494_v18  ;;  %v699_v17 = vrot.slane %v192_v13, %v4596_v2  ;;  %v707_v18 = vrot.slane %v192_v13, %v4599_v3  ;;  %v720_v19 = vrot.slane %v190_v14, %v4591_v62 }
 0x246   :  { %v728_v45 = vrot.slane %v190_v14, %v4610_v48 }
 0x248   :  { %585 = vmatpush1.bf16.msra.mxu1 %v491_v21  ;;  %667 = vmatpush1.bf16.msra.mxu0 %v493_v22  ;;  %v724_v22 = vrot.slane %v190_v14, %v4596_v2 }
 0x249   :  { %586 = vmatprep.subr.bf16.mxu1 %v496_v24  ;;  %668 = vmatprep.subr.bf16.mxu0 %v498_v25  ;;  %v732_v24 = vrot.slane %v190_v14, %v4599_v3 }
 0x24c   :  { %587 = vmatpush1.bf16.msra.mxu1 %v495_v28  ;;  %669 = vmatpush1.bf16.msra.mxu0 %v497_v29 }
 0x24d   :  { %588 = vmatprep.subr.bf16.mxu1 %v500_v30  ;;  %670 = vmatprep.subr.bf16.mxu0 %v502_v31 }
 0x250   :  { %589 = vmatpush1.bf16.msra.mxu1 %v499_v34  ;;  %671 = vmatpush1.bf16.msra.mxu0 %v501_v35 }
 0x251   :  { %590 = vmatprep.subr.bf16.mxu1 %v504_v36  ;;  %672 = vmatprep.subr.bf16.mxu0 %v506_v37 }
 0x254   :  { %591 = vmatpush1.bf16.msra.mxu1 %v503_v40  ;;  %673 = vmatpush1.bf16.msra.mxu0 %v505_v41 }
 0x255   :  { %592 = vmatprep.subr.bf16.mxu1 %v508_v42  ;;  %674 = vmatprep.subr.bf16.mxu0 %v510_v43  ;;  %v4180_v42 = vld [vmem:[#allocation12 + $0x8] ss:$16 sps:$4 sm:$0xff]  }
 0x258   :  { %593 = vmatpush1.bf16.msra.mxu1 %v507_v46  ;;  %675 = vmatpush1.bf16.msra.mxu0 %v509_v47 }
 0x259   :  { %594 = vmatprep.subr.bf16.mxu1 %v512_v49  ;;  %676 = vmatprep.subr.bf16.mxu0 %v514_v50 }
 0x25c   :  { %595 = vmatpush1.bf16.msra.mxu1 %v511_v53  ;;  %677 = vmatpush1.bf16.msra.mxu0 %v513_v54  ;;  %v4080_v53 = vpack.c.bf16 %v876_v52, %v875_v51  ;;  %v193_v54 = vld [vmem:[#allocation6 + $0x60] ss:$0 sm:$0xff]  ;;  %v1116_v51 = vld [vmem:[#allocation11 + $0x2a8] sm:$0xff] }
 0x25d   :  { %596 = vmatprep.subr.bf16.mxu1 %v516_v56  ;;  %678 = vmatprep.subr.bf16.mxu0 %v518_v57  ;;  %v1200_v52 = vunpack.c.l.s8.bf16 %v1116_v51 }
 0x260   :  { %597 = vmatpush1.bf16.msra.mxu1 %v515_v59  ;;  %679 = vmatpush1.bf16.msra.mxu0 %v517_v60 }
 0x261   :  { %598 = vmatprep.subr.bf16.mxu1 %v520_v5  ;;  %680 = vmatprep.subr.bf16.mxu0 %v522_v6 }
 0x264   :  { %599 = vmatpush1.bf16.msra.mxu1 %v519_v7  ;;  %681 = vmatpush1.bf16.msra.mxu0 %v521_v63  ;;  %v960_v63 = vld [vmem:[#allocation9 + $0x10] sm:$0xff] }
 0x265   :  { %4079 = vmatprep.subr.bf16.mxu0 %v4429_v0  ;;  %773 = vmatprep.subr.bf16.mxu1 %v4179_v8  ;;  %v3976_v9 = vcombine.high %v960_v63, %v960_v63 }
 0x267   :  { %601 = vmatmul.mubr.bf16.vlgmr.msra.gmra.mrb[8].mxu1 %v525_v10  ;;  %683 = vmatmul.mubr.bf16.vlgmr.msra.gmra.mrb[4].mxu0 %v525_v10 }
 0x268   :  { %4052 = vmatprep.mubr.msk.f32.mxu0 %vm4430_vm0, %v4431_v1  ;;  %4081 = vmatpush3.bf16.msra.mxu0 %v4080_v53  ;;  %v1115_v53 = vld [vmem:[#allocation11 + $0x2a0] sm:$0xff] }
 0x269   :  { %3979 = vmatprep.subr.msk.bf16.mxu0 %vm232_vm1, %v3976_v9 }
 0x26d   :  { %774 = vmatpush1.bf16.xpose.msra.mxu1 %v4177_v11  ;;  %v3975_v11 = vcombine.low %v960_v63, %v960_v63 }
 0x26e   :  { %813 = vmatprep.subr.bf16.mxu1 %v4182_v12  ;;  %v873_v12 = vld [vmem:[#allocation6 + $0x69] ss:$0 sm:$0xff] }
 0x33a   :  { %v602_v20 = vpop.f32.mrb[8].mxu1  ;;  %v684_v21 = vpop.f32.mrb[4].mxu0 }
 0x33b   :  { %v712_v25 = vmul.f32 %v695_v15, %v602_v20  ;;  %v604_v26 = vpop.f32.mrb[9].mxu1  ;;  %v686_v27 = vpop.f32.mrb[5].mxu0  ;;  %v714_v44 = vmul.f32 %v703_v38, %v684_v21  ;;  %v1096_v20 = vld [vmem:[#allocation11 + $0x208] sm:$0xff]  ;;  %v1095_v21 = vld [vmem:[#allocation11 + $0x200] sm:$0xff] }
 0x33c   :  { %v713_v28 = vmul.f32 %v699_v17, %v604_v26  ;;  %v715_v29 = vmul.f32 %v707_v18, %v686_v27  ;;  %v606_v30 = vpop.f32.mrb[10].mxu1  ;;  %v688_v31 = vpop.f32.mrb[6].mxu0  ;;  %v997_v17 = vsel %vm232_vm1, %v3975_v11, 0  ;;  %v4637_v18 = vld [vmem:[#allocation9 + $0x18] sm:$0xff] }
 0x33d   :  { %v737_v32 = vadd.f32 %v720_v19, %v712_v25  ;;  %v607_v33 = vpop.f32.mrb[11].mxu1  ;;  %v689_v34 = vpop.f32.mrb[7].mxu0  ;;  %v739_v47 = vadd.f32 %v728_v45, %v714_v44  ;;  %v3978_v19 = vcombine.high %v4637_v18, %v4637_v18  ;;  %v1163_v25 = vunpack.c.h.s8.bf16 %v1095_v21  ;;  %v1100_v26 = vld [vmem:[#allocation11 + $0x228] sm:$0xff] }
 0x33e   :  { %v738_v35 = vadd.f32 %v724_v22, %v713_v28  ;;  %v740_v36 = vadd.f32 %v732_v24, %v715_v29  ;;  %v1160_v22 = vunpack.c.l.s8.bf16 %v1096_v20  ;;  %v1159_v24 = vunpack.c.l.s8.bf16 %v1095_v21  ;;  %v1099_v28 = vld [vmem:[#allocation11 + $0x220] sm:$0xff]  ;;  %v1108_v38 = vld [vmem:[#allocation11 + $0x268] sm:$0xff] }
 0x33f   :  { %v741_v37 = vmax.f32 %v737_v32, 0.0  ;;  %v743_v49 = vmax.f32 %v739_v47, 0.0  ;;  %v1168_v27 = vunpack.c.l.s8.bf16 %v1100_v26  ;;  %v1167_v29 = vunpack.c.l.s8.bf16 %v1099_v28  ;;  %v1104_v32 = vld [vmem:[#allocation11 + $0x248] sm:$0xff]  ;;  %v1103_v34 = vld [vmem:[#allocation11 + $0x240] sm:$0xff] }
 0x340   :  { %v742_v39 = vmax.f32 %v738_v35, 0.0  ;;  %v744_v40 = vmax.f32 %v740_v36, 0.0  ;;  %v1172_v30 = vunpack.c.h.s8.bf16 %v1100_v26  ;;  %v1171_v31 = vunpack.c.h.s8.bf16 %v1099_v28  ;;  %v1112_v44 = vld [vmem:[#allocation11 + $0x288] sm:$0xff]  ;;  %v1110_v28 = vld [vmem:[#allocation11 + $0x278] sm:$0xff] }
 0x341   :  { %v745_v43 = vpack.c.bf16 %v741_v37, %v741_v37  ;;  %v747_v50 = vpack.c.bf16 %v743_v49, %v743_v49  ;;  %v1176_v33 = vunpack.c.l.s8.bf16 %v1104_v32  ;;  %v1175_v35 = vunpack.c.l.s8.bf16 %v1103_v34 }
 0x342   :  { %v746_v41 = vpack.c.bf16 %v742_v39, %v742_v39  ;;  %v748_v46 = vpack.c.bf16 %v744_v40, %v744_v40  ;;  %v1180_v36 = vunpack.c.h.s8.bf16 %v1104_v32  ;;  %v1179_v37 = vunpack.c.h.s8.bf16 %v1103_v34  ;;  %v1107_v40 = vld [vmem:[#allocation11 + $0x260] sm:$0xff]  ;;  %v1114_v34 = vld [vmem:[#allocation11 + $0x298] sm:$0xff] }
 0x343   :  { %v1184_v39 = vunpack.c.l.s8.bf16 %v1108_v38  ;;  %v1192_v45 = vunpack.c.l.s8.bf16 %v1112_v44  ;;  %v1196_v49 = vunpack.c.h.s8.bf16 %v1112_v44 }
 0x344   :  { %805 = vmatprep.mubr.bf16.mxu1 %v746_v41  ;;  %v1183_v41 = vunpack.c.l.s8.bf16 %v1107_v40 }
 0x345   :  { %806 = vmatmul.mubr.bf16.vlgmr.msra.gmra.mrb[12].mxu1 %v745_v43  ;;  %v1187_v43 = vunpack.c.h.s8.bf16 %v1107_v40  ;;  %v1118_v40 = vld [vmem:[#allocation11 + $0x2b8] sm:$0xff] }
 0x346   :  { %814 = vmatpush1.bf16.xpose.msra.mxu1 %v4180_v42  ;;  %845 = vmatprep.mubr.bf16.mxu1 %v748_v46  ;;  %v1188_v42 = vunpack.c.h.s8.bf16 %v1108_v38  ;;  %v1111_v46 = vld [vmem:[#allocation11 + $0x280] sm:$0xff] }
 0x347   :  { %1291 = vmatprep.subr.bf16.mxu1 %v1160_v22  ;;  %v1191_v47 = vunpack.c.l.s8.bf16 %v1111_v46  ;;  %v1106_v22 = vld [vmem:[#allocation11 + $0x258] sm:$0xff] }
 0x351   :  { %846 = vmatmul.mubr.bf16.vlgmr.msra.gmra.mrb[12].mxu1 %v747_v50  ;;  %v1195_v50 = vunpack.c.h.s8.bf16 %v1111_v46  ;;  %v1122_v46 = vld [vmem:[#allocation11 + $0x2d8] sm:$0xff] }
 0x352   :  { %1292 = vmatpush1.bf16.msra.mxu1 %v1159_v24 }
 0x424   :  { %v847_v55 = vpop.f32.mrb[12].mxu1 }
 0x425   :  { %v4091_v56 = vadd.f32 %v847_v55, %v193_v54  ;;  %v849_v57 = vpop.f32.mrb[13].mxu1  ;;  %v1199_v54 = vunpack.c.l.s8.bf16 %v1115_v53  ;;  %v1204_v55 = vunpack.c.h.s8.bf16 %v1116_v51 }
 0x426   :  { %v850_v58 = vpop.f32.mrb[14].mxu1  ;;  %v1120_v57 = vld [vmem:[#allocation11 + $0x2c8] sm:$0xff] }
 0x427   :  { %v853_v61 = vadd.f32 2.0, %v4091_v56  ;;  %v851_v59 = vpop.f32.mrb[15].mxu1  ;;  %v862_v60 = vadd.f32 %v4091_v56, %v4582_v23  ;;  %v1203_v56 = vunpack.c.h.s8.bf16 %v1115_v53  ;;  %v1208_v58 = vunpack.c.l.s8.bf16 %v1120_v57 }
 0x429   :  { %v854_v4 = vsub.f32 0.0, %v853_v61  ;;  %v1119_v61 = vld [vmem:[#allocation11 + $0x2c0] sm:$0xff] }
 0x42a   :  { %v1207_v59 = vunpack.c.l.s8.bf16 %v1119_v61 }
 0x42b   :  { %v855_v5 = vmul.f32 1.442695, %v854_v4  ;;  %v1211_v4 = vunpack.c.h.s8.bf16 %v1119_v61  ;;  %v1125_v61 = vld [vmem:[#allocation11 + $0x2f0] sm:$0xff] }
 0x42d   :  { %4223 = vpow2.f32 %v855_v5  ;;  %v3977_v5 = vcombine.low %v4637_v18, %v4637_v18 }
 0x437   :  { %v4224_v6 = vpop.eup %4223 }
 0x438   :  { %v4627_v7 = vadd.f32 1.0, %v4224_v6  ;;  %v1098_v6 = vld [vmem:[#allocation11 + $0x218] sm:$0xff] }
 0x439   :  { %v1162_v11 = vunpack.c.l.s8.bf16 %v1098_v6 }
 0x43a   :  { %4225 = vrcp.f32 %v4627_v7 }
 0x444   :  { %v4226_v10 = vpop.eup %4225 }
 0x445   :  { %864 = vrot.lane.b32.xlu0 %v4226_v10, %s4424_s9 }
 0x4b7   :  { %v865_v8 = vpop.permute.xlu0 %864 }
 0x4b8   :  { %v867_v13 = vmul.f32 %v865_v8, %v862_v60  ;;  %v1212_v60 = vunpack.c.h.s8.bf16 %v1120_v57  ;;  %v1003_v8 = vsel %vm232_vm1, %v3977_v5, 0 }
 0x4ba   :  { %v868_v14 = vsel %vm228_vm3, %v4582_v23, %v867_v13  ;;  %v1164_v23 = vunpack.c.h.s8.bf16 %v1096_v20 }
 0x4bb   :  { %v877_v15 = vadd.f32 %v873_v12, %v868_v14  ;;  %v1097_v12 = vld [vmem:[#allocation11 + $0x210] sm:$0xff]  ;;  %v1166_v14 = vunpack.c.h.s8.bf16 %v1098_v6 }
 0x4bc   :  { %1293 = vmatprep.subr.bf16.mxu1 %v1164_v23  ;;  %v1161_v13 = vunpack.c.l.s8.bf16 %v1097_v12  ;;  %v1178_v23 = vunpack.c.l.s8.bf16 %v1106_v22 }
 0x4bd   :  { %4053 = vmatmul.mubr.msk.f32.vlgmr.msra.gmra.mrb[8].mxu0 %vm114_vm2, %v877_v15  ;;  %1294 = vmatpush1.bf16.msra.mxu1 %v1163_v25  ;;  %v1102_v15 = vld [vmem:[#allocation11 + $0x238] sm:$0xff]  ;;  %v1105_v25 = vld [vmem:[#allocation11 + $0x250] sm:$0xff] }
 0x4be   :  { %1009 = vmatpush1.bf16.msra.mxu0 %v997_v17  ;;  %1040 = vmatprep.mubr.bf16.mxu0 %v4432_v16  ;;  %v1165_v17 = vunpack.c.h.s8.bf16 %v1097_v12  ;;  %v1170_v18 = vunpack.c.l.s8.bf16 %v1102_v15  ;;  %v1174_v21 = vunpack.c.h.s8.bf16 %v1102_v15  ;;  %v1177_v26 = vunpack.c.l.s8.bf16 %v1105_v25 }
 0x4bf   :  { %3981 = vmatprep.subr.msk.bf16.mxu0 %vm232_vm1, %v3978_v19  ;;  %1295 = vmatprep.subr.bf16.mxu1 %v1168_v27  ;;  %v1101_v19 = vld [vmem:[#allocation11 + $0x230] sm:$0xff]  ;;  %v1182_v27 = vunpack.c.h.s8.bf16 %v1106_v22 }
 0x4c0   :  { %v1169_v20 = vunpack.c.l.s8.bf16 %v1101_v19  ;;  %v1173_v24 = vunpack.c.h.s8.bf16 %v1101_v19 }
 0x4c1   :  { %1296 = vmatpush1.bf16.msra.mxu1 %v1167_v29  ;;  %v1181_v29 = vunpack.c.h.s8.bf16 %v1105_v25  ;;  %v1129_v25 = vld [vmem:[#allocation11 + $0x310] sm:$0xff] }
 0x4c2   :  { %1297 = vmatprep.subr.bf16.mxu1 %v1172_v30  ;;  %v1186_v30 = vunpack.c.l.s8.bf16 %v1110_v28 }
 0x4c5   :  { %1298 = vmatpush1.bf16.msra.mxu1 %v1171_v31  ;;  %v1109_v31 = vld [vmem:[#allocation11 + $0x270] sm:$0xff] }
 0x4c6   :  { %1299 = vmatprep.subr.bf16.mxu1 %v1176_v33  ;;  %v1185_v32 = vunpack.c.l.s8.bf16 %v1109_v31  ;;  %v1190_v33 = vunpack.c.h.s8.bf16 %v1110_v28 }
 0x4c9   :  { %1300 = vmatpush1.bf16.msra.mxu1 %v1175_v35  ;;  %v1189_v35 = vunpack.c.h.s8.bf16 %v1109_v31 }
 0x4ca   :  { %1301 = vmatprep.subr.bf16.mxu1 %v1180_v36  ;;  %v1194_v36 = vunpack.c.l.s8.bf16 %v1114_v34 }
 0x4cd   :  { %1302 = vmatpush1.bf16.msra.mxu1 %v1179_v37  ;;  %v1113_v37 = vld [vmem:[#allocation11 + $0x290] sm:$0xff] }
 0x4ce   :  { %1303 = vmatprep.subr.bf16.mxu1 %v1184_v39  ;;  %v1193_v38 = vunpack.c.l.s8.bf16 %v1113_v37  ;;  %v1198_v39 = vunpack.c.h.s8.bf16 %v1114_v34 }
 0x4d1   :  { %1304 = vmatpush1.bf16.msra.mxu1 %v1183_v41  ;;  %v1197_v41 = vunpack.c.h.s8.bf16 %v1113_v37 }
 0x4d2   :  { %1305 = vmatprep.subr.bf16.mxu1 %v1188_v42  ;;  %v1202_v42 = vunpack.c.l.s8.bf16 %v1118_v40 }
 0x4d5   :  { %1306 = vmatpush1.bf16.msra.mxu1 %v1187_v43  ;;  %v1117_v43 = vld [vmem:[#allocation11 + $0x2b0] sm:$0xff] }
 0x4d6   :  { %1307 = vmatprep.subr.bf16.mxu1 %v1192_v45  ;;  %v1201_v44 = vunpack.c.l.s8.bf16 %v1117_v43  ;;  %v1206_v45 = vunpack.c.h.s8.bf16 %v1118_v40 }
 0x4d9   :  { %1308 = vmatpush1.bf16.msra.mxu1 %v1191_v47  ;;  %v1205_v47 = vunpack.c.h.s8.bf16 %v1117_v43 }
 0x4da   :  { %1309 = vmatprep.subr.bf16.mxu1 %v1196_v49  ;;  %v1210_v49 = vunpack.c.l.s8.bf16 %v1122_v46 }
 0x4dd   :  { %1310 = vmatpush1.bf16.msra.mxu1 %v1195_v50  ;;  %v1121_v50 = vld [vmem:[#allocation11 + $0x2d0] sm:$0xff] }
 0x4de   :  { %1311 = vmatprep.subr.bf16.mxu1 %v1200_v52  ;;  %v1209_v51 = vunpack.c.l.s8.bf16 %v1121_v50  ;;  %v1214_v52 = vunpack.c.h.s8.bf16 %v1122_v46  ;;  %v1213_v53 = vunpack.c.h.s8.bf16 %v1121_v50  ;;  %v1133_v46 = vld [vmem:[#allocation11 + $0x330] sm:$0xff] }
 0x4e1   :  { %1312 = vmatpush1.bf16.msra.mxu1 %v1199_v54  ;;  %v1124_v54 = vld [vmem:[#allocation11 + $0x2e8] sm:$0xff] }
 0x4e2   :  { %1313 = vmatprep.subr.bf16.mxu1 %v1204_v55  ;;  %v1126_v55 = vld [vmem:[#allocation11 + $0x2f8] sm:$0xff] }
 0x4e3   :  { %v1218_v57 = vunpack.c.l.s8.bf16 %v1126_v55  ;;  %v1222_v5 = vunpack.c.h.s8.bf16 %v1126_v55  ;;  %v1138_v55 = vld [vmem:[#allocation11 + $0x358] sm:$0xff] }
 0x4e5   :  { %1314 = vmatpush1.bf16.msra.mxu1 %v1203_v56  ;;  %v1216_v56 = vunpack.c.l.s8.bf16 %v1124_v54 }
 0x4e6   :  { %1315 = vmatprep.subr.bf16.mxu1 %v1208_v58  ;;  %v1123_v58 = vld [vmem:[#allocation11 + $0x2e0] sm:$0xff] }
 0x4e7   :  { %v1219_v6 = vunpack.c.h.s8.bf16 %v1123_v58 }
 0x4e9   :  { %1316 = vmatpush1.bf16.msra.mxu1 %v1207_v59  ;;  %v1215_v59 = vunpack.c.l.s8.bf16 %v1123_v58 }
 0x4ea   :  { %1317 = vmatprep.subr.bf16.mxu1 %v1212_v60  ;;  %v1217_v60 = vunpack.c.l.s8.bf16 %v1125_v61 }
 0x4ed   :  { %1318 = vmatpush1.bf16.msra.mxu1 %v1211_v4  ;;  %v1220_v4 = vunpack.c.h.s8.bf16 %v1124_v54  ;;  %v1136_v54 = vld [vmem:[#allocation11 + $0x348] sm:$0xff] }
 0x4ee   :  { %1319 = vmatprep.subr.bf16.mxu1 %v1216_v56  ;;  %v1240_v58 = vunpack.c.l.s8.bf16 %v1136_v54 }
 0x4f1   :  { %1320 = vmatpush1.bf16.msra.mxu1 %v1215_v59  ;;  %v1135_v59 = vld [vmem:[#allocation11 + $0x340] sm:$0xff] }
 0x4f2   :  { %1321 = vmatprep.subr.bf16.mxu1 %v1220_v4  ;;  %v1239_v4 = vunpack.c.l.s8.bf16 %v1135_v59 }
 0x4f5   :  { %1322 = vmatpush1.bf16.msra.mxu1 %v1219_v6  ;;  %v1244_v6 = vunpack.c.h.s8.bf16 %v1136_v54 }
 0x590   :  { %v4644_v63 = vpop.f32.mrb[8].mxu0 }
 0x591   :  { %v958_v9 = vpack.c.bf16 %v4644_v63, %v4644_v63  ;;  %v4054_v10 = vpop.f32.mrb[9].mxu0 }
 0x592   :  { %v1128_v10 = vld [vmem:[#allocation11 + $0x308] sm:$0xff] }
 0x593   :  { %3980 = vmatmul.mubr.msk.bf16.vlgmr.msra.gmra.mrb[12].mxu0 %vm228_vm3, %v958_v9 }
 0x594   :  { %1050 = vmatpush1.bf16.msra.mxu0 %v1003_v8  ;;  %1081 = vmatprep.mubr.bf16.mxu0 %v4432_v16  ;;  %v1130_v8 = vld [vmem:[#allocation11 + $0x318] sm:$0xff] }
 0x595   :  { %1373 = vmatprep.subr.bf16.mxu0 %v1162_v11  ;;  %v1224_v11 = vunpack.c.l.s8.bf16 %v1128_v10  ;;  %v1226_v12 = vunpack.c.l.s8.bf16 %v1130_v8 }
 0x597   :  { %1332 = vmatprep.subr.bf16.mxu1 %v1224_v11  ;;  %v1243_v11 = vunpack.c.h.s8.bf16 %v1135_v59 }
 0x59b   :  { %3982 = vmatmul.mubr.msk.bf16.vlgmr.msra.gmra.mrb[16].mxu0 %vm228_vm3, %v958_v9  ;;  %v1221_v9 = vunpack.c.h.s8.bf16 %v1125_v61  ;;  %v1242_v61 = vunpack.c.l.s8.bf16 %v1138_v55 }
 0x59c   :  { %1374 = vmatpush1.bf16.msra.mxu0 %v1161_v13  ;;  %v4652_v13 = vld [vmem:[#allocation6 + $0x1] ss:$8 sm:$0xf] }
 0x59d   :  { %1375 = vmatprep.subr.bf16.mxu0 %v1166_v14  ;;  %v966_v14 = vrot.slane %v4652_v13, %v4591_v62  ;;  %v970_v15 = vrot.slane %v4652_v13, %v4596_v2  ;;  %v978_v28 = vrot.slane %v4652_v13, %v4599_v3 }
 0x5a0   :  { %1376 = vmatpush1.bf16.msra.mxu0 %v1165_v17 }
 0x5a1   :  { %1377 = vmatprep.subr.bf16.mxu0 %v1170_v18 }
 0x5a4   :  { %1378 = vmatpush1.bf16.msra.mxu0 %v1169_v20 }
 0x5a5   :  { %1379 = vmatprep.subr.bf16.mxu0 %v1174_v21 }
 0x5a8   :  { %1380 = vmatpush1.bf16.msra.mxu0 %v1173_v24 }
 0x5a9   :  { %1381 = vmatprep.subr.bf16.mxu0 %v1178_v23  ;;  %v1127_v23 = vld [vmem:[#allocation11 + $0x300] sm:$0xff] }
 0x5aa   :  { %v1227_v40 = vunpack.c.h.s8.bf16 %v1127_v23 }
 0x5ac   :  { %1382 = vmatpush1.bf16.msra.mxu0 %v1177_v26 }
 0x5ad   :  { %1383 = vmatprep.subr.bf16.mxu0 %v1182_v27 }
 0x5b0   :  { %1384 = vmatpush1.bf16.msra.mxu0 %v1181_v29  ;;  %v1223_v29 = vunpack.c.l.s8.bf16 %v1127_v23  ;;  %v1146_v23 = vld [vmem:[#allocation11 + $0x398] sm:$0xff] }
 0x5b1   :  { %1385 = vmatprep.subr.bf16.mxu0 %v1186_v30  ;;  %v1225_v30 = vunpack.c.l.s8.bf16 %v1129_v25 }
 0x5b4   :  { %1386 = vmatpush1.bf16.msra.mxu0 %v1185_v32  ;;  %v1228_v32 = vunpack.c.h.s8.bf16 %v1128_v10  ;;  %v1140_v10 = vld [vmem:[#allocation11 + $0x368] sm:$0xff] }
 0x5b5   :  { %1387 = vmatprep.subr.bf16.mxu0 %v1190_v33  ;;  %v1230_v33 = vunpack.c.h.s8.bf16 %v1130_v8  ;;  %v1142_v8 = vld [vmem:[#allocation11 + $0x378] sm:$0xff] }
 0x5b8   :  { %1388 = vmatpush1.bf16.msra.mxu0 %v1189_v35  ;;  %v1132_v35 = vld [vmem:[#allocation11 + $0x328] sm:$0xff] }
 0x5b9   :  { %1389 = vmatprep.subr.bf16.mxu0 %v1194_v36  ;;  %v1134_v36 = vld [vmem:[#allocation11 + $0x338] sm:$0xff]  ;;  %v1232_v43 = vunpack.c.l.s8.bf16 %v1132_v35 }
 0x5bc   :  { %1390 = vmatpush1.bf16.msra.mxu0 %v1193_v38 }
 0x5bd   :  { %1391 = vmatprep.subr.bf16.mxu0 %v1198_v39 }
 0x5c0   :  { %1392 = vmatpush1.bf16.msra.mxu0 %v1197_v41  ;;  %v1229_v41 = vunpack.c.h.s8.bf16 %v1129_v25 }
 0x5c1   :  { %1393 = vmatprep.subr.bf16.mxu0 %v1202_v42 }
 0x5c4   :  { %1394 = vmatpush1.bf16.msra.mxu0 %v1201_v44  ;;  %v1234_v44 = vunpack.c.l.s8.bf16 %v1134_v36 }
 0x5c5   :  { %1395 = vmatprep.subr.bf16.mxu0 %v1206_v45  ;;  %v1131_v45 = vld [vmem:[#allocation11 + $0x320] sm:$0xff] }
 0x5c6   :  { %v1231_v50 = vunpack.c.l.s8.bf16 %v1131_v45  ;;  %v1235_v56 = vunpack.c.h.s8.bf16 %v1131_v45 }
 0x5c8   :  { %1396 = vmatpush1.bf16.msra.mxu0 %v1205_v47 }
 0x5c9   :  { %1397 = vmatprep.subr.bf16.mxu0 %v1210_v49 }
 0x5cc   :  { %1398 = vmatpush1.bf16.msra.mxu0 %v1209_v51  ;;  %v1233_v51 = vunpack.c.l.s8.bf16 %v1133_v46 }
 0x5cd   :  { %1399 = vmatprep.subr.bf16.mxu0 %v1214_v52  ;;  %v1236_v52 = vunpack.c.h.s8.bf16 %v1132_v35  ;;  %v1262_v35 = vunpack.c.h.s8.bf16 %v1146_v23 }
 0x5d0   :  { %1400 = vmatpush1.bf16.msra.mxu0 %v1213_v53  ;;  %v1238_v53 = vunpack.c.h.s8.bf16 %v1134_v36  ;;  %v1148_v36 = vld [vmem:[#allocation11 + $0x3a8] sm:$0xff] }
 0x5d1   :  { %1401 = vmatprep.subr.bf16.mxu0 %v1218_v57  ;;  %v1237_v57 = vunpack.c.h.s8.bf16 %v1133_v46  ;;  %v1268_v46 = vunpack.c.h.s8.bf16 %v1148_v36 }
 0x5d4   :  { %1402 = vmatpush1.bf16.msra.mxu0 %v1217_v60  ;;  %v1137_v60 = vld [vmem:[#allocation11 + $0x350] sm:$0xff] }
 0x5d5   :  { %1403 = vmatprep.subr.bf16.mxu0 %v1222_v5  ;;  %v1241_v5 = vunpack.c.l.s8.bf16 %v1137_v60 }
 0x5d8   :  { %1404 = vmatpush1.bf16.msra.mxu0 %v1221_v9  ;;  %v1246_v9 = vunpack.c.h.s8.bf16 %v1138_v55  ;;  %v1151_v55 = vld [vmem:[#allocation11 + $0x3c0] sm:$0xff] }
 0x5d9   :  { %1414 = vmatprep.subr.bf16.mxu0 %v1226_v12  ;;  %v1245_v12 = vunpack.c.h.s8.bf16 %v1137_v60  ;;  %v1156_v60 = vld [vmem:[#allocation11 + $0x3e8] sm:$0xff] }
 0x666   :  { %v1042_v17 = vpop.f32.mrb[12].mxu0 }
 0x667   :  { %v1043_v18 = vadd.f32 %v1042_v17, %v966_v14  ;;  %v1044_v19 = vpop.f32.mrb[13].mxu0  ;;  %v1248_v14 = vunpack.c.l.s8.bf16 %v1140_v10  ;;  %v1139_v17 = vld [vmem:[#allocation11 + $0x360] sm:$0xff] }
 0x668   :  { %v1045_v20 = vadd.f32 %v1044_v19, %v970_v15  ;;  %v1046_v21 = vpop.f32.mrb[14].mxu0  ;;  %v1250_v15 = vunpack.c.l.s8.bf16 %v1142_v8  ;;  %v1247_v19 = vunpack.c.l.s8.bf16 %v1139_v17  ;;  %v1251_v25 = vunpack.c.h.s8.bf16 %v1139_v17 }
 0x669   :  { %v1090_v22 = vmax.f32 %v1043_v18, 0.0  ;;  %v1047_v24 = vpop.f32.mrb[15].mxu0  ;;  %v1141_v18 = vld [vmem:[#allocation11 + $0x370] sm:$0xff]  ;;  %v1252_v21 = vunpack.c.h.s8.bf16 %v1140_v10  ;;  %v1280_v10 = vunpack.c.l.s8.bf16 %v1156_v60 }
 0x66a   :  { %v1091_v26 = vmax.f32 %v1045_v20, 0.0  ;;  %v1249_v20 = vunpack.c.l.s8.bf16 %v1141_v18  ;;  %v1144_v24 = vld [vmem:[#allocation11 + $0x388] sm:$0xff] }
 0x66b   :  { %v1287_v31 = vpack.c.bf16 %v1090_v22, %v1090_v22  ;;  %v1254_v22 = vunpack.c.h.s8.bf16 %v1142_v8 }
 0x66c   :  { %v1288_v27 = vpack.c.bf16 %v1091_v26, %v1091_v26  ;;  %v1253_v26 = vunpack.c.h.s8.bf16 %v1141_v18  ;;  %v1284_v18 = vunpack.c.h.s8.bf16 %v1156_v60 }
 0x66e   :  { %v4660_v34 = vpop.f32.mrb[16].mxu0  ;;  %1323 = vmatprep.mubr.bf16.mxu1 %v1288_v27  ;;  %1405 = vmatprep.mubr.bf16.mxu0 %v1288_v27  ;;  %v1256_v27 = vunpack.c.l.s8.bf16 %v1144_v24 }
 0x66f   :  { %v1085_v37 = vpop.f32.mrb[17].mxu0  ;;  %1324 = vmatmul.mubr.bf16.vlgmr.msra.gmra.mrb[16].mxu1 %v1287_v31  ;;  %1406 = vmatmul.mubr.bf16.vlgmr.msra.gmra.mrb[20].mxu0 %v1287_v31 }
 0x670   :  { %v1086_v38 = vadd.f32 %v1085_v37, %v978_v28  ;;  %1333 = vmatpush1.bf16.msra.mxu1 %v1223_v29  ;;  %1415 = vmatpush1.bf16.msra.mxu0 %v1225_v30  ;;  %v1087_v39 = vpop.f32.mrb[18].mxu0  ;;  %v1258_v28 = vunpack.c.l.s8.bf16 %v1146_v23  ;;  %v1143_v29 = vld [vmem:[#allocation11 + $0x380] sm:$0xff]  ;;  %v1145_v30 = vld [vmem:[#allocation11 + $0x390] sm:$0xff]  ;;  %v1150_v37 = vld [vmem:[#allocation11 + $0x3b8] sm:$0xff] }
 0x671   :  { %v1088_v42 = vpop.f32.mrb[19].mxu0  ;;  %1334 = vmatprep.subr.bf16.mxu1 %v1228_v32  ;;  %1416 = vmatprep.subr.bf16.mxu0 %v1230_v33  ;;  %v1255_v31 = vunpack.c.l.s8.bf16 %v1143_v29  ;;  %v1257_v32 = vunpack.c.l.s8.bf16 %v1145_v30  ;;  %v1260_v33 = vunpack.c.h.s8.bf16 %v1144_v24  ;;  %v1261_v39 = vunpack.c.h.s8.bf16 %v1145_v30  ;;  %v4187_v24 = vld [vmem:[#allocation12 + $0x20] ss:$16 sps:$4 sm:$0xff]   ;;  %v4192_v23 = vld [vmem:[#allocation12 + $0x2c] ss:$16 sps:$4 sm:$0xff]  }
 0x672   :  { %v1093_v47 = vmax.f32 %v1086_v38, 0.0  ;;  %v1259_v38 = vunpack.c.h.s8.bf16 %v1143_v29  ;;  %v1147_v42 = vld [vmem:[#allocation11 + $0x3a0] sm:$0xff] }
 0x674   :  { %v1290_v49 = vpack.c.bf16 %v1093_v47, %v1093_v47  ;;  %1335 = vmatpush1.bf16.msra.mxu1 %v1227_v40  ;;  %1417 = vmatpush1.bf16.msra.mxu0 %v1229_v41  ;;  %v1264_v40 = vunpack.c.l.s8.bf16 %v1148_v36  ;;  %v1266_v41 = vunpack.c.l.s8.bf16 %v1150_v37  ;;  %v1270_v47 = vunpack.c.h.s8.bf16 %v1150_v37 }
 0x675   :  { %1336 = vmatprep.subr.bf16.mxu1 %v1232_v43  ;;  %1418 = vmatprep.subr.bf16.mxu0 %v1234_v44  ;;  %v1149_v43 = vld [vmem:[#allocation11 + $0x3b0] sm:$0xff]  ;;  %v1263_v44 = vunpack.c.l.s8.bf16 %v1147_v42 }
 0x676   :  { %1364 = vmatprep.mubr.bf16.mxu1 %v1290_v49  ;;  %1446 = vmatprep.mubr.bf16.mxu0 %v1290_v49  ;;  %v1265_v45 = vunpack.c.l.s8.bf16 %v1149_v43  ;;  %v1152_v49 = vld [vmem:[#allocation11 + $0x3c8] sm:$0xff] }
 0x678   :  { %1337 = vmatpush1.bf16.msra.mxu1 %v1231_v50  ;;  %1419 = vmatpush1.bf16.msra.mxu0 %v1233_v51  ;;  %v1154_v50 = vld [vmem:[#allocation11 + $0x3d8] sm:$0xff]  ;;  %v1267_v51 = vunpack.c.h.s8.bf16 %v1147_v42 }
 0x679   :  { %1338 = vmatprep.subr.bf16.mxu1 %v1236_v52  ;;  %1420 = vmatprep.subr.bf16.mxu0 %v1238_v53  ;;  %v1269_v52 = vunpack.c.h.s8.bf16 %v1149_v43  ;;  %v1272_v53 = vunpack.c.l.s8.bf16 %v1152_v49  ;;  %v1274_v54 = vunpack.c.l.s8.bf16 %v1154_v50  ;;  %v1278_v59 = vunpack.c.h.s8.bf16 %v1154_v50 }
 0x67c   :  { %1339 = vmatpush1.bf16.msra.mxu1 %v1235_v56  ;;  %1421 = vmatpush1.bf16.msra.mxu0 %v1237_v57  ;;  %v1153_v56 = vld [vmem:[#allocation11 + $0x3d0] sm:$0xff]  ;;  %v1271_v57 = vunpack.c.l.s8.bf16 %v1151_v55 }
 0x67d   :  { %1340 = vmatprep.subr.bf16.mxu1 %v1240_v58  ;;  %1422 = vmatprep.subr.bf16.mxu0 %v1242_v61  ;;  %v1273_v58 = vunpack.c.l.s8.bf16 %v1153_v56  ;;  %v1276_v61 = vunpack.c.h.s8.bf16 %v1152_v49 }
 0x680   :  { %1341 = vmatpush1.bf16.msra.mxu1 %v1239_v4  ;;  %1423 = vmatpush1.bf16.msra.mxu0 %v1241_v5  ;;  %v1158_v4 = vld [vmem:[#allocation11 + $0x3f8] sm:$0xff]  ;;  %v1275_v5 = vunpack.c.h.s8.bf16 %v1151_v55 }
 0x681   :  { %1342 = vmatprep.subr.bf16.mxu1 %v1244_v6  ;;  %1424 = vmatprep.subr.bf16.mxu0 %v1246_v9  ;;  %v1277_v6 = vunpack.c.h.s8.bf16 %v1153_v56  ;;  %v974_v9 = vrot.slane %v4652_v13, %v4610_v48  ;;  %v1282_v8 = vunpack.c.l.s8.bf16 %v1158_v4 }
 0x683   :  { %v1084_v17 = vadd.f32 %v4660_v34, %v974_v9  ;;  %v4189_v34 = vld [vmem:[#allocation12 + $0x24] ss:$16 sps:$4 sm:$0xff]   ;;  %v957_v9 = vld [vmem:[#allocation6 + $0x61] ss:$0 sm:$0xff] }
 0x684   :  { %1343 = vmatpush1.bf16.msra.mxu1 %v1243_v11  ;;  %1425 = vmatpush1.bf16.msra.mxu0 %v1245_v12  ;;  %v1155_v11 = vld [vmem:[#allocation11 + $0x3e0] sm:$0xff]  ;;  %v1157_v12 = vld [vmem:[#allocation11 + $0x3f0] sm:$0xff] }
 0x685   :  { %1344 = vmatprep.subr.bf16.mxu1 %v1248_v14  ;;  %1426 = vmatprep.subr.bf16.mxu0 %v1250_v15  ;;  %v1279_v14 = vunpack.c.l.s8.bf16 %v1155_v11  ;;  %v1281_v15 = vunpack.c.l.s8.bf16 %v1157_v12  ;;  %v1285_v13 = vunpack.c.h.s8.bf16 %v1157_v12 }
 0x688   :  { %1345 = vmatpush1.bf16.msra.mxu1 %v1247_v19  ;;  %1427 = vmatpush1.bf16.msra.mxu0 %v1249_v20  ;;  %v1286_v19 = vunpack.c.h.s8.bf16 %v1158_v4  ;;  %v1283_v20 = vunpack.c.h.s8.bf16 %v1155_v11  ;;  %v1640_v4 = vld [vmem:[#allocation8 + $0x20] sm:$0xff] }
 0x689   :  { %1346 = vmatprep.subr.bf16.mxu1 %v1252_v21  ;;  %1428 = vmatprep.subr.bf16.mxu0 %v1254_v22  ;;  %v1092_v21 = vmax.f32 %v1084_v17, 0.0 }
 0x68b   :  { %v1289_v22 = vpack.c.bf16 %v1092_v21, %v1092_v21 }
 0x68c   :  { %1347 = vmatpush1.bf16.msra.mxu1 %v1251_v25  ;;  %1429 = vmatpush1.bf16.msra.mxu0 %v1253_v26  ;;  %v956_v25 = vld [vmem:[#allocation6 + $0x41] ss:$8 sm:$0xf] }
 0x68d   :  { %1348 = vmatprep.subr.bf16.mxu1 %v1256_v27  ;;  %1430 = vmatprep.subr.bf16.mxu0 %v1258_v28  ;;  %v954_v26 = vld [vmem:[#allocation6 + $0x21] ss:$8 sm:$0xf]  ;;  %v1459_v27 = vrot.slane %v956_v25, %v4591_v62  ;;  %v1463_v28 = vrot.slane %v956_v25, %v4596_v2  ;;  %v1471_v29 = vrot.slane %v956_v25, %v4599_v3 }
 0x68e   :  { %v1484_v30 = vrot.slane %v954_v26, %v4591_v62  ;;  %v1467_v50 = vrot.slane %v956_v25, %v4610_v48  ;;  %v1725_v25 = vld [vmem:[#allocation9 + $0x20] sm:$0xff] }
 0x690   :  { %1349 = vmatpush1.bf16.msra.mxu1 %v1255_v31  ;;  %1431 = vmatpush1.bf16.msra.mxu0 %v1257_v32 }
 0x691   :  { %1350 = vmatprep.subr.bf16.mxu1 %v1260_v33  ;;  %1432 = vmatprep.subr.bf16.mxu0 %v1262_v35  ;;  %v1488_v33 = vrot.slane %v954_v26, %v4596_v2  ;;  %v1496_v35 = vrot.slane %v954_v26, %v4599_v3 }
 0x694   :  { %1351 = vmatpush1.bf16.msra.mxu1 %v1259_v38  ;;  %1433 = vmatpush1.bf16.msra.mxu0 %v1261_v39 }
 0x695   :  { %1352 = vmatprep.subr.bf16.mxu1 %v1264_v40  ;;  %1434 = vmatprep.subr.bf16.mxu0 %v1266_v41 }
 0x698   :  { %1353 = vmatpush1.bf16.msra.mxu1 %v1263_v44  ;;  %1435 = vmatpush1.bf16.msra.mxu0 %v1265_v45 }
 0x699   :  { %1354 = vmatprep.subr.bf16.mxu1 %v1268_v46  ;;  %1436 = vmatprep.subr.bf16.mxu0 %v1270_v47 }
 0x69c   :  { %1355 = vmatpush1.bf16.msra.mxu1 %v1267_v51  ;;  %1437 = vmatpush1.bf16.msra.mxu0 %v1269_v52 }
 0x69d   :  { %1356 = vmatprep.subr.bf16.mxu1 %v1272_v53  ;;  %1438 = vmatprep.subr.bf16.mxu0 %v1274_v54  ;;  %v4190_v54 = vld [vmem:[#allocation12 + $0x28] ss:$16 sps:$4 sm:$0xff]  }
 0x6a0   :  { %1357 = vmatpush1.bf16.msra.mxu1 %v1271_v57  ;;  %1439 = vmatpush1.bf16.msra.mxu0 %v1273_v58  ;;  %v1492_v57 = vrot.slane %v954_v26, %v4610_v48  ;;  %v1726_v26 = vld [vmem:[#allocation9 + $0x28] sm:$0xff] }
 0x6a1   :  { %1358 = vmatprep.subr.bf16.mxu1 %v1276_v61  ;;  %1440 = vmatprep.subr.bf16.mxu0 %v1278_v59 }
 0x6a4   :  { %1359 = vmatpush1.bf16.msra.mxu1 %v1275_v5  ;;  %1441 = vmatpush1.bf16.msra.mxu0 %v1277_v6  ;;  %v1641_v5 = vld [vmem:[#allocation8 + $0x28] sm:$0xff] }
 0x6a5   :  { %1360 = vmatprep.subr.bf16.mxu1 %v1280_v10  ;;  %1442 = vmatprep.subr.bf16.mxu0 %v1282_v8  ;;  %v4083_v6 = vpack.c.bf16 %v1641_v5, %v1640_v4  ;;  %v1869_v5 = vld [vmem:[#allocation11 + $0x448] sm:$0xff] }
 0x6a8   :  { %1361 = vmatpush1.bf16.msra.mxu1 %v1279_v14  ;;  %1443 = vmatpush1.bf16.msra.mxu0 %v1281_v15 }
 0x6a9   :  { %1362 = vmatprep.subr.bf16.mxu1 %v1284_v18  ;;  %1444 = vmatprep.subr.bf16.mxu0 %v1286_v19 }
 0x6ac   :  { %1363 = vmatpush1.bf16.msra.mxu1 %v1283_v20  ;;  %1445 = vmatpush1.bf16.msra.mxu0 %v1285_v13 }
 0x6ad   :  { %4082 = vmatprep.subr.bf16.mxu0 %v4429_v0  ;;  %1538 = vmatprep.subr.bf16.mxu1 %v4189_v34 }
 0x6af   :  { %1365 = vmatmul.mubr.bf16.vlgmr.msra.gmra.mrb[16].mxu1 %v1289_v22  ;;  %1447 = vmatmul.mubr.bf16.vlgmr.msra.gmra.mrb[20].mxu0 %v1289_v22 }
 0x6b0   :  { %4059 = vmatprep.mubr.msk.f32.mxu0 %vm4430_vm0, %v4431_v1  ;;  %4084 = vmatpush3.bf16.msra.mxu0 %v4083_v6  ;;  %v1871_v6 = vld [vmem:[#allocation11 + $0x458] sm:$0xff] }
 0x6b5   :  { %1539 = vmatpush1.bf16.xpose.msra.mxu1 %v4187_v24 }
 0x6b6   :  { %1578 = vmatprep.subr.bf16.mxu1 %v4192_v23 }
 0x782   :  { %v1366_v31 = vpop.f32.mrb[16].mxu1  ;;  %v1448_v32 = vpop.f32.mrb[20].mxu0 }
 0x783   :  { %v1476_v36 = vmul.f32 %v1459_v27, %v1366_v31  ;;  %v1368_v37 = vpop.f32.mrb[17].mxu1  ;;  %v1450_v38 = vpop.f32.mrb[21].mxu0  ;;  %v1478_v56 = vmul.f32 %v1467_v50, %v1448_v32  ;;  %v3989_v27 = vcombine.high %v1725_v25, %v1725_v25  ;;  %v1638_v31 = vld [vmem:[#allocation6 + $0x6a] ss:$0 sm:$0xff] }
 0x784   :  { %v1477_v39 = vmul.f32 %v1463_v28, %v1368_v37  ;;  %v1479_v40 = vmul.f32 %v1471_v29, %v1450_v38  ;;  %v1370_v41 = vpop.f32.mrb[18].mxu1  ;;  %v1452_v42 = vpop.f32.mrb[22].mxu0  ;;  %v3991_v28 = vcombine.high %v1726_v26, %v1726_v26  ;;  %v1861_v38 = vld [vmem:[#allocation11 + $0x408] sm:$0xff] }
 0x785   :  { %v1501_v43 = vadd.f32 %v1484_v30, %v1476_v36  ;;  %v1371_v44 = vpop.f32.mrb[19].mxu1  ;;  %v1453_v45 = vpop.f32.mrb[23].mxu0  ;;  %v1503_v61 = vadd.f32 %v1492_v57, %v1478_v56  ;;  %3992 = vmatprep.subr.msk.bf16.mxu0 %vm232_vm1, %v3989_v27  ;;  %v3988_v30 = vcombine.low %v1725_v25, %v1725_v25  ;;  %v3990_v36 = vcombine.low %v1726_v26, %v1726_v26  ;;  %v1860_v42 = vld [vmem:[#allocation11 + $0x400] sm:$0xff]  ;;  %v1874_v26 = vld [vmem:[#allocation11 + $0x470] sm:$0xff] }
 0x786   :  { %v1502_v46 = vadd.f32 %v1488_v33, %v1477_v39  ;;  %v1504_v47 = vadd.f32 %v1496_v35, %v1479_v40  ;;  %v1863_v39 = vld [vmem:[#allocation11 + $0x418] sm:$0xff]  ;;  %v1925_v40 = vunpack.c.l.s8.bf16 %v1861_v38  ;;  %v1924_v44 = vunpack.c.l.s8.bf16 %v1860_v42  ;;  %v1864_v57 = vld [vmem:[#allocation11 + $0x420] sm:$0xff] }
 0x787   :  { %v1505_v49 = vmax.f32 %v1501_v43, 0.0  ;;  %v1507_v59 = vmax.f32 %v1503_v61, 0.0  ;;  %v1762_v35 = vsel %vm232_vm1, %v3988_v30, 0  ;;  %v1768_v37 = vsel %vm232_vm1, %v3990_v36, 0  ;;  %v1872_v25 = vld [vmem:[#allocation11 + $0x460] sm:$0xff] }
 0x788   :  { %v1506_v51 = vmax.f32 %v1502_v46, 0.0  ;;  %v1508_v52 = vmax.f32 %v1504_v47, 0.0  ;;  %v1927_v41 = vunpack.c.l.s8.bf16 %v1863_v39  ;;  %v1931_v50 = vunpack.c.h.s8.bf16 %v1863_v39 }
 0x789   :  { %v1509_v55 = vpack.c.bf16 %v1505_v49, %v1505_v49  ;;  %v1511_v60 = vpack.c.bf16 %v1507_v59, %v1507_v59  ;;  %v1929_v49 = vunpack.c.h.s8.bf16 %v1861_v38  ;;  %v1932_v61 = vunpack.c.l.s8.bf16 %v1864_v57  ;;  %v1878_v38 = vld [vmem:[#allocation11 + $0x490] sm:$0xff] }
 0x78a   :  { %v1510_v53 = vpack.c.bf16 %v1506_v51, %v1506_v51  ;;  %v1512_v58 = vpack.c.bf16 %v1508_v52, %v1508_v52  ;;  %v1865_v51 = vld [vmem:[#allocation11 + $0x428] sm:$0xff]  ;;  %v1867_v52 = vld [vmem:[#allocation11 + $0x438] sm:$0xff]  ;;  %v1948_v27 = vunpack.c.l.s8.bf16 %v1872_v25 }
 0x78b   :  { %v1935_v56 = vunpack.c.l.s8.bf16 %v1867_v52  ;;  %v1939_v4 = vunpack.c.h.s8.bf16 %v1867_v52 }
 0x78c   :  { %1570 = vmatprep.mubr.bf16.mxu1 %v1510_v53  ;;  %v1928_v53 = vunpack.c.h.s8.bf16 %v1860_v42 }
 0x78d   :  { %1571 = vmatmul.mubr.bf16.vlgmr.msra.gmra.mrb[20].mxu1 %v1509_v55  ;;  %v1933_v55 = vunpack.c.l.s8.bf16 %v1865_v51 }
 0x78e   :  { %1579 = vmatpush1.bf16.xpose.msra.mxu1 %v4190_v54  ;;  %1610 = vmatprep.mubr.bf16.mxu1 %v1512_v58  ;;  %v1866_v58 = vld [vmem:[#allocation11 + $0x430] sm:$0xff] }
 0x78f   :  { %3994 = vmatprep.subr.msk.bf16.mxu1 %vm232_vm1, %v3991_v28  ;;  %v1934_v59 = vunpack.c.l.s8.bf16 %v1866_v58  ;;  %v1950_v28 = vunpack.c.l.s8.bf16 %v1874_v26 }
 0x799   :  { %1611 = vmatmul.mubr.bf16.vlgmr.msra.gmra.mrb[20].mxu1 %v1511_v60  ;;  %v1937_v60 = vunpack.c.h.s8.bf16 %v1865_v51  ;;  %v1882_v51 = vld [vmem:[#allocation11 + $0x4b0] sm:$0xff] }
 0x79a   :  { %1846 = vmatprep.mubr.bf16.mxu1 %v4432_v16  ;;  %1815 = vmatpush1.bf16.msra.mxu1 %v1768_v37  ;;  %v1876_v37 = vld [vmem:[#allocation11 + $0x480] sm:$0xff] }
 0x79b   :  { %2138 = vmatprep.subr.bf16.mxu1 %v1927_v41  ;;  %v1956_v39 = vunpack.c.l.s8.bf16 %v1876_v37 }
 0x86c   :  { %v1612_v10 = vpop.f32.mrb[20].mxu1 }
 0x86d   :  { %v4092_v8 = vadd.f32 %v1612_v10, %v957_v9  ;;  %v1614_v11 = vpop.f32.mrb[21].mxu1  ;;  %v1936_v9 = vunpack.c.h.s8.bf16 %v1864_v57  ;;  %v1938_v10 = vunpack.c.h.s8.bf16 %v1866_v58  ;;  %v1887_v57 = vld [vmem:[#allocation11 + $0x4d8] sm:$0xff] }
 0x86e   :  { %v1615_v12 = vpop.f32.mrb[22].mxu1  ;;  %v1943_v11 = vunpack.c.l.s8.bf16 %v1871_v6 }
 0x86f   :  { %v1618_v14 = vadd.f32 2.0, %v4092_v8  ;;  %v1616_v15 = vpop.f32.mrb[23].mxu1  ;;  %v1627_v17 = vadd.f32 %v4092_v8, %v4644_v63  ;;  %v1941_v8 = vunpack.c.l.s8.bf16 %v1869_v5  ;;  %v1868_v12 = vld [vmem:[#allocation11 + $0x440] sm:$0xff] }
 0x870   :  { %v1940_v15 = vunpack.c.l.s8.bf16 %v1868_v12 }
 0x871   :  { %v1619_v18 = vsub.f32 0.0, %v1618_v14  ;;  %v1870_v14 = vld [vmem:[#allocation11 + $0x450] sm:$0xff] }
 0x873   :  { %v1620_v19 = vmul.f32 1.442695, %v1619_v18  ;;  %v1945_v18 = vunpack.c.h.s8.bf16 %v1869_v5  ;;  %v1886_v5 = vld [vmem:[#allocation11 + $0x4d0] sm:$0xff] }
 0x875   :  { %4227 = vpow2.f32 %v1620_v19  ;;  %v1947_v19 = vunpack.c.h.s8.bf16 %v1871_v6 }
 0x87f   :  { %v4228_v20 = vpop.eup %4227 }
 0x880   :  { %v4678_v13 = vadd.f32 1.0, %v4228_v20  ;;  %v1873_v20 = vld [vmem:[#allocation11 + $0x468] sm:$0xff] }
 0x882   :  { %4229 = vrcp.f32 %v4678_v13 }
 0x883   :  { %4231 = vlog2.f32 %v4627_v7 }
 0x88c   :  { %v4230_v21 = vpop.eup %4229 }
 0x88d   :  { %1629 = vrot.lane.b32.xlu0 %v4230_v21, %s4424_s9  ;;  %v4232_v22 = vpop.eup %4231  ;;  %v1875_v21 = vld [vmem:[#allocation11 + $0x478] sm:$0xff] }
 0x88e   :  { %v860_v34 = vmul.f32 0.6931472, %v4232_v22  ;;  %v1944_v22 = vunpack.c.h.s8.bf16 %v1868_v12  ;;  %v1955_v30 = vunpack.c.h.s8.bf16 %v1875_v21  ;;  %v1978_v12 = vunpack.c.h.s8.bf16 %v1886_v5 }
 0x890   :  { %v861_v24 = vsub.f32 0.0, %v860_v34  ;;  %v1946_v34 = vunpack.c.h.s8.bf16 %v1870_v14 }
 0x892   :  { %v869_v23 = vsel %vm228_vm3, %v861_v24, 0.0  ;;  %v1949_v24 = vunpack.c.l.s8.bf16 %v1873_v20 }
 0x8ac   :  { %870 = vadd.xlane.f32.xlu0 %v869_v23  ;;  %v1951_v23 = vunpack.c.l.s8.bf16 %v1875_v21 }
 0x8ff   :  { %v1630_v29 = vpop.permute.xlu0 %1629 }
 0x900   :  { %v1632_v32 = vmul.f32 %v1630_v29, %v1627_v17  ;;  %v1942_v17 = vunpack.c.l.s8.bf16 %v1870_v14  ;;  %v1953_v29 = vunpack.c.h.s8.bf16 %v1873_v20  ;;  %v1889_v14 = vld [vmem:[#allocation11 + $0x4e8] sm:$0xff]  ;;  %v1890_v20 = vld [vmem:[#allocation11 + $0x4f0] sm:$0xff] }
 0x902   :  { %v1633_v7 = vsel %vm228_vm3, %v4644_v63, %v1632_v32  ;;  %v1862_v63 = vld [vmem:[#allocation11 + $0x410] sm:$0xff]  ;;  %v1879_v32 = vld [vmem:[#allocation11 + $0x498] sm:$0xff] }
 0x903   :  { %v1642_v33 = vadd.f32 %v1638_v31, %v1633_v7  ;;  %v1926_v45 = vunpack.c.l.s8.bf16 %v1862_v63  ;;  %v1930_v54 = vunpack.c.h.s8.bf16 %v1862_v63  ;;  %v1877_v31 = vld [vmem:[#allocation11 + $0x488] sm:$0xff]  ;;  %v1952_v7 = vunpack.c.h.s8.bf16 %v1872_v25 }
 0x904   :  { %v1959_v36 = vunpack.c.l.s8.bf16 %v1879_v32  ;;  %v1961_v41 = vunpack.c.h.s8.bf16 %v1877_v31  ;;  %v1963_v42 = vunpack.c.h.s8.bf16 %v1879_v32  ;;  %v1881_v63 = vld [vmem:[#allocation11 + $0x4a8] sm:$0xff]  ;;  %v1986_v25 = vunpack.c.h.s8.bf16 %v1890_v20 }
 0x905   :  { %4060 = vmatmul.mubr.msk.f32.vlgmr.msra.gmra.mrb[10].mxu0 %vm114_vm2, %v1642_v33  ;;  %v1954_v33 = vunpack.c.h.s8.bf16 %v1874_v26  ;;  %v1893_v26 = vld [vmem:[#allocation11 + $0x508] sm:$0xff] }
 0x906   :  { %1774 = vmatpush1.bf16.msra.mxu0 %v1762_v35  ;;  %1805 = vmatprep.mubr.bf16.mxu0 %v4432_v16  ;;  %v1957_v35 = vunpack.c.l.s8.bf16 %v1877_v31 }
 0x907   :  { %2056 = vmatprep.subr.bf16.mxu0 %v1925_v40  ;;  %v1958_v40 = vunpack.c.l.s8.bf16 %v1878_v38 }
 0x9d8   :  { %v4692_v43 = vpop.f32.mrb[10].mxu0 }
 0x9d9   :  { %v1723_v46 = vpack.c.bf16 %v4692_v43, %v4692_v43  ;;  %v4061_v47 = vpop.f32.mrb[11].mxu0 }
 0x9da   :  { %v1965_v47 = vunpack.c.l.s8.bf16 %v1881_v63 }
 0x9db   :  { %3993 = vmatmul.mubr.msk.bf16.vlgmr.msra.gmra.mrb[24].mxu0 %vm228_vm3, %v1723_v46  ;;  %3995 = vmatmul.mubr.msk.bf16.vlgmr.msra.gmra.mrb[24].mxu1 %vm228_vm3, %v1723_v46  ;;  %v1962_v46 = vunpack.c.h.s8.bf16 %v1878_v38 }
 0x9dc   :  { %2057 = vmatpush1.bf16.msra.mxu0 %v1924_v44  ;;  %2139 = vmatpush1.bf16.msra.mxu1 %v1926_v45  ;;  %v1883_v44 = vld [vmem:[#allocation11 + $0x4b8] sm:$0xff]  ;;  %v1960_v45 = vunpack.c.h.s8.bf16 %v1876_v37 }
 0x9dd   :  { %2058 = vmatprep.subr.bf16.mxu0 %v1929_v49  ;;  %2140 = vmatprep.subr.bf16.mxu1 %v1931_v50  ;;  %v1967_v49 = vunpack.c.l.s8.bf16 %v1883_v44  ;;  %v1880_v50 = vld [vmem:[#allocation11 + $0x4a0] sm:$0xff] }
 0x9de   :  { %v1964_v52 = vunpack.c.l.s8.bf16 %v1880_v50  ;;  %v1968_v58 = vunpack.c.h.s8.bf16 %v1880_v50 }
 0x9e0   :  { %2059 = vmatpush1.bf16.msra.mxu0 %v1928_v53  ;;  %2141 = vmatpush1.bf16.msra.mxu1 %v1930_v54  ;;  %v1966_v53 = vunpack.c.l.s8.bf16 %v1882_v51  ;;  %v1969_v54 = vunpack.c.h.s8.bf16 %v1881_v63 }
 0x9e1   :  { %2060 = vmatprep.subr.bf16.mxu0 %v1933_v55  ;;  %2142 = vmatprep.subr.bf16.mxu1 %v1935_v56  ;;  %v1971_v55 = vunpack.c.h.s8.bf16 %v1883_v44  ;;  %v1885_v56 = vld [vmem:[#allocation11 + $0x4c8] sm:$0xff] }
 0x9e4   :  { %2061 = vmatpush1.bf16.msra.mxu0 %v1932_v61  ;;  %2143 = vmatpush1.bf16.msra.mxu1 %v1934_v59  ;;  %v1970_v61 = vunpack.c.h.s8.bf16 %v1882_v51  ;;  %v1973_v59 = vunpack.c.l.s8.bf16 %v1885_v56 }
 0x9e5   :  { %2062 = vmatprep.subr.bf16.mxu0 %v1937_v60  ;;  %2144 = vmatprep.subr.bf16.mxu1 %v1939_v4  ;;  %v1975_v60 = vunpack.c.l.s8.bf16 %v1887_v57  ;;  %v1884_v4 = vld [vmem:[#allocation11 + $0x4c0] sm:$0xff] }
 0x9e6   :  { %v1972_v6 = vunpack.c.l.s8.bf16 %v1884_v4 }
 0x9e8   :  { %2063 = vmatpush1.bf16.msra.mxu0 %v1936_v9  ;;  %2145 = vmatpush1.bf16.msra.mxu1 %v1938_v10  ;;  %v1974_v9 = vunpack.c.l.s8.bf16 %v1886_v5  ;;  %v1977_v10 = vunpack.c.h.s8.bf16 %v1885_v56 }
 0x9e9   :  { %2064 = vmatprep.subr.bf16.mxu0 %v1941_v8  ;;  %2146 = vmatprep.subr.bf16.mxu1 %v1943_v11  ;;  %v1979_v8 = vunpack.c.h.s8.bf16 %v1887_v57  ;;  %v1976_v11 = vunpack.c.h.s8.bf16 %v1884_v4  ;;  %v1897_v57 = vld [vmem:[#allocation11 + $0x528] sm:$0xff] }
 0x9ea   :  { %v1997_v4 = vunpack.c.l.s8.bf16 %v1897_v57 }
 0x9ec   :  { %2065 = vmatpush1.bf16.msra.mxu0 %v1940_v15  ;;  %2147 = vmatpush1.bf16.msra.mxu1 %v1942_v17  ;;  %v1891_v15 = vld [vmem:[#allocation11 + $0x4f8] sm:$0xff]  ;;  %v1981_v17 = vunpack.c.l.s8.bf16 %v1889_v14 }
 0x9ed   :  { %2066 = vmatprep.subr.bf16.mxu0 %v1945_v18  ;;  %2148 = vmatprep.subr.bf16.mxu1 %v1947_v19  ;;  %v1983_v18 = vunpack.c.l.s8.bf16 %v1891_v15  ;;  %v1888_v19 = vld [vmem:[#allocation11 + $0x4e0] sm:$0xff] }
 0x9ee   :  { %v1980_v21 = vunpack.c.l.s8.bf16 %v1888_v19 }
 0x9f0   :  { %2067 = vmatpush1.bf16.msra.mxu0 %v1944_v22  ;;  %2149 = vmatpush1.bf16.msra.mxu1 %v1946_v34  ;;  %v1982_v22 = vunpack.c.l.s8.bf16 %v1890_v20  ;;  %v1985_v34 = vunpack.c.h.s8.bf16 %v1889_v14  ;;  %v1901_v14 = vld [vmem:[#allocation11 + $0x548] sm:$0xff] }
 0x9f1   :  { %2068 = vmatprep.subr.bf16.mxu0 %v1949_v24  ;;  %2150 = vmatprep.subr.bf16.mxu1 %v1951_v23  ;;  %v1987_v24 = vunpack.c.h.s8.bf16 %v1891_v15  ;;  %v1984_v23 = vunpack.c.h.s8.bf16 %v1888_v19  ;;  %v1903_v15 = vld [vmem:[#allocation11 + $0x558] sm:$0xff]  ;;  %v2005_v19 = vunpack.c.l.s8.bf16 %v1901_v14 }
 0x9f2   :  { %v2007_v20 = vunpack.c.l.s8.bf16 %v1903_v15 }
 0x9f4   :  { %2069 = vmatpush1.bf16.msra.mxu0 %v1948_v27  ;;  %2151 = vmatpush1.bf16.msra.mxu1 %v1950_v28  ;;  %v1895_v27 = vld [vmem:[#allocation11 + $0x518] sm:$0xff]  ;;  %v1989_v28 = vunpack.c.l.s8.bf16 %v1893_v26 }
 0x9f5   :  { %2070 = vmatprep.subr.bf16.mxu0 %v1953_v29  ;;  %2152 = vmatprep.subr.bf16.mxu1 %v1955_v30  ;;  %v1991_v29 = vunpack.c.l.s8.bf16 %v1895_v27  ;;  %v4698_v30 = vld [vmem:[#allocation6 + $0x2] ss:$8 sm:$0xf]  ;;  %v1995_v56 = vunpack.c.h.s8.bf16 %v1895_v27 }
 0x9f6   :  { %v1731_v31 = vrot.slane %v4698_v30, %v4591_v62  ;;  %v1735_v32 = vrot.slane %v4698_v30, %v4596_v2  ;;  %v1907_v27 = vld [vmem:[#allocation11 + $0x578] sm:$0xff] }
 0x9f8   :  { %2071 = vmatpush1.bf16.msra.mxu0 %v1952_v7  ;;  %2153 = vmatpush1.bf16.msra.mxu1 %v1954_v33  ;;  %v1743_v7 = vrot.slane %v4698_v30, %v4599_v3 }
 0x9f9   :  { %2072 = vmatprep.subr.bf16.mxu0 %v1957_v35  ;;  %2154 = vmatprep.subr.bf16.mxu1 %v1959_v36 }
 0x9fc   :  { %2073 = vmatpush1.bf16.msra.mxu0 %v1956_v39  ;;  %2155 = vmatpush1.bf16.msra.mxu1 %v1958_v40 }
 0x9fd   :  { %2074 = vmatprep.subr.bf16.mxu0 %v1961_v41  ;;  %2156 = vmatprep.subr.bf16.mxu1 %v1963_v42 }
 0xa00   :  { %2075 = vmatpush1.bf16.msra.mxu0 %v1960_v45  ;;  %2157 = vmatpush1.bf16.msra.mxu1 %v1962_v46  ;;  %v1892_v46 = vld [vmem:[#allocation11 + $0x500] sm:$0xff] }
 0xa01   :  { %2076 = vmatprep.subr.bf16.mxu0 %v1965_v47  ;;  %2158 = vmatprep.subr.bf16.mxu1 %v1967_v49  ;;  %v1894_v47 = vld [vmem:[#allocation11 + $0x510] sm:$0xff] }
 0xa04   :  { %2077 = vmatpush1.bf16.msra.mxu0 %v1964_v52  ;;  %2159 = vmatpush1.bf16.msra.mxu1 %v1966_v53  ;;  %v1988_v52 = vunpack.c.l.s8.bf16 %v1892_v46  ;;  %v1990_v53 = vunpack.c.l.s8.bf16 %v1894_v47 }
 0xa05   :  { %2078 = vmatprep.subr.bf16.mxu0 %v1969_v54  ;;  %2160 = vmatprep.subr.bf16.mxu1 %v1971_v55  ;;  %v1993_v55 = vunpack.c.h.s8.bf16 %v1893_v26  ;;  %v1905_v26 = vld [vmem:[#allocation11 + $0x568] sm:$0xff] }
 0xa08   :  { %2079 = vmatpush1.bf16.msra.mxu0 %v1968_v58  ;;  %2161 = vmatpush1.bf16.msra.mxu1 %v1970_v61  ;;  %v1899_v58 = vld [vmem:[#allocation11 + $0x538] sm:$0xff] }
 0xa09   :  { %2080 = vmatprep.subr.bf16.mxu0 %v1973_v59  ;;  %2162 = vmatprep.subr.bf16.mxu1 %v1975_v60  ;;  %v1992_v59 = vunpack.c.h.s8.bf16 %v1892_v46  ;;  %v1994_v60 = vunpack.c.h.s8.bf16 %v1894_v47  ;;  %v1999_v5 = vunpack.c.l.s8.bf16 %v1899_v58  ;;  %v1908_v46 = vld [vmem:[#allocation11 + $0x580] sm:$0xff]  ;;  %v1910_v47 = vld [vmem:[#allocation11 + $0x590] sm:$0xff] }
 0xa0c   :  { %2081 = vmatpush1.bf16.msra.mxu0 %v1972_v6  ;;  %2163 = vmatpush1.bf16.msra.mxu1 %v1974_v9  ;;  %v1896_v6 = vld [vmem:[#allocation11 + $0x520] sm:$0xff]  ;;  %v1898_v9 = vld [vmem:[#allocation11 + $0x530] sm:$0xff] }
 0xa0d   :  { %2082 = vmatprep.subr.bf16.mxu0 %v1977_v10  ;;  %2164 = vmatprep.subr.bf16.mxu1 %v1979_v8  ;;  %v1996_v10 = vunpack.c.l.s8.bf16 %v1896_v6  ;;  %v1998_v8 = vunpack.c.l.s8.bf16 %v1898_v9 }
 0xa10   :  { %2083 = vmatpush1.bf16.msra.mxu0 %v1976_v11  ;;  %2165 = vmatpush1.bf16.msra.mxu1 %v1978_v12  ;;  %v2001_v11 = vunpack.c.h.s8.bf16 %v1897_v57  ;;  %v2003_v12 = vunpack.c.h.s8.bf16 %v1899_v58 }
 0xa11   :  { %2084 = vmatprep.subr.bf16.mxu0 %v1981_v17  ;;  %2166 = vmatprep.subr.bf16.mxu1 %v1983_v18  ;;  %v2000_v17 = vunpack.c.h.s8.bf16 %v1896_v6  ;;  %v2002_v18 = vunpack.c.h.s8.bf16 %v1898_v9  ;;  %v1917_v9 = vld [vmem:[#allocation11 + $0x5c8] sm:$0xff] }
 0xa14   :  { %2085 = vmatpush1.bf16.msra.mxu0 %v1980_v21  ;;  %2167 = vmatpush1.bf16.msra.mxu1 %v1982_v22  ;;  %v1900_v21 = vld [vmem:[#allocation11 + $0x540] sm:$0xff]  ;;  %v1902_v22 = vld [vmem:[#allocation11 + $0x550] sm:$0xff] }
 0xa15   :  { %2086 = vmatprep.subr.bf16.mxu0 %v1985_v34  ;;  %2168 = vmatprep.subr.bf16.mxu1 %v1987_v24  ;;  %v2004_v34 = vunpack.c.l.s8.bf16 %v1900_v21  ;;  %v2006_v24 = vunpack.c.l.s8.bf16 %v1902_v22 }
 0xa18   :  { %2087 = vmatpush1.bf16.msra.mxu0 %v1984_v23  ;;  %2169 = vmatpush1.bf16.msra.mxu1 %v1986_v25  ;;  %v2009_v23 = vunpack.c.h.s8.bf16 %v1901_v14  ;;  %v2011_v25 = vunpack.c.h.s8.bf16 %v1903_v15  ;;  %v1916_v15 = vld [vmem:[#allocation11 + $0x5c0] sm:$0xff] }
 0xa19   :  { %2097 = vmatprep.subr.bf16.mxu0 %v1989_v28  ;;  %2179 = vmatprep.subr.bf16.mxu1 %v1991_v29  ;;  %v2008_v28 = vunpack.c.h.s8.bf16 %v1900_v21  ;;  %v2010_v29 = vunpack.c.h.s8.bf16 %v1902_v22  ;;  %v1921_v22 = vld [vmem:[#allocation11 + $0x5e8] sm:$0xff] }
 0xaae   :  { %v1807_v33 = vpop.f32.mrb[24].mxu0  ;;  %v4706_v35 = vpop.f32.mrb[24].mxu1 }
 0xaaf   :  { %v1808_v36 = vadd.f32 %v1807_v33, %v1731_v31  ;;  %v1809_v37 = vpop.f32.mrb[25].mxu0  ;;  %v1850_v38 = vpop.f32.mrb[25].mxu1  ;;  %v2013_v31 = vunpack.c.l.s8.bf16 %v1905_v26  ;;  %v1906_v33 = vld [vmem:[#allocation11 + $0x570] sm:$0xff] }
 0xab0   :  { %v1810_v39 = vadd.f32 %v1809_v37, %v1735_v32  ;;  %v1851_v40 = vadd.f32 %v1850_v38, %v1743_v7  ;;  %v1811_v41 = vpop.f32.mrb[26].mxu0  ;;  %v1852_v42 = vpop.f32.mrb[26].mxu1  ;;  %v2015_v32 = vunpack.c.l.s8.bf16 %v1907_v27  ;;  %v1904_v7 = vld [vmem:[#allocation11 + $0x560] sm:$0xff]  ;;  %v2014_v37 = vunpack.c.l.s8.bf16 %v1906_v33 }
 0xab1   :  { %v1855_v63 = vmax.f32 %v1808_v36, 0.0  ;;  %v1812_v44 = vpop.f32.mrb[27].mxu0  ;;  %v1853_v45 = vpop.f32.mrb[27].mxu1  ;;  %v2012_v36 = vunpack.c.l.s8.bf16 %v1904_v7  ;;  %v2017_v38 = vunpack.c.h.s8.bf16 %v1905_v26  ;;  %v1911_v41 = vld [vmem:[#allocation11 + $0x598] sm:$0xff]  ;;  %v2016_v42 = vunpack.c.h.s8.bf16 %v1904_v7 }
 0xab2   :  { %v1856_v49 = vmax.f32 %v1810_v39, 0.0  ;;  %v1858_v50 = vmax.f32 %v1851_v40, 0.0  ;;  %v2019_v39 = vunpack.c.h.s8.bf16 %v1907_v27  ;;  %v1909_v40 = vld [vmem:[#allocation11 + $0x588] sm:$0xff]  ;;  %v2023_v45 = vunpack.c.l.s8.bf16 %v1911_v41 }
 0xab3   :  { %v2052_v54 = vpack.c.bf16 %v1855_v63, %v1855_v63  ;;  %v2018_v63 = vunpack.c.h.s8.bf16 %v1906_v33  ;;  %v2021_v44 = vunpack.c.l.s8.bf16 %v1909_v40  ;;  %v2045_v26 = vunpack.c.l.s8.bf16 %v1921_v22 }
 0xab4   :  { %v2053_v51 = vpack.c.bf16 %v1856_v49, %v1856_v49  ;;  %v2055_v61 = vpack.c.bf16 %v1858_v50, %v1858_v50  ;;  %v2020_v49 = vunpack.c.l.s8.bf16 %v1908_v46  ;;  %v2022_v50 = vunpack.c.l.s8.bf16 %v1910_v47 }
 0xab5   :  { %v2049_v33 = vunpack.c.h.s8.bf16 %v1921_v22 }
 0xab6   :  { %2088 = vmatprep.mubr.bf16.mxu0 %v2053_v51  ;;  %2170 = vmatprep.mubr.bf16.mxu1 %v2053_v51  ;;  %v2025_v51 = vunpack.c.h.s8.bf16 %v1909_v40  ;;  %v4197_v40 = vld [vmem:[#allocation12 + $0x40] ss:$16 sps:$4 sm:$0xff]  }
 0xab7   :  { %2089 = vmatmul.mubr.bf16.vlgmr.msra.gmra.mrb[28].mxu0 %v2052_v54  ;;  %2171 = vmatmul.mubr.bf16.vlgmr.msra.gmra.mrb[28].mxu1 %v2052_v54  ;;  %v1915_v54 = vld [vmem:[#allocation11 + $0x5b8] sm:$0xff] }
 0xab8   :  { %2098 = vmatpush1.bf16.msra.mxu0 %v1988_v52  ;;  %2180 = vmatpush1.bf16.msra.mxu1 %v1990_v53  ;;  %v2027_v52 = vunpack.c.h.s8.bf16 %v1911_v41  ;;  %v1913_v53 = vld [vmem:[#allocation11 + $0x5a8] sm:$0xff]  ;;  %v2031_v58 = vunpack.c.l.s8.bf16 %v1915_v54  ;;  %v2035_v6 = vunpack.c.h.s8.bf16 %v1915_v54 }
 0xab9   :  { %2129 = vmatprep.mubr.bf16.mxu0 %v2055_v61  ;;  %2211 = vmatprep.mubr.bf16.mxu1 %v2055_v61  ;;  %v2029_v57 = vunpack.c.l.s8.bf16 %v1913_v53  ;;  %v1912_v61 = vld [vmem:[#allocation11 + $0x5a0] sm:$0xff]  ;;  %v4202_v41 = vld [vmem:[#allocation12 + $0x4c] ss:$16 sps:$4 sm:$0xff]  }
 0xaba   :  { %2099 = vmatprep.subr.bf16.mxu0 %v1993_v55  ;;  %2181 = vmatprep.subr.bf16.mxu1 %v1995_v56  ;;  %v2024_v55 = vunpack.c.h.s8.bf16 %v1908_v46  ;;  %v2026_v56 = vunpack.c.h.s8.bf16 %v1910_v47 }
 0xabc   :  { %2100 = vmatpush1.bf16.msra.mxu0 %v1992_v59  ;;  %2182 = vmatpush1.bf16.msra.mxu1 %v1994_v60  ;;  %v1914_v59 = vld [vmem:[#allocation11 + $0x5b0] sm:$0xff]  ;;  %v2028_v60 = vunpack.c.l.s8.bf16 %v1912_v61 }
 0xabd   :  { %2101 = vmatprep.subr.bf16.mxu0 %v1997_v4  ;;  %2183 = vmatprep.subr.bf16.mxu1 %v1999_v5  ;;  %v2030_v4 = vunpack.c.l.s8.bf16 %v1914_v59  ;;  %v2033_v5 = vunpack.c.h.s8.bf16 %v1913_v53 }
 0xac0   :  { %2102 = vmatpush1.bf16.msra.mxu0 %v1996_v10  ;;  %2184 = vmatpush1.bf16.msra.mxu1 %v1998_v8  ;;  %v1919_v10 = vld [vmem:[#allocation11 + $0x5d8] sm:$0xff]  ;;  %v2032_v8 = vunpack.c.h.s8.bf16 %v1912_v61 }
 0xac1   :  { %2103 = vmatprep.subr.bf16.mxu0 %v2001_v11  ;;  %2185 = vmatprep.subr.bf16.mxu1 %v2003_v12  ;;  %v2034_v11 = vunpack.c.h.s8.bf16 %v1914_v59  ;;  %v2037_v12 = vunpack.c.l.s8.bf16 %v1917_v9  ;;  %v2039_v14 = vunpack.c.l.s8.bf16 %v1919_v10  ;;  %v2043_v21 = vunpack.c.h.s8.bf16 %v1919_v10 }
 0xac4   :  { %2104 = vmatpush1.bf16.msra.mxu0 %v2000_v17  ;;  %2186 = vmatpush1.bf16.msra.mxu1 %v2002_v18  ;;  %v1918_v17 = vld [vmem:[#allocation11 + $0x5d0] sm:$0xff]  ;;  %v2036_v18 = vunpack.c.l.s8.bf16 %v1916_v15 }
 0xac5   :  { %2105 = vmatprep.subr.bf16.mxu0 %v2005_v19  ;;  %2187 = vmatprep.subr.bf16.mxu1 %v2007_v20  ;;  %v2038_v19 = vunpack.c.l.s8.bf16 %v1918_v17  ;;  %v2041_v20 = vunpack.c.h.s8.bf16 %v1917_v9 }
 0xac8   :  { %2106 = vmatpush1.bf16.msra.mxu0 %v2004_v34  ;;  %2188 = vmatpush1.bf16.msra.mxu1 %v2006_v24  ;;  %v1923_v34 = vld [vmem:[#allocation11 + $0x5f8] sm:$0xff]  ;;  %v2040_v24 = vunpack.c.h.s8.bf16 %v1916_v15 }
 0xac9   :  { %2107 = vmatprep.subr.bf16.mxu0 %v2009_v23  ;;  %2189 = vmatprep.subr.bf16.mxu1 %v2011_v25  ;;  %v2042_v23 = vunpack.c.h.s8.bf16 %v1918_v17  ;;  %v1739_v25 = vrot.slane %v4698_v30, %v4610_v48  ;;  %v2047_v27 = vunpack.c.l.s8.bf16 %v1923_v34 }
 0xacb   :  { %v1849_v7 = vadd.f32 %v4706_v35, %v1739_v25  ;;  %v4199_v35 = vld [vmem:[#allocation12 + $0x44] ss:$16 sps:$4 sm:$0xff]   ;;  %v1722_v25 = vld [vmem:[#allocation6 + $0x62] ss:$0 sm:$0xff] }
 0xacc   :  { %2108 = vmatpush1.bf16.msra.mxu0 %v2008_v28  ;;  %2190 = vmatpush1.bf16.msra.mxu1 %v2010_v29  ;;  %v1920_v28 = vld [vmem:[#allocation11 + $0x5e0] sm:$0xff]  ;;  %v1922_v29 = vld [vmem:[#allocation11 + $0x5f0] sm:$0xff] }
 0xacd   :  { %2109 = vmatprep.subr.bf16.mxu0 %v2013_v31  ;;  %2191 = vmatprep.subr.bf16.mxu1 %v2015_v32  ;;  %v2044_v31 = vunpack.c.l.s8.bf16 %v1920_v28  ;;  %v2046_v32 = vunpack.c.l.s8.bf16 %v1922_v29  ;;  %v2050_v30 = vunpack.c.h.s8.bf16 %v1922_v29 }
 0xad0   :  { %2110 = vmatpush1.bf16.msra.mxu0 %v2012_v36  ;;  %2192 = vmatpush1.bf16.msra.mxu1 %v2014_v37  ;;  %v2051_v36 = vunpack.c.h.s8.bf16 %v1923_v34  ;;  %v2048_v37 = vunpack.c.h.s8.bf16 %v1920_v28  ;;  %v2405_v34 = vld [vmem:[#allocation8 + $0x30] sm:$0xff] }
 0xad1   :  { %2111 = vmatprep.subr.bf16.mxu0 %v2017_v38  ;;  %2193 = vmatprep.subr.bf16.mxu1 %v2019_v39  ;;  %v1857_v38 = vmax.f32 %v1849_v7, 0.0 }
 0xad3   :  { %v2054_v39 = vpack.c.bf16 %v1857_v38, %v1857_v38 }
 0xad4   :  { %2112 = vmatpush1.bf16.msra.mxu0 %v2016_v42  ;;  %2194 = vmatpush1.bf16.msra.mxu1 %v2018_v63  ;;  %v1721_v42 = vld [vmem:[#allocation6 + $0x42] ss:$8 sm:$0xf] }
 0xad5   :  { %2113 = vmatprep.subr.bf16.mxu0 %v2021_v44  ;;  %2195 = vmatprep.subr.bf16.mxu1 %v2023_v45  ;;  %v1719_v63 = vld [vmem:[#allocation6 + $0x22] ss:$8 sm:$0xf]  ;;  %v2224_v44 = vrot.slane %v1721_v42, %v4591_v62  ;;  %v2228_v45 = vrot.slane %v1721_v42, %v4596_v2  ;;  %v2236_v46 = vrot.slane %v1721_v42, %v4599_v3 }
 0xad6   :  { %v2249_v47 = vrot.slane %v1719_v63, %v4591_v62  ;;  %v2232_v10 = vrot.slane %v1721_v42, %v4610_v48  ;;  %v2490_v42 = vld [vmem:[#allocation9 + $0x30] sm:$0xff] }
 0xad8   :  { %2114 = vmatpush1.bf16.msra.mxu0 %v2020_v49  ;;  %2196 = vmatpush1.bf16.msra.mxu1 %v2022_v50 }
 0xad9   :  { %2115 = vmatprep.subr.bf16.mxu0 %v2025_v51  ;;  %2197 = vmatprep.subr.bf16.mxu1 %v2027_v52  ;;  %v2253_v51 = vrot.slane %v1719_v63, %v4596_v2  ;;  %v2261_v52 = vrot.slane %v1719_v63, %v4599_v3 }
 0xadc   :  { %2116 = vmatpush1.bf16.msra.mxu0 %v2024_v55  ;;  %2198 = vmatpush1.bf16.msra.mxu1 %v2026_v56 }
 0xadd   :  { %2117 = vmatprep.subr.bf16.mxu0 %v2029_v57  ;;  %2199 = vmatprep.subr.bf16.mxu1 %v2031_v58 }
 0xae0   :  { %2118 = vmatpush1.bf16.msra.mxu0 %v2028_v60  ;;  %2200 = vmatpush1.bf16.msra.mxu1 %v2030_v4 }
 0xae1   :  { %2119 = vmatprep.subr.bf16.mxu0 %v2033_v5  ;;  %2201 = vmatprep.subr.bf16.mxu1 %v2035_v6 }
 0xae4   :  { %2120 = vmatpush1.bf16.msra.mxu0 %v2032_v8  ;;  %2202 = vmatpush1.bf16.msra.mxu1 %v2034_v11 }
 0xae5   :  { %2121 = vmatprep.subr.bf16.mxu0 %v2037_v12  ;;  %2203 = vmatprep.subr.bf16.mxu1 %v2039_v14  ;;  %v4200_v14 = vld [vmem:[#allocation12 + $0x48] ss:$16 sps:$4 sm:$0xff]  }
 0xae8   :  { %2122 = vmatpush1.bf16.msra.mxu0 %v2036_v18  ;;  %2204 = vmatpush1.bf16.msra.mxu1 %v2038_v19  ;;  %v2257_v18 = vrot.slane %v1719_v63, %v4610_v48  ;;  %v2491_v63 = vld [vmem:[#allocation9 + $0x38] sm:$0xff] }
 0xae9   :  { %2123 = vmatprep.subr.bf16.mxu0 %v2041_v20  ;;  %2205 = vmatprep.subr.bf16.mxu1 %v2043_v21 }
 0xaec   :  { %2124 = vmatpush1.bf16.msra.mxu0 %v2040_v24  ;;  %2206 = vmatpush1.bf16.msra.mxu1 %v2042_v23  ;;  %v2406_v24 = vld [vmem:[#allocation8 + $0x38] sm:$0xff] }
 0xaed   :  { %2125 = vmatprep.subr.bf16.mxu0 %v2045_v26  ;;  %2207 = vmatprep.subr.bf16.mxu1 %v2047_v27  ;;  %v4086_v23 = vpack.c.bf16 %v2406_v24, %v2405_v34 }
 0xaf0   :  { %2126 = vmatpush1.bf16.msra.mxu0 %v2044_v31  ;;  %2208 = vmatpush1.bf16.msra.mxu1 %v2046_v32 }
 0xaf1   :  { %2127 = vmatprep.subr.bf16.mxu0 %v2049_v33  ;;  %2209 = vmatprep.subr.bf16.mxu1 %v2051_v36 }
 0xaf4   :  { %2128 = vmatpush1.bf16.msra.mxu0 %v2048_v37  ;;  %2210 = vmatpush1.bf16.msra.mxu1 %v2050_v30 }
 0xaf5   :  { %4085 = vmatprep.subr.bf16.mxu1 %v4429_v0  ;;  %2303 = vmatprep.subr.bf16.mxu0 %v4199_v35 }
 0xaf7   :  { %2130 = vmatmul.mubr.bf16.vlgmr.msra.gmra.mrb[28].mxu0 %v2054_v39  ;;  %2212 = vmatmul.mubr.bf16.vlgmr.msra.gmra.mrb[28].mxu1 %v2054_v39 }
 0xaf8   :  { %4066 = vmatprep.mubr.msk.f32.mxu1 %vm4430_vm0, %v4431_v1  ;;  %4087 = vmatpush3.bf16.msra.mxu1 %v4086_v23  ;;  %v2634_v23 = vld [vmem:[#allocation11 + $0x648] sm:$0xff] }
 0xafd   :  { %2304 = vmatpush1.bf16.xpose.msra.mxu0 %v4197_v40 }
 0xafe   :  { %2343 = vmatprep.subr.bf16.mxu0 %v4202_v41 }
 0xbca   :  { %v2131_v49 = vpop.f32.mrb[28].mxu0  ;;  %v2213_v50 = vpop.f32.mrb[28].mxu1 }
 0xbcb   :  { %v2241_v53 = vmul.f32 %v2224_v44, %v2131_v49  ;;  %v2133_v54 = vpop.f32.mrb[29].mxu0  ;;  %v2215_v55 = vpop.f32.mrb[29].mxu1  ;;  %v2243_v17 = vmul.f32 %v2232_v10, %v2213_v50  ;;  %v4002_v44 = vcombine.high %v2490_v42, %v2490_v42  ;;  %v2403_v49 = vld [vmem:[#allocation6 + $0x6b] ss:$0 sm:$0xff] }
 0xbcc   :  { %v2242_v56 = vmul.f32 %v2228_v45, %v2133_v54  ;;  %v2244_v57 = vmul.f32 %v2236_v46, %v2215_v55  ;;  %v2135_v58 = vpop.f32.mrb[30].mxu0  ;;  %v2217_v61 = vpop.f32.mrb[30].mxu1  ;;  %v4004_v45 = vcombine.high %v2491_v63, %v2491_v63  ;;  %v4003_v54 = vcombine.low %v2491_v63, %v2491_v63  ;;  %v2639_v63 = vld [vmem:[#allocation11 + $0x670] sm:$0xff] }
 0xbcd   :  { %v2266_v59 = vadd.f32 %v2249_v47, %v2241_v53  ;;  %v2136_v60 = vpop.f32.mrb[31].mxu0  ;;  %v2218_v4 = vpop.f32.mrb[31].mxu1  ;;  %v2268_v20 = vadd.f32 %v2257_v18, %v2243_v17  ;;  %4005 = vmatprep.subr.msk.bf16.mxu1 %vm232_vm1, %v4002_v44  ;;  %v4001_v47 = vcombine.low %v2490_v42, %v2490_v42  ;;  %v2637_v42 = vld [vmem:[#allocation11 + $0x660] sm:$0xff] }
 0xbce   :  { %v2267_v5 = vadd.f32 %v2253_v51, %v2242_v56  ;;  %v2269_v6 = vadd.f32 %v2261_v52, %v2244_v57  ;;  %v2533_v55 = vsel %vm232_vm1, %v4003_v54, 0  ;;  %v2626_v56 = vld [vmem:[#allocation11 + $0x608] sm:$0xff]  ;;  %v2628_v57 = vld [vmem:[#allocation11 + $0x618] sm:$0xff]  ;;  %v2713_v44 = vunpack.c.l.s8.bf16 %v2637_v42 }
 0xbcf   :  { %v2270_v9 = vmax.f32 %v2266_v59, 0.0  ;;  %v2272_v21 = vmax.f32 %v2268_v20, 0.0  ;;  %v2527_v53 = vsel %vm232_vm1, %v4001_v47, 0  ;;  %v2690_v58 = vunpack.c.l.s8.bf16 %v2626_v56  ;;  %v2625_v59 = vld [vmem:[#allocation11 + $0x600] sm:$0xff]  ;;  %v2631_v20 = vld [vmem:[#allocation11 + $0x630] sm:$0xff] }
 0xbd0   :  { %v2271_v8 = vmax.f32 %v2267_v5, 0.0  ;;  %v2273_v11 = vmax.f32 %v2269_v6, 0.0  ;;  %v2692_v61 = vunpack.c.l.s8.bf16 %v2628_v57  ;;  %v2689_v4 = vunpack.c.l.s8.bf16 %v2625_v59 }
 0xbd1   :  { %v2274_v15 = vpack.c.bf16 %v2270_v9, %v2270_v9  ;;  %v2276_v22 = vpack.c.bf16 %v2272_v21, %v2272_v21  ;;  %v2694_v10 = vunpack.c.h.s8.bf16 %v2626_v56  ;;  %v2643_v56 = vld [vmem:[#allocation11 + $0x690] sm:$0xff] }
 0xbd2   :  { %v2275_v12 = vpack.c.bf16 %v2271_v8, %v2271_v8  ;;  %v2277_v19 = vpack.c.bf16 %v2273_v11, %v2273_v11  ;;  %v2696_v8 = vunpack.c.h.s8.bf16 %v2628_v57  ;;  %v2630_v11 = vld [vmem:[#allocation11 + $0x628] sm:$0xff] }
 0xbd3   :  { %v2698_v17 = vunpack.c.l.s8.bf16 %v2630_v11  ;;  %v2702_v34 = vunpack.c.h.s8.bf16 %v2630_v11  ;;  %v2647_v11 = vld [vmem:[#allocation11 + $0x6b0] sm:$0xff] }
 0xbd4   :  { %2335 = vmatprep.mubr.bf16.mxu0 %v2275_v12  ;;  %v2632_v12 = vld [vmem:[#allocation11 + $0x638] sm:$0xff] }
 0xbd5   :  { %2336 = vmatmul.mubr.bf16.vlgmr.msra.gmra.mrb[32].mxu0 %v2274_v15  ;;  %v2700_v18 = vunpack.c.l.s8.bf16 %v2632_v12  ;;  %v2704_v24 = vunpack.c.h.s8.bf16 %v2632_v12 }
 0xbd6   :  { %2344 = vmatpush1.bf16.xpose.msra.mxu0 %v4200_v14  ;;  %2375 = vmatprep.mubr.bf16.mxu0 %v2277_v19  ;;  %v2693_v14 = vunpack.c.h.s8.bf16 %v2625_v59  ;;  %v2629_v19 = vld [vmem:[#allocation11 + $0x620] sm:$0xff] }
 0xbd7   :  { %4007 = vmatprep.subr.msk.bf16.mxu0 %vm232_vm1, %v4004_v45  ;;  %v2697_v21 = vunpack.c.l.s8.bf16 %v2629_v19  ;;  %v2715_v45 = vunpack.c.l.s8.bf16 %v2639_v63 }
 0xbe1   :  { %2376 = vmatmul.mubr.bf16.vlgmr.msra.gmra.mrb[32].mxu0 %v2276_v22  ;;  %v2699_v22 = vunpack.c.l.s8.bf16 %v2631_v20 }
 0xbe2   :  { %2611 = vmatprep.mubr.bf16.mxu0 %v4432_v16  ;;  %2580 = vmatpush1.bf16.msra.mxu0 %v2533_v55  ;;  %v2641_v55 = vld [vmem:[#allocation11 + $0x680] sm:$0xff] }
 0xbe3   :  { %2903 = vmatprep.subr.bf16.mxu0 %v2692_v61  ;;  %v2721_v57 = vunpack.c.l.s8.bf16 %v2641_v55 }
 0xcb4   :  { %v2377_v26 = vpop.f32.mrb[32].mxu0 }
 0xcb5   :  { %v4093_v27 = vadd.f32 %v2377_v26, %v1722_v25  ;;  %v2379_v28 = vpop.f32.mrb[33].mxu0  ;;  %v2636_v25 = vld [vmem:[#allocation11 + $0x658] sm:$0xff]  ;;  %v2701_v26 = vunpack.c.h.s8.bf16 %v2629_v19 }
 0xcb6   :  { %v2380_v29 = vpop.f32.mrb[34].mxu0  ;;  %v2706_v28 = vunpack.c.l.s8.bf16 %v2634_v23  ;;  %v2652_v19 = vld [vmem:[#allocation11 + $0x6d8] sm:$0xff] }
 0xcb7   :  { %v2383_v31 = vadd.f32 2.0, %v4093_v27  ;;  %v2381_v32 = vpop.f32.mrb[35].mxu0  ;;  %v2392_v7 = vadd.f32 %v4093_v27, %v4692_v43  ;;  %v2703_v27 = vunpack.c.h.s8.bf16 %v2631_v20  ;;  %v2708_v29 = vunpack.c.l.s8.bf16 %v2636_v25 }
 0xcb8   :  { %v2635_v32 = vld [vmem:[#allocation11 + $0x650] sm:$0xff] }
 0xcb9   :  { %v2384_v33 = vsub.f32 0.0, %v2383_v31  ;;  %v2633_v31 = vld [vmem:[#allocation11 + $0x640] sm:$0xff] }
 0xcbb   :  { %v2385_v36 = vmul.f32 1.442695, %v2384_v33  ;;  %v2707_v33 = vunpack.c.l.s8.bf16 %v2635_v32 }
 0xcbd   :  { %4233 = vpow2.f32 %v2385_v36  ;;  %v2710_v36 = vunpack.c.h.s8.bf16 %v2634_v23  ;;  %v2651_v23 = vld [vmem:[#allocation11 + $0x6d0] sm:$0xff] }
 0xcc7   :  { %v4234_v37 = vpop.eup %4233 }
 0xcc8   :  { %v2387_v30 = vadd.f32 1.0, %v4234_v37  ;;  %v2712_v37 = vunpack.c.h.s8.bf16 %v2636_v25 }
 0xcca   :  { %4235 = vrcp.f32 %v2387_v30 }
 0xccb   :  { %4237 = vlog2.f32 %v2387_v30  ;;  %v2638_v30 = vld [vmem:[#allocation11 + $0x668] sm:$0xff] }
 0xcd4   :  { %v4236_v38 = vpop.eup %4235 }
 0xcd5   :  { %v4238_v39 = vpop.eup %4237  ;;  %2394 = vrot.lane.b32.xlu1 %v4236_v38, %s4424_s9  ;;  %v2640_v38 = vld [vmem:[#allocation11 + $0x678] sm:$0xff] }
 0xcd6   :  { %v2390_v35 = vmul.f32 0.6931472, %v4238_v39  ;;  %v2709_v39 = vunpack.c.h.s8.bf16 %v2633_v31  ;;  %v2720_v47 = vunpack.c.h.s8.bf16 %v2640_v38 }
 0xcd8   :  { %v2391_v40 = vsub.f32 0.0, %v2390_v35  ;;  %v2711_v35 = vunpack.c.h.s8.bf16 %v2635_v32  ;;  %v2654_v32 = vld [vmem:[#allocation11 + $0x6e8] sm:$0xff] }
 0xcda   :  { %v2399_v41 = vsel %vm228_vm3, %v2391_v40, 0.0  ;;  %v2714_v40 = vunpack.c.l.s8.bf16 %v2638_v30 }
 0xcdb   :  { %2400 = vadd.xlane.f32.xlu0 %v2399_v41  ;;  %v2716_v41 = vunpack.c.l.s8.bf16 %v2640_v38 }
 0xd47   :  { %v2395_v46 = vpop.permute.xlu1 %2394 }
 0xd48   :  { %v2397_v50 = vmul.f32 %v2395_v46, %v2392_v7  ;;  %v2705_v7 = vunpack.c.l.s8.bf16 %v2633_v31  ;;  %v2718_v46 = vunpack.c.h.s8.bf16 %v2638_v30  ;;  %v2743_v31 = vunpack.c.h.s8.bf16 %v2651_v23  ;;  %v2655_v30 = vld [vmem:[#allocation11 + $0x6f0] sm:$0xff] }
 0xd4a   :  { %v2398_v51 = vsel %vm228_vm3, %v4692_v43, %v2397_v50  ;;  %v2627_v43 = vld [vmem:[#allocation11 + $0x610] sm:$0xff]  ;;  %v2644_v50 = vld [vmem:[#allocation11 + $0x698] sm:$0xff] }
 0xd4b   :  { %v2407_v52 = vadd.f32 %v2403_v49, %v2398_v51  ;;  %v2691_v5 = vunpack.c.l.s8.bf16 %v2627_v43  ;;  %v2695_v15 = vunpack.c.h.s8.bf16 %v2627_v43  ;;  %v2642_v49 = vld [vmem:[#allocation11 + $0x688] sm:$0xff]  ;;  %v2717_v51 = vunpack.c.h.s8.bf16 %v2637_v42 }
 0xd4c   :  { %v2724_v54 = vunpack.c.l.s8.bf16 %v2644_v50  ;;  %v2726_v61 = vunpack.c.h.s8.bf16 %v2642_v49  ;;  %v2728_v59 = vunpack.c.h.s8.bf16 %v2644_v50  ;;  %v2646_v43 = vld [vmem:[#allocation11 + $0x6a8] sm:$0xff]  ;;  %v2751_v42 = vunpack.c.h.s8.bf16 %v2655_v30 }
 0xd4d   :  { %4067 = vmatmul.mubr.msk.f32.vlgmr.msra.gmra.mrb[2].mxu1 %vm114_vm2, %v2407_v52  ;;  %v2719_v52 = vunpack.c.h.s8.bf16 %v2639_v63  ;;  %v2658_v63 = vld [vmem:[#allocation11 + $0x708] sm:$0xff] }
 0xd4e   :  { %2539 = vmatpush1.bf16.msra.mxu1 %v2527_v53  ;;  %2570 = vmatprep.mubr.bf16.mxu1 %v4432_v16  ;;  %v2722_v53 = vunpack.c.l.s8.bf16 %v2642_v49 }
 0xd4f   :  { %2821 = vmatprep.subr.bf16.mxu1 %v2690_v58  ;;  %v2723_v58 = vunpack.c.l.s8.bf16 %v2643_v56 }
 0xe20   :  { %v4734_v60 = vpop.f32.mrb[2].mxu1 }
 0xe21   :  { %v2488_v6 = vpack.c.bf16 %v4734_v60, %v4734_v60  ;;  %v4068_v9 = vpop.f32.mrb[3].mxu1 }
 0xe22   :  { %v2730_v9 = vunpack.c.l.s8.bf16 %v2646_v43 }
 0xe23   :  { %4006 = vmatmul.mubr.msk.bf16.vlgmr.msra.gmra.mrb[32].mxu1 %vm228_vm3, %v2488_v6  ;;  %4008 = vmatmul.mubr.msk.bf16.vlgmr.msra.gmra.mrb[36].mxu0 %vm228_vm3, %v2488_v6  ;;  %v2727_v6 = vunpack.c.h.s8.bf16 %v2643_v56 }
 0xe24   :  { %2822 = vmatpush1.bf16.msra.mxu1 %v2689_v4  ;;  %2904 = vmatpush1.bf16.msra.mxu0 %v2691_v5  ;;  %v2648_v4 = vld [vmem:[#allocation11 + $0x6b8] sm:$0xff]  ;;  %v2725_v5 = vunpack.c.h.s8.bf16 %v2641_v55 }
 0xe25   :  { %2823 = vmatprep.subr.bf16.mxu1 %v2694_v10  ;;  %2905 = vmatprep.subr.bf16.mxu0 %v2696_v8  ;;  %v2732_v10 = vunpack.c.l.s8.bf16 %v2648_v4  ;;  %v2645_v8 = vld [vmem:[#allocation11 + $0x6a0] sm:$0xff] }
 0xe26   :  { %v2729_v12 = vunpack.c.l.s8.bf16 %v2645_v8  ;;  %v2733_v20 = vunpack.c.h.s8.bf16 %v2645_v8 }
 0xe28   :  { %2824 = vmatpush1.bf16.msra.mxu1 %v2693_v14  ;;  %2906 = vmatpush1.bf16.msra.mxu0 %v2695_v15  ;;  %v2731_v14 = vunpack.c.l.s8.bf16 %v2647_v11  ;;  %v2734_v15 = vunpack.c.h.s8.bf16 %v2646_v43 }
 0xe29   :  { %2825 = vmatprep.subr.bf16.mxu1 %v2698_v17  ;;  %2907 = vmatprep.subr.bf16.mxu0 %v2700_v18  ;;  %v2736_v17 = vunpack.c.h.s8.bf16 %v2648_v4  ;;  %v2650_v18 = vld [vmem:[#allocation11 + $0x6c8] sm:$0xff] }
 0xe2c   :  { %2826 = vmatpush1.bf16.msra.mxu1 %v2697_v21  ;;  %2908 = vmatpush1.bf16.msra.mxu0 %v2699_v22  ;;  %v2735_v21 = vunpack.c.h.s8.bf16 %v2647_v11  ;;  %v2738_v22 = vunpack.c.l.s8.bf16 %v2650_v18 }
 0xe2d   :  { %2827 = vmatprep.subr.bf16.mxu1 %v2702_v34  ;;  %2909 = vmatprep.subr.bf16.mxu0 %v2704_v24  ;;  %v2740_v34 = vunpack.c.l.s8.bf16 %v2652_v19  ;;  %v2649_v24 = vld [vmem:[#allocation11 + $0x6c0] sm:$0xff] }
 0xe2e   :  { %v2737_v25 = vunpack.c.l.s8.bf16 %v2649_v24 }
 0xe30   :  { %2828 = vmatpush1.bf16.msra.mxu1 %v2701_v26  ;;  %2910 = vmatpush1.bf16.msra.mxu0 %v2703_v27  ;;  %v2739_v26 = vunpack.c.l.s8.bf16 %v2651_v23  ;;  %v2742_v27 = vunpack.c.h.s8.bf16 %v2650_v18 }
 0xe31   :  { %2829 = vmatprep.subr.bf16.mxu1 %v2706_v28  ;;  %2911 = vmatprep.subr.bf16.mxu0 %v2708_v29  ;;  %v2744_v28 = vunpack.c.h.s8.bf16 %v2652_v19  ;;  %v2741_v29 = vunpack.c.h.s8.bf16 %v2649_v24  ;;  %v2662_v19 = vld [vmem:[#allocation11 + $0x728] sm:$0xff] }
 0xe32   :  { %v2762_v24 = vunpack.c.l.s8.bf16 %v2662_v19 }
 0xe34   :  { %2830 = vmatpush1.bf16.msra.mxu1 %v2705_v7  ;;  %2912 = vmatpush1.bf16.msra.mxu0 %v2707_v33  ;;  %v2656_v7 = vld [vmem:[#allocation11 + $0x6f8] sm:$0xff]  ;;  %v2746_v33 = vunpack.c.l.s8.bf16 %v2654_v32 }
 0xe35   :  { %2831 = vmatprep.subr.bf16.mxu1 %v2710_v36  ;;  %2913 = vmatprep.subr.bf16.mxu0 %v2712_v37  ;;  %v2748_v36 = vunpack.c.l.s8.bf16 %v2656_v7  ;;  %v2653_v37 = vld [vmem:[#allocation11 + $0x6e0] sm:$0xff] }
 0xe36   :  { %v2745_v38 = vunpack.c.l.s8.bf16 %v2653_v37 }
 0xe38   :  { %2832 = vmatpush1.bf16.msra.mxu1 %v2709_v39  ;;  %2914 = vmatpush1.bf16.msra.mxu0 %v2711_v35  ;;  %v2747_v39 = vunpack.c.l.s8.bf16 %v2655_v30  ;;  %v2750_v35 = vunpack.c.h.s8.bf16 %v2654_v32  ;;  %v2666_v32 = vld [vmem:[#allocation11 + $0x748] sm:$0xff] }
 0xe39   :  { %2833 = vmatprep.subr.bf16.mxu1 %v2714_v40  ;;  %2915 = vmatprep.subr.bf16.mxu0 %v2716_v41  ;;  %v2752_v40 = vunpack.c.h.s8.bf16 %v2656_v7  ;;  %v2749_v41 = vunpack.c.h.s8.bf16 %v2653_v37  ;;  %v2668_v7 = vld [vmem:[#allocation11 + $0x758] sm:$0xff]  ;;  %v2770_v37 = vunpack.c.l.s8.bf16 %v2666_v32 }
 0xe3a   :  { %v2772_v30 = vunpack.c.l.s8.bf16 %v2668_v7 }
 0xe3c   :  { %2834 = vmatpush1.bf16.msra.mxu1 %v2713_v44  ;;  %2916 = vmatpush1.bf16.msra.mxu0 %v2715_v45  ;;  %v2660_v44 = vld [vmem:[#allocation11 + $0x718] sm:$0xff]  ;;  %v2754_v45 = vunpack.c.l.s8.bf16 %v2658_v63 }
 0xe3d   :  { %2835 = vmatprep.subr.bf16.mxu1 %v2718_v46  ;;  %2917 = vmatprep.subr.bf16.mxu0 %v2720_v47  ;;  %v2756_v46 = vunpack.c.l.s8.bf16 %v2660_v44  ;;  %v4740_v47 = vld [vmem:[#allocation6 + $0x3] ss:$8 sm:$0xf]  ;;  %v2760_v18 = vunpack.c.h.s8.bf16 %v2660_v44 }
 0xe3e   :  { %v2496_v49 = vrot.slane %v4740_v47, %v4591_v62  ;;  %v2500_v50 = vrot.slane %v4740_v47, %v4596_v2  ;;  %v2672_v44 = vld [vmem:[#allocation11 + $0x778] sm:$0xff] }
 0xe40   :  { %2836 = vmatpush1.bf16.msra.mxu1 %v2717_v51  ;;  %2918 = vmatpush1.bf16.msra.mxu0 %v2719_v52  ;;  %v2508_v51 = vrot.slane %v4740_v47, %v4599_v3 }
 0xe41   :  { %2837 = vmatprep.subr.bf16.mxu1 %v2722_v53  ;;  %2919 = vmatprep.subr.bf16.mxu0 %v2724_v54 }
 0xe44   :  { %2838 = vmatpush1.bf16.msra.mxu1 %v2721_v57  ;;  %2920 = vmatpush1.bf16.msra.mxu0 %v2723_v58 }
 0xe45   :  { %2839 = vmatprep.subr.bf16.mxu1 %v2726_v61  ;;  %2921 = vmatprep.subr.bf16.mxu0 %v2728_v59 }
 0xe48   :  { %2840 = vmatpush1.bf16.msra.mxu1 %v2725_v5  ;;  %2922 = vmatpush1.bf16.msra.mxu0 %v2727_v6  ;;  %v2657_v6 = vld [vmem:[#allocation11 + $0x700] sm:$0xff] }
 0xe49   :  { %2841 = vmatprep.subr.bf16.mxu1 %v2730_v9  ;;  %2923 = vmatprep.subr.bf16.mxu0 %v2732_v10  ;;  %v2659_v9 = vld [vmem:[#allocation11 + $0x710] sm:$0xff] }
 0xe4c   :  { %2842 = vmatpush1.bf16.msra.mxu1 %v2729_v12  ;;  %2924 = vmatpush1.bf16.msra.mxu0 %v2731_v14  ;;  %v2753_v12 = vunpack.c.l.s8.bf16 %v2657_v6  ;;  %v2755_v14 = vunpack.c.l.s8.bf16 %v2659_v9 }
 0xe4d   :  { %2843 = vmatprep.subr.bf16.mxu1 %v2734_v15  ;;  %2925 = vmatprep.subr.bf16.mxu0 %v2736_v17  ;;  %v2758_v17 = vunpack.c.h.s8.bf16 %v2658_v63  ;;  %v2670_v63 = vld [vmem:[#allocation11 + $0x768] sm:$0xff] }
 0xe50   :  { %2844 = vmatpush1.bf16.msra.mxu1 %v2733_v20  ;;  %2926 = vmatpush1.bf16.msra.mxu0 %v2735_v21  ;;  %v2664_v20 = vld [vmem:[#allocation11 + $0x738] sm:$0xff] }
 0xe51   :  { %2845 = vmatprep.subr.bf16.mxu1 %v2738_v22  ;;  %2927 = vmatprep.subr.bf16.mxu0 %v2740_v34  ;;  %v2757_v22 = vunpack.c.h.s8.bf16 %v2657_v6  ;;  %v2759_v34 = vunpack.c.h.s8.bf16 %v2659_v9  ;;  %v2764_v23 = vunpack.c.l.s8.bf16 %v2664_v20  ;;  %v2673_v6 = vld [vmem:[#allocation11 + $0x780] sm:$0xff]  ;;  %v2675_v9 = vld [vmem:[#allocation11 + $0x790] sm:$0xff] }
 0xe54   :  { %2846 = vmatpush1.bf16.msra.mxu1 %v2737_v25  ;;  %2928 = vmatpush1.bf16.msra.mxu0 %v2739_v26  ;;  %v2661_v25 = vld [vmem:[#allocation11 + $0x720] sm:$0xff]  ;;  %v2663_v26 = vld [vmem:[#allocation11 + $0x730] sm:$0xff] }
 0xe55   :  { %2847 = vmatprep.subr.bf16.mxu1 %v2742_v27  ;;  %2929 = vmatprep.subr.bf16.mxu0 %v2744_v28  ;;  %v2761_v27 = vunpack.c.l.s8.bf16 %v2661_v25  ;;  %v2763_v28 = vunpack.c.l.s8.bf16 %v2663_v26 }
 0xe58   :  { %2848 = vmatpush1.bf16.msra.mxu1 %v2741_v29  ;;  %2930 = vmatpush1.bf16.msra.mxu0 %v2743_v31  ;;  %v2766_v29 = vunpack.c.h.s8.bf16 %v2662_v19  ;;  %v2768_v31 = vunpack.c.h.s8.bf16 %v2664_v20 }
 0xe59   :  { %2849 = vmatprep.subr.bf16.mxu1 %v2746_v33  ;;  %2931 = vmatprep.subr.bf16.mxu0 %v2748_v36  ;;  %v2765_v33 = vunpack.c.h.s8.bf16 %v2661_v25  ;;  %v2767_v36 = vunpack.c.h.s8.bf16 %v2663_v26  ;;  %v2682_v26 = vld [vmem:[#allocation11 + $0x7c8] sm:$0xff] }
 0xe5c   :  { %2850 = vmatpush1.bf16.msra.mxu1 %v2745_v38  ;;  %2932 = vmatpush1.bf16.msra.mxu0 %v2747_v39  ;;  %v2665_v38 = vld [vmem:[#allocation11 + $0x740] sm:$0xff]  ;;  %v2667_v39 = vld [vmem:[#allocation11 + $0x750] sm:$0xff] }
 0xe5d   :  { %2851 = vmatprep.subr.bf16.mxu1 %v2750_v35  ;;  %2933 = vmatprep.subr.bf16.mxu0 %v2752_v40  ;;  %v2769_v35 = vunpack.c.l.s8.bf16 %v2665_v38  ;;  %v2771_v40 = vunpack.c.l.s8.bf16 %v2667_v39 }
 0xe60   :  { %2852 = vmatpush1.bf16.msra.mxu1 %v2749_v41  ;;  %2934 = vmatpush1.bf16.msra.mxu0 %v2751_v42  ;;  %v2774_v41 = vunpack.c.h.s8.bf16 %v2666_v32  ;;  %v2776_v42 = vunpack.c.h.s8.bf16 %v2668_v7  ;;  %v2681_v7 = vld [vmem:[#allocation11 + $0x7c0] sm:$0xff] }
 0xe61   :  { %2862 = vmatprep.subr.bf16.mxu1 %v2754_v45  ;;  %2944 = vmatprep.subr.bf16.mxu0 %v2756_v46  ;;  %v2773_v45 = vunpack.c.h.s8.bf16 %v2665_v38  ;;  %v2775_v46 = vunpack.c.h.s8.bf16 %v2667_v39  ;;  %v2686_v39 = vld [vmem:[#allocation11 + $0x7e8] sm:$0xff] }
 0xef6   :  { %v2572_v52 = vpop.f32.mrb[32].mxu1  ;;  %v4748_v53 = vpop.f32.mrb[36].mxu0 }
 0xef7   :  { %v2573_v54 = vadd.f32 %v2572_v52, %v2496_v49  ;;  %v2574_v55 = vpop.f32.mrb[33].mxu1  ;;  %v2615_v56 = vpop.f32.mrb[37].mxu0  ;;  %v2778_v49 = vunpack.c.l.s8.bf16 %v2670_v63  ;;  %v2671_v52 = vld [vmem:[#allocation11 + $0x770] sm:$0xff] }
 0xef8   :  { %v2575_v57 = vadd.f32 %v2574_v55, %v2500_v50  ;;  %v2616_v58 = vadd.f32 %v2615_v56, %v2508_v51  ;;  %v2576_v61 = vpop.f32.mrb[34].mxu1  ;;  %v2617_v59 = vpop.f32.mrb[38].mxu0  ;;  %v2780_v50 = vunpack.c.l.s8.bf16 %v2672_v44  ;;  %v2669_v51 = vld [vmem:[#allocation11 + $0x760] sm:$0xff]  ;;  %v2779_v55 = vunpack.c.l.s8.bf16 %v2671_v52 }
 0xef9   :  { %v2620_v43 = vmax.f32 %v2573_v54, 0.0  ;;  %v2577_v4 = vpop.f32.mrb[35].mxu1  ;;  %v2618_v5 = vpop.f32.mrb[39].mxu0  ;;  %v2777_v54 = vunpack.c.l.s8.bf16 %v2669_v51  ;;  %v2782_v56 = vunpack.c.h.s8.bf16 %v2670_v63  ;;  %v2676_v61 = vld [vmem:[#allocation11 + $0x798] sm:$0xff]  ;;  %v2781_v59 = vunpack.c.h.s8.bf16 %v2669_v51 }
 0xefa   :  { %v2621_v10 = vmax.f32 %v2575_v57, 0.0  ;;  %v2623_v8 = vmax.f32 %v2616_v58, 0.0  ;;  %v2784_v57 = vunpack.c.h.s8.bf16 %v2672_v44  ;;  %v2674_v58 = vld [vmem:[#allocation11 + $0x788] sm:$0xff]  ;;  %v2788_v5 = vunpack.c.l.s8.bf16 %v2676_v61 }
 0xefb   :  { %v2817_v15 = vpack.c.bf16 %v2620_v43, %v2620_v43  ;;  %v2783_v43 = vunpack.c.h.s8.bf16 %v2671_v52  ;;  %v2786_v4 = vunpack.c.l.s8.bf16 %v2674_v58  ;;  %v2810_v63 = vunpack.c.l.s8.bf16 %v2686_v39 }
 0xefc   :  { %v2818_v11 = vpack.c.bf16 %v2621_v10, %v2621_v10  ;;  %v2820_v21 = vpack.c.bf16 %v2623_v8, %v2623_v8  ;;  %v2785_v10 = vunpack.c.l.s8.bf16 %v2673_v6  ;;  %v2787_v8 = vunpack.c.l.s8.bf16 %v2675_v9 }
 0xefd   :  { %v2814_v52 = vunpack.c.h.s8.bf16 %v2686_v39  ;;  %v3171_v39 = vld [vmem:[#allocation8 + $0x48] sm:$0xff] }
 0xefe   :  { %2853 = vmatprep.mubr.bf16.mxu1 %v2818_v11  ;;  %2935 = vmatprep.mubr.bf16.mxu0 %v2818_v11  ;;  %v2790_v11 = vunpack.c.h.s8.bf16 %v2674_v58  ;;  %v4207_v58 = vld [vmem:[#allocation12 + $0x60] ss:$16 sps:$4 sm:$0xff]  }
 0xeff   :  { %2854 = vmatmul.mubr.bf16.vlgmr.msra.gmra.mrb[36].mxu1 %v2817_v15  ;;  %2936 = vmatmul.mubr.bf16.vlgmr.msra.gmra.mrb[40].mxu0 %v2817_v15  ;;  %v2680_v15 = vld [vmem:[#allocation11 + $0x7b8] sm:$0xff] }
 0xf00   :  { %2863 = vmatpush1.bf16.msra.mxu1 %v2753_v12  ;;  %2945 = vmatpush1.bf16.msra.mxu0 %v2755_v14  ;;  %v2792_v12 = vunpack.c.h.s8.bf16 %v2676_v61  ;;  %v2678_v14 = vld [vmem:[#allocation11 + $0x7a8] sm:$0xff]  ;;  %v2796_v20 = vunpack.c.l.s8.bf16 %v2680_v15  ;;  %v2800_v25 = vunpack.c.h.s8.bf16 %v2680_v15 }
 0xf01   :  { %2894 = vmatprep.mubr.bf16.mxu1 %v2820_v21  ;;  %2976 = vmatprep.mubr.bf16.mxu0 %v2820_v21  ;;  %v2794_v19 = vunpack.c.l.s8.bf16 %v2678_v14  ;;  %v2677_v21 = vld [vmem:[#allocation11 + $0x7a0] sm:$0xff]  ;;  %v4212_v61 = vld [vmem:[#allocation12 + $0x6c] ss:$16 sps:$4 sm:$0xff]  }
 0xf02   :  { %2864 = vmatprep.subr.bf16.mxu1 %v2758_v17  ;;  %2946 = vmatprep.subr.bf16.mxu0 %v2760_v18  ;;  %v2789_v17 = vunpack.c.h.s8.bf16 %v2673_v6  ;;  %v2791_v18 = vunpack.c.h.s8.bf16 %v2675_v9 }
 0xf04   :  { %2865 = vmatpush1.bf16.msra.mxu1 %v2757_v22  ;;  %2947 = vmatpush1.bf16.msra.mxu0 %v2759_v34  ;;  %v2679_v22 = vld [vmem:[#allocation11 + $0x7b0] sm:$0xff]  ;;  %v2793_v34 = vunpack.c.l.s8.bf16 %v2677_v21 }
 0xf05   :  { %2866 = vmatprep.subr.bf16.mxu1 %v2762_v24  ;;  %2948 = vmatprep.subr.bf16.mxu0 %v2764_v23  ;;  %v2795_v24 = vunpack.c.l.s8.bf16 %v2679_v22  ;;  %v2798_v23 = vunpack.c.h.s8.bf16 %v2678_v14 }
 0xf08   :  { %2867 = vmatpush1.bf16.msra.mxu1 %v2761_v27  ;;  %2949 = vmatpush1.bf16.msra.mxu0 %v2763_v28  ;;  %v2684_v27 = vld [vmem:[#allocation11 + $0x7d8] sm:$0xff]  ;;  %v2797_v28 = vunpack.c.h.s8.bf16 %v2677_v21 }
 0xf09   :  { %2868 = vmatprep.subr.bf16.mxu1 %v2766_v29  ;;  %2950 = vmatprep.subr.bf16.mxu0 %v2768_v31  ;;  %v2799_v29 = vunpack.c.h.s8.bf16 %v2679_v22  ;;  %v2802_v31 = vunpack.c.l.s8.bf16 %v2682_v26  ;;  %v2804_v32 = vunpack.c.l.s8.bf16 %v2684_v27  ;;  %v2808_v38 = vunpack.c.h.s8.bf16 %v2684_v27 }
 0xf0c   :  { %2869 = vmatpush1.bf16.msra.mxu1 %v2765_v33  ;;  %2951 = vmatpush1.bf16.msra.mxu0 %v2767_v36  ;;  %v2683_v33 = vld [vmem:[#allocation11 + $0x7d0] sm:$0xff]  ;;  %v2801_v36 = vunpack.c.l.s8.bf16 %v2681_v7 }
 0xf0d   :  { %2870 = vmatprep.subr.bf16.mxu1 %v2770_v37  ;;  %2952 = vmatprep.subr.bf16.mxu0 %v2772_v30  ;;  %v2803_v37 = vunpack.c.l.s8.bf16 %v2683_v33  ;;  %v2806_v30 = vunpack.c.h.s8.bf16 %v2682_v26 }
 0xf10   :  { %2871 = vmatpush1.bf16.msra.mxu1 %v2769_v35  ;;  %2953 = vmatpush1.bf16.msra.mxu0 %v2771_v40  ;;  %v2688_v35 = vld [vmem:[#allocation11 + $0x7f8] sm:$0xff]  ;;  %v2805_v40 = vunpack.c.h.s8.bf16 %v2681_v7 }
 0xf11   :  { %2872 = vmatprep.subr.bf16.mxu1 %v2774_v41  ;;  %2954 = vmatprep.subr.bf16.mxu0 %v2776_v42  ;;  %v2807_v41 = vunpack.c.h.s8.bf16 %v2683_v33  ;;  %v2504_v42 = vrot.slane %v4740_v47, %v4610_v48  ;;  %v2812_v44 = vunpack.c.l.s8.bf16 %v2688_v35 }
 0xf13   :  { %v2614_v51 = vadd.f32 %v4748_v53, %v2504_v42  ;;  %v4209_v53 = vld [vmem:[#allocation12 + $0x64] ss:$16 sps:$4 sm:$0xff]  }
 0xf14   :  { %2873 = vmatpush1.bf16.msra.mxu1 %v2773_v45  ;;  %2955 = vmatpush1.bf16.msra.mxu0 %v2775_v46  ;;  %v2685_v45 = vld [vmem:[#allocation11 + $0x7e0] sm:$0xff]  ;;  %v2687_v46 = vld [vmem:[#allocation11 + $0x7f0] sm:$0xff] }
 0xf15   :  { %2874 = vmatprep.subr.bf16.mxu1 %v2778_v49  ;;  %2956 = vmatprep.subr.bf16.mxu0 %v2780_v50  ;;  %v2809_v49 = vunpack.c.l.s8.bf16 %v2685_v45  ;;  %v2811_v50 = vunpack.c.l.s8.bf16 %v2687_v46  ;;  %v2815_v47 = vunpack.c.h.s8.bf16 %v2687_v46 }
 0xf18   :  { %2875 = vmatpush1.bf16.msra.mxu1 %v2777_v54  ;;  %2957 = vmatpush1.bf16.msra.mxu0 %v2779_v55  ;;  %v2816_v54 = vunpack.c.h.s8.bf16 %v2688_v35  ;;  %v2813_v55 = vunpack.c.h.s8.bf16 %v2685_v45 }
 0xf19   :  { %2876 = vmatprep.subr.bf16.mxu1 %v2782_v56  ;;  %2958 = vmatprep.subr.bf16.mxu0 %v2784_v57  ;;  %v2622_v56 = vmax.f32 %v2614_v51, 0.0 }
 0xf1b   :  { %v2819_v57 = vpack.c.bf16 %v2622_v56, %v2622_v56 }
 0xf1c   :  { %2877 = vmatpush1.bf16.msra.mxu1 %v2781_v59  ;;  %2959 = vmatpush1.bf16.msra.mxu0 %v2783_v43  ;;  %v2486_v59 = vld [vmem:[#allocation6 + $0x43] ss:$8 sm:$0xf] }
 0xf1d   :  { %2878 = vmatprep.subr.bf16.mxu1 %v2786_v4  ;;  %2960 = vmatprep.subr.bf16.mxu0 %v2788_v5  ;;  %v2484_v43 = vld [vmem:[#allocation6 + $0x23] ss:$8 sm:$0xf]  ;;  %v2989_v4 = vrot.slane %v2486_v59, %v4591_v62  ;;  %v2993_v5 = vrot.slane %v2486_v59, %v4596_v2  ;;  %v3001_v6 = vrot.slane %v2486_v59, %v4599_v3 }
 0xf1e   :  { %v3022_v7 = vrot.slane %v2484_v43, %v4610_v48 }
 0xf20   :  { %2879 = vmatpush1.bf16.msra.mxu1 %v2785_v10  ;;  %2961 = vmatpush1.bf16.msra.mxu0 %v2787_v8  ;;  %v3026_v8 = vrot.slane %v2484_v43, %v4599_v3 }
 0xf21   :  { %2880 = vmatprep.subr.bf16.mxu1 %v2790_v11  ;;  %2962 = vmatprep.subr.bf16.mxu0 %v2792_v12 }
 0xf24   :  { %2881 = vmatpush1.bf16.msra.mxu1 %v2789_v17  ;;  %2963 = vmatpush1.bf16.msra.mxu0 %v2791_v18 }
 0xf25   :  { %2882 = vmatprep.subr.bf16.mxu1 %v2794_v19  ;;  %2964 = vmatprep.subr.bf16.mxu0 %v2796_v20 }
 0xf28   :  { %2883 = vmatpush1.bf16.msra.mxu1 %v2793_v34  ;;  %2965 = vmatpush1.bf16.msra.mxu0 %v2795_v24 }
 0xf29   :  { %2884 = vmatprep.subr.bf16.mxu1 %v2798_v23  ;;  %2966 = vmatprep.subr.bf16.mxu0 %v2800_v25  ;;  %v2997_v25 = vrot.slane %v2486_v59, %v4610_v48 }
 0xf2c   :  { %2885 = vmatpush1.bf16.msra.mxu1 %v2797_v28  ;;  %2967 = vmatpush1.bf16.msra.mxu0 %v2799_v29  ;;  %v4210_v29 = vld [vmem:[#allocation12 + $0x68] ss:$16 sps:$4 sm:$0xff]  }
 0xf2d   :  { %2886 = vmatprep.subr.bf16.mxu1 %v2802_v31  ;;  %2968 = vmatprep.subr.bf16.mxu0 %v2804_v32 }
 0xf30   :  { %2887 = vmatpush1.bf16.msra.mxu1 %v2801_v36  ;;  %2969 = vmatpush1.bf16.msra.mxu0 %v2803_v37 }
 0xf31   :  { %2888 = vmatprep.subr.bf16.mxu1 %v2806_v30  ;;  %2970 = vmatprep.subr.bf16.mxu0 %v2808_v38  ;;  %v3170_v38 = vld [vmem:[#allocation8 + $0x40] sm:$0xff] }
 0xf32   :  { %v4089_v35 = vpack.c.bf16 %v3171_v39, %v3170_v38 }
 0xf34   :  { %2889 = vmatpush1.bf16.msra.mxu1 %v2805_v40  ;;  %2971 = vmatpush1.bf16.msra.mxu0 %v2807_v41  ;;  %v2487_v40 = vld [vmem:[#allocation6 + $0x63] ss:$0 sm:$0xff] }
 0xf35   :  { %2890 = vmatprep.subr.bf16.mxu1 %v2810_v63  ;;  %2972 = vmatprep.subr.bf16.mxu0 %v2812_v44 }
 0xf38   :  { %2891 = vmatpush1.bf16.msra.mxu1 %v2809_v49  ;;  %2973 = vmatpush1.bf16.msra.mxu0 %v2811_v50 }
 0xf39   :  { %2892 = vmatprep.subr.bf16.mxu1 %v2814_v52  ;;  %2974 = vmatprep.subr.bf16.mxu0 %v2816_v54 }
 0xf3c   :  { %2893 = vmatpush1.bf16.msra.mxu1 %v2813_v55  ;;  %2975 = vmatpush1.bf16.msra.mxu0 %v2815_v47 }
 0xf3d   :  { %4088 = vmatprep.subr.bf16.mxu0 %v4429_v0  ;;  %3068 = vmatprep.subr.bf16.mxu1 %v4209_v53  ;;  %v3014_v0 = vrot.slane %v2484_v43, %v4591_v62 }
 0xf3f   :  { %2895 = vmatmul.mubr.bf16.vlgmr.msra.gmra.mrb[36].mxu1 %v2819_v57  ;;  %2977 = vmatmul.mubr.bf16.vlgmr.msra.gmra.mrb[40].mxu0 %v2819_v57 }
 0xf40   :  { %4073 = vmatprep.mubr.msk.f32.mxu0 %vm4430_vm0, %v4431_v1  ;;  %v3018_v1 = vrot.slane %v2484_v43, %v4596_v2  ;;  %4090 = vmatpush3.bf16.msra.mxu0 %v4089_v35  ;;  %v3399_v35 = vld [vmem:[#allocation11 + $0x848] sm:$0xff] }
 0xf45   :  { %3069 = vmatpush1.bf16.xpose.msra.mxu1 %v4207_v58 }
 0xf46   :  { %3108 = vmatprep.subr.bf16.mxu1 %v4212_v61 }
0x1012   :  { %v2896_v9 = vpop.f32.mrb[36].mxu1  ;;  %v2978_v10 = vpop.f32.mrb[40].mxu0 }
0x1013   :  { %v3006_v11 = vmul.f32 %v2989_v4, %v2896_v9  ;;  %v2898_v12 = vpop.f32.mrb[37].mxu1  ;;  %v2980_v14 = vpop.f32.mrb[41].mxu0  ;;  %v3008_v32 = vmul.f32 %v2997_v25, %v2978_v10  ;;  %v3255_v4 = vld [vmem:[#allocation9 + $0x40] sm:$0xff] }
0x1014   :  { %v3007_v15 = vmul.f32 %v2993_v5, %v2898_v12  ;;  %v3009_v17 = vmul.f32 %v3001_v6, %v2980_v14  ;;  %v2900_v18 = vpop.f32.mrb[38].mxu1  ;;  %v2982_v19 = vpop.f32.mrb[42].mxu0  ;;  %v3256_v5 = vld [vmem:[#allocation9 + $0x48] sm:$0xff]  ;;  %v4015_v6 = vcombine.high %v3255_v4, %v3255_v4  ;;  %v4014_v10 = vcombine.low %v3255_v4, %v3255_v4 }
0x1015   :  { %v3031_v20 = vadd.f32 %v3014_v0, %v3006_v11  ;;  %v2901_v21 = vpop.f32.mrb[39].mxu1  ;;  %v2983_v22 = vpop.f32.mrb[43].mxu0  ;;  %v3033_v36 = vadd.f32 %v3022_v7, %v3008_v32  ;;  %v4017_v0 = vcombine.high %v3256_v5, %v3256_v5  ;;  %v4016_v14 = vcombine.low %v3256_v5, %v3256_v5  ;;  %v3393_v18 = vld [vmem:[#allocation11 + $0x818] sm:$0xff] }
0x1016   :  { %v3032_v34 = vadd.f32 %v3018_v1, %v3007_v15  ;;  %v3034_v24 = vadd.f32 %v3026_v8, %v3009_v17  ;;  %4018 = vmatprep.subr.msk.bf16.mxu0 %vm232_vm1, %v4015_v6  ;;  %v3168_v1 = vld [vmem:[#allocation6 + $0x6c] ss:$0 sm:$0xff]  ;;  %v3292_v12 = vsel %vm232_vm1, %v4014_v10, 0  ;;  %v3391_v17 = vld [vmem:[#allocation11 + $0x808] sm:$0xff]  ;;  %v3390_v21 = vld [vmem:[#allocation11 + $0x800] sm:$0xff] }
0x1017   :  { %v3035_v23 = vmax.f32 %v3031_v20, 0.0  ;;  %v3037_v37 = vmax.f32 %v3033_v36, 0.0  ;;  %v3298_v15 = vsel %vm232_vm1, %v4016_v14, 0  ;;  %v3455_v19 = vunpack.c.l.s8.bf16 %v3391_v17  ;;  %v3396_v36 = vld [vmem:[#allocation11 + $0x830] sm:$0xff]  ;;  %v3407_v6 = vld [vmem:[#allocation11 + $0x888] sm:$0xff] }
0x1018   :  { %v3036_v26 = vmax.f32 %v3032_v34, 0.0  ;;  %v3038_v27 = vmax.f32 %v3034_v24, 0.0  ;;  %v3457_v20 = vunpack.c.l.s8.bf16 %v3393_v18  ;;  %v3454_v34 = vunpack.c.l.s8.bf16 %v3390_v21 }
0x1019   :  { %v3039_v31 = vpack.c.bf16 %v3035_v23, %v3035_v23  ;;  %v3041_v30 = vpack.c.bf16 %v3037_v37, %v3037_v37  ;;  %v3459_v25 = vunpack.c.h.s8.bf16 %v3391_v17 }
0x101a   :  { %v3040_v28 = vpack.c.bf16 %v3036_v26, %v3036_v26  ;;  %v3042_v33 = vpack.c.bf16 %v3038_v27, %v3038_v27  ;;  %v3461_v26 = vunpack.c.h.s8.bf16 %v3393_v18  ;;  %v3395_v27 = vld [vmem:[#allocation11 + $0x828] sm:$0xff] }
0x101b   :  { %v3463_v32 = vunpack.c.l.s8.bf16 %v3395_v27  ;;  %v3467_v38 = vunpack.c.h.s8.bf16 %v3395_v27  ;;  %v3411_v18 = vld [vmem:[#allocation11 + $0x8a8] sm:$0xff] }
0x101c   :  { %3100 = vmatprep.mubr.bf16.mxu1 %v3040_v28  ;;  %v3397_v28 = vld [vmem:[#allocation11 + $0x838] sm:$0xff] }
0x101d   :  { %3101 = vmatmul.mubr.bf16.vlgmr.msra.gmra.mrb[40].mxu1 %v3039_v31  ;;  %v3465_v7 = vunpack.c.l.s8.bf16 %v3397_v28  ;;  %v3469_v39 = vunpack.c.h.s8.bf16 %v3397_v28  ;;  %v3415_v28 = vld [vmem:[#allocation11 + $0x8c8] sm:$0xff] }
0x101e   :  { %3109 = vmatpush1.bf16.xpose.msra.mxu1 %v4210_v29  ;;  %3140 = vmatprep.mubr.bf16.mxu1 %v3042_v33  ;;  %v3458_v29 = vunpack.c.h.s8.bf16 %v3390_v21  ;;  %v3394_v33 = vld [vmem:[#allocation11 + $0x820] sm:$0xff] }
0x101f   :  { %4020 = vmatprep.subr.msk.bf16.mxu1 %vm232_vm1, %v4017_v0  ;;  %v3462_v37 = vunpack.c.l.s8.bf16 %v3394_v33  ;;  %v3409_v0 = vld [vmem:[#allocation11 + $0x898] sm:$0xff] }
0x1020   :  { %v3493_v17 = vunpack.c.h.s8.bf16 %v3409_v0 }
0x1029   :  { %3141 = vmatmul.mubr.bf16.vlgmr.msra.gmra.mrb[40].mxu1 %v3041_v30  ;;  %v3464_v30 = vunpack.c.l.s8.bf16 %v3396_v36 }
0x102a   :  { %3376 = vmatprep.mubr.bf16.mxu1 %v4432_v16  ;;  %3345 = vmatpush1.bf16.msra.mxu1 %v3298_v15  ;;  %v3491_v15 = vunpack.c.h.s8.bf16 %v3407_v6 }
0x102b   :  { %3668 = vmatprep.subr.bf16.mxu1 %v3457_v20 }
0x10fc   :  { %v3142_v41 = vpop.f32.mrb[40].mxu1 }
0x10fd   :  { %v4094_v42 = vadd.f32 %v3142_v41, %v2487_v40  ;;  %v3144_v63 = vpop.f32.mrb[41].mxu1  ;;  %v3401_v40 = vld [vmem:[#allocation11 + $0x858] sm:$0xff]  ;;  %v3466_v41 = vunpack.c.h.s8.bf16 %v3394_v33 }
0x10fe   :  { %v3145_v44 = vpop.f32.mrb[42].mxu1  ;;  %v3471_v63 = vunpack.c.l.s8.bf16 %v3399_v35 }
0x10ff   :  { %v3148_v45 = vadd.f32 2.0, %v4094_v42  ;;  %v3146_v46 = vpop.f32.mrb[43].mxu1  ;;  %v3157_v49 = vadd.f32 %v4094_v42, %v4734_v60  ;;  %v3468_v42 = vunpack.c.h.s8.bf16 %v3396_v36  ;;  %v3473_v44 = vunpack.c.l.s8.bf16 %v3401_v40  ;;  %v3414_v36 = vld [vmem:[#allocation11 + $0x8c0] sm:$0xff] }
0x1100   :  { %v3400_v46 = vld [vmem:[#allocation11 + $0x850] sm:$0xff] }
0x1101   :  { %v3149_v50 = vsub.f32 0.0, %v3148_v45  ;;  %v3398_v45 = vld [vmem:[#allocation11 + $0x840] sm:$0xff] }
0x1103   :  { %v3150_v51 = vmul.f32 1.442695, %v3149_v50  ;;  %v3472_v50 = vunpack.c.l.s8.bf16 %v3400_v46 }
0x1105   :  { %4239 = vpow2.f32 %v3150_v51  ;;  %v3475_v51 = vunpack.c.h.s8.bf16 %v3399_v35 }
0x110f   :  { %v4240_v52 = vpop.eup %4239 }
0x1110   :  { %v3152_v54 = vadd.f32 1.0, %v4240_v52  ;;  %v3477_v52 = vunpack.c.h.s8.bf16 %v3401_v40  ;;  %v3506_v40 = vunpack.c.h.s8.bf16 %v3414_v36 }
0x1112   :  { %4241 = vrcp.f32 %v3152_v54 }
0x1113   :  { %4243 = vlog2.f32 %v3152_v54  ;;  %v3403_v54 = vld [vmem:[#allocation11 + $0x868] sm:$0xff] }
0x1114   :  { %4245 = vlog2.f32 %v4678_v13  ;;  %v3483_v4 = vunpack.c.h.s8.bf16 %v3403_v54 }
0x111c   :  { %v4242_v55 = vpop.eup %4241 }
0x111d   :  { %v4244_v47 = vpop.eup %4243  ;;  %3159 = vrot.lane.b32.xlu1 %v4242_v55, %s4424_s9  ;;  %v3405_v55 = vld [vmem:[#allocation11 + $0x878] sm:$0xff] }
0x111e   :  { %v3155_v56 = vmul.f32 0.6931472, %v4244_v47  ;;  %v4246_v58 = vpop.eup %4245  ;;  %v3474_v47 = vunpack.c.h.s8.bf16 %v3398_v45  ;;  %v3485_v5 = vunpack.c.h.s8.bf16 %v3405_v55 }
0x111f   :  { %v1625_v61 = vmul.f32 0.6931472, %v4246_v58  ;;  %v3402_v58 = vld [vmem:[#allocation11 + $0x860] sm:$0xff] }
0x1120   :  { %v3156_v57 = vsub.f32 0.0, %v3155_v56  ;;  %v3476_v56 = vunpack.c.h.s8.bf16 %v3400_v46  ;;  %v3418_v46 = vld [vmem:[#allocation11 + $0x8e0] sm:$0xff] }
0x1121   :  { %v1626_v59 = vsub.f32 0.0, %v1625_v61  ;;  %v3404_v61 = vld [vmem:[#allocation11 + $0x870] sm:$0xff] }
0x1122   :  { %v3164_v53 = vsel %vm228_vm3, %v3156_v57, 0.0  ;;  %v3479_v57 = vunpack.c.l.s8.bf16 %v3403_v54  ;;  %v3484_v10 = vunpack.c.h.s8.bf16 %v3404_v61 }
0x1123   :  { %3165 = vadd.xlane.f32.xlu0 %v3164_v53  ;;  %v1634_v43 = vsel %vm228_vm3, %v1626_v59, 0.0  ;;  %v3481_v53 = vunpack.c.l.s8.bf16 %v3405_v55  ;;  %v3478_v59 = vunpack.c.l.s8.bf16 %v3402_v58  ;;  %v3514_v55 = vunpack.c.h.s8.bf16 %v3418_v46 }
0x1141   :  { %1635 = vadd.xlane.f32.xlu1 %v1634_v43  ;;  %v3480_v43 = vunpack.c.l.s8.bf16 %v3404_v61  ;;  %v4784_v61 = vld [vmem:[#allocation6 + $0x4] ss:$8 sm:$0xf] }
0x118f   :  { %v3160_v9 = vpop.permute.xlu1 %3159 }
0x1190   :  { %v3162_v8 = vmul.f32 %v3160_v9, %v3157_v49  ;;  %v3470_v49 = vunpack.c.l.s8.bf16 %v3398_v45  ;;  %v3482_v9 = vunpack.c.h.s8.bf16 %v3402_v58 }
0x1192   :  { %v3163_v13 = vsel %vm228_vm3, %v4734_v60, %v3162_v8  ;;  %v3392_v60 = vld [vmem:[#allocation11 + $0x810] sm:$0xff]  ;;  %v3489_v8 = vunpack.c.l.s8.bf16 %v3409_v0 }
0x1193   :  { %v3172_v11 = vadd.f32 %v3168_v1, %v3163_v13  ;;  %v3456_v24 = vunpack.c.l.s8.bf16 %v3392_v60  ;;  %v3460_v31 = vunpack.c.h.s8.bf16 %v3392_v60  ;;  %v3487_v1 = vunpack.c.l.s8.bf16 %v3407_v6  ;;  %v3406_v13 = vld [vmem:[#allocation11 + $0x880] sm:$0xff] }
0x1194   :  { %v3490_v20 = vunpack.c.h.s8.bf16 %v3406_v13  ;;  %v3495_v60 = vunpack.c.l.s8.bf16 %v3411_v18 }
0x1195   :  { %4074 = vmatmul.mubr.msk.f32.vlgmr.msra.gmra.mrb[44].mxu0 %vm114_vm2, %v3172_v11  ;;  %v3408_v11 = vld [vmem:[#allocation11 + $0x890] sm:$0xff] }
0x1196   :  { %3304 = vmatpush1.bf16.msra.mxu0 %v3292_v12  ;;  %3335 = vmatprep.mubr.bf16.mxu0 %v4432_v16  ;;  %v3486_v12 = vunpack.c.l.s8.bf16 %v3406_v13  ;;  %v3488_v14 = vunpack.c.l.s8.bf16 %v3408_v11  ;;  %v3492_v21 = vunpack.c.h.s8.bf16 %v3408_v11 }
0x1197   :  { %3586 = vmatprep.subr.bf16.mxu0 %v3455_v19  ;;  %v3413_v19 = vld [vmem:[#allocation11 + $0x8b8] sm:$0xff] }
0x1198   :  { %v3501_v27 = vunpack.c.h.s8.bf16 %v3413_v19 }
0x1268   :  { %v4778_v22 = vpop.f32.mrb[44].mxu0 }
0x1269   :  { %v3253_v23 = vpack.c.bf16 %v4778_v22, %v4778_v22  ;;  %v4075_v16 = vpop.f32.mrb[45].mxu0 }
0x126b   :  { %4019 = vmatmul.mubr.msk.bf16.vlgmr.msra.gmra.mrb[48].mxu0 %vm228_vm3, %v3253_v23  ;;  %4021 = vmatmul.mubr.msk.bf16.vlgmr.msra.gmra.mrb[44].mxu1 %vm228_vm3, %v3253_v23  ;;  %v3412_v23 = vld [vmem:[#allocation11 + $0x8b0] sm:$0xff] }
0x126c   :  { %3587 = vmatpush1.bf16.msra.mxu0 %v3454_v34  ;;  %3669 = vmatpush1.bf16.msra.mxu1 %v3456_v24  ;;  %v3497_v34 = vunpack.c.l.s8.bf16 %v3413_v19  ;;  %v3410_v24 = vld [vmem:[#allocation11 + $0x8a0] sm:$0xff] }
0x126d   :  { %3588 = vmatprep.subr.bf16.mxu0 %v3459_v25  ;;  %3670 = vmatprep.subr.bf16.mxu1 %v3461_v26  ;;  %v3494_v16 = vunpack.c.l.s8.bf16 %v3410_v24  ;;  %v3496_v25 = vunpack.c.l.s8.bf16 %v3412_v23  ;;  %v3499_v26 = vunpack.c.h.s8.bf16 %v3411_v18  ;;  %v3424_v18 = vld [vmem:[#allocation11 + $0x910] sm:$0xff] }
0x1270   :  { %3589 = vmatpush1.bf16.msra.mxu0 %v3458_v29  ;;  %3671 = vmatpush1.bf16.msra.mxu1 %v3460_v31  ;;  %v3417_v29 = vld [vmem:[#allocation11 + $0x8d8] sm:$0xff]  ;;  %v3498_v31 = vunpack.c.h.s8.bf16 %v3410_v24 }
0x1271   :  { %3590 = vmatprep.subr.bf16.mxu0 %v3463_v32  ;;  %3672 = vmatprep.subr.bf16.mxu1 %v3465_v7  ;;  %v3500_v32 = vunpack.c.h.s8.bf16 %v3412_v23  ;;  %v3503_v7 = vunpack.c.l.s8.bf16 %v3415_v28  ;;  %v3505_v33 = vunpack.c.l.s8.bf16 %v3417_v29  ;;  %v3509_v35 = vunpack.c.h.s8.bf16 %v3417_v29 }
0x1272   :  { %v3524_v29 = vunpack.c.h.s8.bf16 %v3424_v18 }
0x1274   :  { %3591 = vmatpush1.bf16.msra.mxu0 %v3462_v37  ;;  %3673 = vmatpush1.bf16.msra.mxu1 %v3464_v30  ;;  %v3416_v37 = vld [vmem:[#allocation11 + $0x8d0] sm:$0xff]  ;;  %v3502_v30 = vunpack.c.l.s8.bf16 %v3414_v36 }
0x1275   :  { %3592 = vmatprep.subr.bf16.mxu0 %v3467_v38  ;;  %3674 = vmatprep.subr.bf16.mxu1 %v3469_v39  ;;  %v3504_v38 = vunpack.c.l.s8.bf16 %v3416_v37  ;;  %v3507_v39 = vunpack.c.h.s8.bf16 %v3415_v28 }
0x1278   :  { %3593 = vmatpush1.bf16.msra.mxu0 %v3466_v41  ;;  %3675 = vmatpush1.bf16.msra.mxu1 %v3468_v42  ;;  %v3508_v41 = vunpack.c.h.s8.bf16 %v3416_v37  ;;  %v3419_v42 = vld [vmem:[#allocation11 + $0x8e8] sm:$0xff] }
0x1279   :  { %3594 = vmatprep.subr.bf16.mxu0 %v3471_v63  ;;  %3676 = vmatprep.subr.bf16.mxu1 %v3473_v44  ;;  %v3421_v63 = vld [vmem:[#allocation11 + $0x8f8] sm:$0xff]  ;;  %v3511_v44 = vunpack.c.l.s8.bf16 %v3419_v42 }
0x127a   :  { %v3513_v45 = vunpack.c.l.s8.bf16 %v3421_v63  ;;  %v3517_v54 = vunpack.c.h.s8.bf16 %v3421_v63 }
0x127c   :  { %3595 = vmatpush1.bf16.msra.mxu0 %v3470_v49  ;;  %3677 = vmatpush1.bf16.msra.mxu1 %v3472_v50  ;;  %v3420_v49 = vld [vmem:[#allocation11 + $0x8f0] sm:$0xff]  ;;  %v3510_v50 = vunpack.c.l.s8.bf16 %v3418_v46 }
0x127d   :  { %3596 = vmatprep.subr.bf16.mxu0 %v3475_v51  ;;  %3678 = vmatprep.subr.bf16.mxu1 %v3477_v52  ;;  %v3512_v51 = vunpack.c.l.s8.bf16 %v3420_v49  ;;  %v3515_v52 = vunpack.c.h.s8.bf16 %v3419_v42 }
0x1280   :  { %3597 = vmatpush1.bf16.msra.mxu0 %v3474_v47  ;;  %3679 = vmatpush1.bf16.msra.mxu1 %v3476_v56  ;;  %v3516_v47 = vunpack.c.h.s8.bf16 %v3420_v49  ;;  %v3423_v56 = vld [vmem:[#allocation11 + $0x908] sm:$0xff] }
0x1281   :  { %3598 = vmatprep.subr.bf16.mxu0 %v3479_v57  ;;  %3680 = vmatprep.subr.bf16.mxu1 %v3481_v53  ;;  %v3425_v57 = vld [vmem:[#allocation11 + $0x918] sm:$0xff]  ;;  %v3519_v53 = vunpack.c.l.s8.bf16 %v3423_v56  ;;  %v3523_v23 = vunpack.c.h.s8.bf16 %v3423_v56 }
0x1282   :  { %v3521_v58 = vunpack.c.l.s8.bf16 %v3425_v57 }
0x1284   :  { %3599 = vmatpush1.bf16.msra.mxu0 %v3478_v59  ;;  %3681 = vmatpush1.bf16.msra.mxu1 %v3480_v43  ;;  %v3261_v59 = vrot.slane %v4784_v61, %v4591_v62  ;;  %v3265_v43 = vrot.slane %v4784_v61, %v4596_v2 }
0x1285   :  { %3600 = vmatprep.subr.bf16.mxu0 %v3483_v4  ;;  %3682 = vmatprep.subr.bf16.mxu1 %v3485_v5  ;;  %v3273_v4 = vrot.slane %v4784_v61, %v4599_v3 }
0x1288   :  { %3601 = vmatpush1.bf16.msra.mxu0 %v3482_v9  ;;  %3683 = vmatpush1.bf16.msra.mxu1 %v3484_v10 }
0x1289   :  { %3602 = vmatprep.subr.bf16.mxu0 %v3487_v1  ;;  %3684 = vmatprep.subr.bf16.mxu1 %v3489_v8 }
0x128c   :  { %3603 = vmatpush1.bf16.msra.mxu0 %v3486_v12  ;;  %3685 = vmatpush1.bf16.msra.mxu1 %v3488_v14 }
0x128d   :  { %3604 = vmatprep.subr.bf16.mxu0 %v3491_v15  ;;  %3686 = vmatprep.subr.bf16.mxu1 %v3493_v17  ;;  %v3422_v17 = vld [vmem:[#allocation11 + $0x900] sm:$0xff] }
0x128e   :  { %v3522_v28 = vunpack.c.h.s8.bf16 %v3422_v17 }
0x1290   :  { %3605 = vmatpush1.bf16.msra.mxu0 %v3490_v20  ;;  %3687 = vmatpush1.bf16.msra.mxu1 %v3492_v21 }
0x1291   :  { %3606 = vmatprep.subr.bf16.mxu0 %v3495_v60  ;;  %3688 = vmatprep.subr.bf16.mxu1 %v3497_v34  ;;  %v3518_v60 = vunpack.c.l.s8.bf16 %v3422_v17  ;;  %v3520_v34 = vunpack.c.l.s8.bf16 %v3424_v18 }
0x1294   :  { %3607 = vmatpush1.bf16.msra.mxu0 %v3494_v16  ;;  %3689 = vmatpush1.bf16.msra.mxu1 %v3496_v25  ;;  %v3525_v16 = vunpack.c.h.s8.bf16 %v3425_v57  ;;  %v3427_v25 = vld [vmem:[#allocation11 + $0x928] sm:$0xff] }
0x1295   :  { %3608 = vmatprep.subr.bf16.mxu0 %v3499_v26  ;;  %3690 = vmatprep.subr.bf16.mxu1 %v3501_v27  ;;  %v3429_v26 = vld [vmem:[#allocation11 + $0x938] sm:$0xff] }
0x1298   :  { %3609 = vmatpush1.bf16.msra.mxu0 %v3498_v31  ;;  %3691 = vmatpush1.bf16.msra.mxu1 %v3500_v32  ;;  %v3527_v31 = vunpack.c.l.s8.bf16 %v3427_v25  ;;  %v3529_v32 = vunpack.c.l.s8.bf16 %v3429_v26 }
0x1299   :  { %3610 = vmatprep.subr.bf16.mxu0 %v3503_v7  ;;  %3692 = vmatprep.subr.bf16.mxu1 %v3505_v33  ;;  %v3426_v7 = vld [vmem:[#allocation11 + $0x920] sm:$0xff]  ;;  %v3428_v33 = vld [vmem:[#allocation11 + $0x930] sm:$0xff] }
0x129a   :  { %v3526_v36 = vunpack.c.l.s8.bf16 %v3426_v7  ;;  %v3528_v37 = vunpack.c.l.s8.bf16 %v3428_v33 }
0x129c   :  { %3611 = vmatpush1.bf16.msra.mxu0 %v3502_v30  ;;  %3693 = vmatpush1.bf16.msra.mxu1 %v3504_v38  ;;  %v3531_v30 = vunpack.c.h.s8.bf16 %v3427_v25  ;;  %v3533_v38 = vunpack.c.h.s8.bf16 %v3429_v26 }
0x129d   :  { %3612 = vmatprep.subr.bf16.mxu0 %v3507_v39  ;;  %3694 = vmatprep.subr.bf16.mxu1 %v3509_v35  ;;  %v3431_v39 = vld [vmem:[#allocation11 + $0x948] sm:$0xff]  ;;  %v3433_v35 = vld [vmem:[#allocation11 + $0x958] sm:$0xff] }
0x129e   :  { %v3535_v42 = vunpack.c.l.s8.bf16 %v3431_v39  ;;  %v3537_v63 = vunpack.c.l.s8.bf16 %v3433_v35 }
0x12a0   :  { %3613 = vmatpush1.bf16.msra.mxu0 %v3506_v40  ;;  %3695 = vmatpush1.bf16.msra.mxu1 %v3508_v41  ;;  %v3530_v40 = vunpack.c.h.s8.bf16 %v3426_v7  ;;  %v3532_v41 = vunpack.c.h.s8.bf16 %v3428_v33 }
0x12a1   :  { %3614 = vmatprep.subr.bf16.mxu0 %v3511_v44  ;;  %3696 = vmatprep.subr.bf16.mxu1 %v3513_v45  ;;  %v3430_v44 = vld [vmem:[#allocation11 + $0x940] sm:$0xff]  ;;  %v3432_v45 = vld [vmem:[#allocation11 + $0x950] sm:$0xff] }
0x12a2   :  { %v3534_v46 = vunpack.c.l.s8.bf16 %v3430_v44  ;;  %v3536_v49 = vunpack.c.l.s8.bf16 %v3432_v45 }
0x12a4   :  { %3615 = vmatpush1.bf16.msra.mxu0 %v3510_v50  ;;  %3697 = vmatpush1.bf16.msra.mxu1 %v3512_v51  ;;  %v3539_v50 = vunpack.c.h.s8.bf16 %v3431_v39  ;;  %v3541_v51 = vunpack.c.h.s8.bf16 %v3433_v35 }
0x12a5   :  { %3616 = vmatprep.subr.bf16.mxu0 %v3515_v52  ;;  %3698 = vmatprep.subr.bf16.mxu1 %v3517_v54  ;;  %v3435_v52 = vld [vmem:[#allocation11 + $0x968] sm:$0xff]  ;;  %v3437_v54 = vld [vmem:[#allocation11 + $0x978] sm:$0xff] }
0x12a6   :  { %v3543_v56 = vunpack.c.l.s8.bf16 %v3435_v52  ;;  %v3545_v57 = vunpack.c.l.s8.bf16 %v3437_v54 }
0x12a8   :  { %3617 = vmatpush1.bf16.msra.mxu0 %v3514_v55  ;;  %3699 = vmatpush1.bf16.msra.mxu1 %v3516_v47  ;;  %v3538_v55 = vunpack.c.h.s8.bf16 %v3430_v44  ;;  %v3540_v47 = vunpack.c.h.s8.bf16 %v3432_v45  ;;  %v3269_v45 = vrot.slane %v4784_v61, %v4610_v48 }
0x12a9   :  { %3627 = vmatprep.subr.bf16.mxu0 %v3519_v53  ;;  %3709 = vmatprep.subr.bf16.mxu1 %v3521_v58  ;;  %v3434_v53 = vld [vmem:[#allocation11 + $0x960] sm:$0xff]  ;;  %v3436_v58 = vld [vmem:[#allocation11 + $0x970] sm:$0xff] }
0x133e   :  { %v3337_v5 = vpop.f32.mrb[48].mxu0  ;;  %v4792_v6 = vpop.f32.mrb[44].mxu1 }
0x133f   :  { %v3338_v0 = vadd.f32 %v3337_v5, %v3261_v59  ;;  %v3339_v9 = vpop.f32.mrb[49].mxu0  ;;  %v3380_v10 = vpop.f32.mrb[45].mxu1  ;;  %v3542_v59 = vunpack.c.l.s8.bf16 %v3434_v53  ;;  %v3549_v5 = vunpack.c.h.s8.bf16 %v3437_v54 }
0x1340   :  { %v3340_v1 = vadd.f32 %v3339_v9, %v3265_v43  ;;  %v3381_v8 = vadd.f32 %v3380_v10, %v3273_v4  ;;  %v3341_v13 = vpop.f32.mrb[50].mxu0  ;;  %v3382_v11 = vpop.f32.mrb[46].mxu1  ;;  %v3544_v43 = vunpack.c.l.s8.bf16 %v3436_v58  ;;  %v3547_v4 = vunpack.c.h.s8.bf16 %v3435_v52  ;;  %v3441_v9 = vld [vmem:[#allocation11 + $0x998] sm:$0xff] }
0x1341   :  { %v3385_v12 = vmax.f32 %v3338_v0, 0.0  ;;  %v3342_v14 = vpop.f32.mrb[51].mxu0  ;;  %v3383_v15 = vpop.f32.mrb[47].mxu1  ;;  %v3439_v0 = vld [vmem:[#allocation11 + $0x988] sm:$0xff]  ;;  %v3546_v10 = vunpack.c.h.s8.bf16 %v3434_v53  ;;  %v3553_v13 = vunpack.c.l.s8.bf16 %v3441_v9  ;;  %v3438_v11 = vld [vmem:[#allocation11 + $0x980] sm:$0xff]  ;;  %v3557_v18 = vunpack.c.h.s8.bf16 %v3441_v9 }
0x1342   :  { %v3386_v19 = vmax.f32 %v3340_v1, 0.0  ;;  %v3388_v20 = vmax.f32 %v3381_v8, 0.0  ;;  %v3548_v1 = vunpack.c.h.s8.bf16 %v3436_v58  ;;  %v3551_v8 = vunpack.c.l.s8.bf16 %v3439_v0 }
0x1343   :  { %v3582_v24 = vpack.c.bf16 %v3385_v12, %v3385_v12  ;;  %v3440_v12 = vld [vmem:[#allocation11 + $0x990] sm:$0xff]  ;;  %v3550_v14 = vunpack.c.l.s8.bf16 %v3438_v11  ;;  %v3555_v17 = vunpack.c.h.s8.bf16 %v3439_v0 }
0x1344   :  { %v3583_v21 = vpack.c.bf16 %v3386_v19, %v3386_v19  ;;  %v3585_v27 = vpack.c.bf16 %v3388_v20, %v3388_v20  ;;  %v3552_v15 = vunpack.c.l.s8.bf16 %v3440_v12  ;;  %v3443_v19 = vld [vmem:[#allocation11 + $0x9a8] sm:$0xff]  ;;  %v3445_v20 = vld [vmem:[#allocation11 + $0x9b8] sm:$0xff] }
0x1346   :  { %3618 = vmatprep.mubr.bf16.mxu0 %v3583_v21  ;;  %3700 = vmatprep.mubr.bf16.mxu1 %v3583_v21  ;;  %v3554_v21 = vunpack.c.h.s8.bf16 %v3438_v11 }
0x1347   :  { %3619 = vmatmul.mubr.bf16.vlgmr.msra.gmra.mrb[52].mxu0 %v3582_v24  ;;  %3701 = vmatmul.mubr.bf16.vlgmr.msra.gmra.mrb[48].mxu1 %v3582_v24  ;;  %v3561_v24 = vunpack.c.l.s8.bf16 %v3445_v20 }
0x1348   :  { %3628 = vmatpush1.bf16.msra.mxu0 %v3518_v60  ;;  %3710 = vmatpush1.bf16.msra.mxu1 %v3520_v34  ;;  %v3556_v60 = vunpack.c.h.s8.bf16 %v3440_v12  ;;  %v3559_v34 = vunpack.c.l.s8.bf16 %v3443_v19 }
0x1349   :  { %3659 = vmatprep.mubr.bf16.mxu0 %v3585_v27  ;;  %3741 = vmatprep.mubr.bf16.mxu1 %v3585_v27  ;;  %v3563_v27 = vunpack.c.h.s8.bf16 %v3443_v19 }
0x134a   :  { %3629 = vmatprep.subr.bf16.mxu0 %v3523_v23  ;;  %3711 = vmatprep.subr.bf16.mxu1 %v3525_v16  ;;  %v3442_v23 = vld [vmem:[#allocation11 + $0x9a0] sm:$0xff]  ;;  %v3444_v16 = vld [vmem:[#allocation11 + $0x9b0] sm:$0xff] }
0x134b   :  { %v3558_v25 = vunpack.c.l.s8.bf16 %v3442_v23  ;;  %v3560_v26 = vunpack.c.l.s8.bf16 %v3444_v16  ;;  %v3564_v7 = vunpack.c.h.s8.bf16 %v3444_v16 }
0x134c   :  { %3630 = vmatpush1.bf16.msra.mxu0 %v3522_v28  ;;  %3712 = vmatpush1.bf16.msra.mxu1 %v3524_v29  ;;  %v3565_v28 = vunpack.c.h.s8.bf16 %v3445_v20  ;;  %v3447_v29 = vld [vmem:[#allocation11 + $0x9c8] sm:$0xff] }
0x134d   :  { %3631 = vmatprep.subr.bf16.mxu0 %v3527_v31  ;;  %3713 = vmatprep.subr.bf16.mxu1 %v3529_v32  ;;  %v3449_v31 = vld [vmem:[#allocation11 + $0x9d8] sm:$0xff]  ;;  %v3562_v32 = vunpack.c.h.s8.bf16 %v3442_v23  ;;  %v3567_v33 = vunpack.c.l.s8.bf16 %v3447_v29  ;;  %v3571_v35 = vunpack.c.h.s8.bf16 %v3447_v29 }
0x1350   :  { %3632 = vmatpush1.bf16.msra.mxu0 %v3526_v36  ;;  %3714 = vmatpush1.bf16.msra.mxu1 %v3528_v37  ;;  %v3569_v36 = vunpack.c.l.s8.bf16 %v3449_v31  ;;  %v3446_v37 = vld [vmem:[#allocation11 + $0x9c0] sm:$0xff] }
0x1351   :  { %3633 = vmatprep.subr.bf16.mxu0 %v3531_v30  ;;  %3715 = vmatprep.subr.bf16.mxu1 %v3533_v38  ;;  %v3448_v30 = vld [vmem:[#allocation11 + $0x9d0] sm:$0xff]  ;;  %v3566_v38 = vunpack.c.l.s8.bf16 %v3446_v37 }
0x1352   :  { %v3568_v39 = vunpack.c.l.s8.bf16 %v3448_v30  ;;  %v3572_v44 = vunpack.c.h.s8.bf16 %v3448_v30 }
0x1354   :  { %3634 = vmatpush1.bf16.msra.mxu0 %v3530_v40  ;;  %3716 = vmatpush1.bf16.msra.mxu1 %v3532_v41  ;;  %v3573_v40 = vunpack.c.h.s8.bf16 %v3449_v31  ;;  %v3451_v41 = vld [vmem:[#allocation11 + $0x9e8] sm:$0xff] }
0x1355   :  { %3635 = vmatprep.subr.bf16.mxu0 %v3535_v42  ;;  %3717 = vmatprep.subr.bf16.mxu1 %v3537_v63  ;;  %v3453_v42 = vld [vmem:[#allocation11 + $0x9f8] sm:$0xff]  ;;  %v3570_v63 = vunpack.c.h.s8.bf16 %v3446_v37  ;;  %v3252_v37 = vld [vmem:[#allocation6 + $0x64] ss:$0 sm:$0xff] }
0x1358   :  { %3636 = vmatpush1.bf16.msra.mxu0 %v3534_v46  ;;  %3718 = vmatpush1.bf16.msra.mxu1 %v3536_v49  ;;  %v3575_v46 = vunpack.c.l.s8.bf16 %v3451_v41  ;;  %v3577_v49 = vunpack.c.l.s8.bf16 %v3453_v42 }
0x1359   :  { %3637 = vmatprep.subr.bf16.mxu0 %v3539_v50  ;;  %3719 = vmatprep.subr.bf16.mxu1 %v3541_v51  ;;  %v3450_v50 = vld [vmem:[#allocation11 + $0x9e0] sm:$0xff]  ;;  %v3452_v51 = vld [vmem:[#allocation11 + $0x9f0] sm:$0xff] }
0x135a   :  { %v3574_v52 = vunpack.c.l.s8.bf16 %v3450_v50  ;;  %v3576_v54 = vunpack.c.l.s8.bf16 %v3452_v51  ;;  %v3580_v61 = vunpack.c.h.s8.bf16 %v3452_v51 }
0x135c   :  { %3638 = vmatpush1.bf16.msra.mxu0 %v3538_v55  ;;  %3720 = vmatpush1.bf16.msra.mxu1 %v3540_v47  ;;  %v3379_v55 = vadd.f32 %v4792_v6, %v3269_v45  ;;  %v3579_v47 = vunpack.c.h.s8.bf16 %v3451_v41  ;;  %v4222_v6 = vld [vmem:[#allocation12 + $0x8c] ss:$16 sps:$4 sm:$0xff]  }
0x135d   :  { %3639 = vmatprep.subr.bf16.mxu0 %v3543_v56  ;;  %3721 = vmatprep.subr.bf16.mxu1 %v3545_v57  ;;  %v3581_v56 = vunpack.c.h.s8.bf16 %v3453_v42  ;;  %v3578_v57 = vunpack.c.h.s8.bf16 %v3450_v50 }
0x135e   :  { %v3387_v53 = vmax.f32 %v3379_v55, 0.0 }
0x1360   :  { %3640 = vmatpush1.bf16.msra.mxu0 %v3542_v59  ;;  %3722 = vmatpush1.bf16.msra.mxu1 %v3544_v43  ;;  %v3584_v58 = vpack.c.bf16 %v3387_v53, %v3387_v53  ;;  %v4219_v59 = vld [vmem:[#allocation12 + $0x84] ss:$16 sps:$4 sm:$0xff]   ;;  %v4217_v43 = vld [vmem:[#allocation12 + $0x80] ss:$16 sps:$4 sm:$0xff]  }
0x1361   :  { %3641 = vmatprep.subr.bf16.mxu0 %v3547_v4  ;;  %3723 = vmatprep.subr.bf16.mxu1 %v3549_v5  ;;  %v3251_v4 = vld [vmem:[#allocation6 + $0x44] ss:$8 sm:$0xf] }
0x1362   :  { %v3249_v5 = vld [vmem:[#allocation6 + $0x24] ss:$8 sm:$0xf]  ;;  %v3754_v0 = vrot.slane %v3251_v4, %v4591_v62  ;;  %v3758_v9 = vrot.slane %v3251_v4, %v4596_v2 }
0x1363   :  { %v3783_v11 = vrot.slane %v3249_v5, %v4596_v2  ;;  %v3791_v12 = vrot.slane %v3249_v5, %v4599_v3  ;;  %v3787_v31 = vrot.slane %v3249_v5, %v4610_v48 }
0x1364   :  { %3642 = vmatpush1.bf16.msra.mxu0 %v3546_v10  ;;  %3724 = vmatpush1.bf16.msra.mxu1 %v3548_v1  ;;  %v3766_v10 = vrot.slane %v3251_v4, %v4599_v3  ;;  %v3779_v1 = vrot.slane %v3249_v5, %v4591_v62  ;;  %v3762_v62 = vrot.slane %v3251_v4, %v4610_v48 }
0x1365   :  { %3643 = vmatprep.subr.bf16.mxu0 %v3551_v8  ;;  %3725 = vmatprep.subr.bf16.mxu1 %v3553_v13 }
0x1368   :  { %3644 = vmatpush1.bf16.msra.mxu0 %v3550_v14  ;;  %3726 = vmatpush1.bf16.msra.mxu1 %v3552_v15 }
0x1369   :  { %3645 = vmatprep.subr.bf16.mxu0 %v3555_v17  ;;  %3727 = vmatprep.subr.bf16.mxu1 %v3557_v18 }
0x136c   :  { %3646 = vmatpush1.bf16.msra.mxu0 %v3554_v21  ;;  %3728 = vmatpush1.bf16.msra.mxu1 %v3556_v60 }
0x136d   :  { %3647 = vmatprep.subr.bf16.mxu0 %v3559_v34  ;;  %3729 = vmatprep.subr.bf16.mxu1 %v3561_v24 }
0x1370   :  { %3648 = vmatpush1.bf16.msra.mxu0 %v3558_v25  ;;  %3730 = vmatpush1.bf16.msra.mxu1 %v3560_v26 }
0x1371   :  { %3649 = vmatprep.subr.bf16.mxu0 %v3563_v27  ;;  %3731 = vmatprep.subr.bf16.mxu1 %v3565_v28  ;;  %v4220_v28 = vld [vmem:[#allocation12 + $0x88] ss:$16 sps:$4 sm:$0xff]  }
0x1374   :  { %3650 = vmatpush1.bf16.msra.mxu0 %v3562_v32  ;;  %3732 = vmatpush1.bf16.msra.mxu1 %v3564_v7 }
0x1375   :  { %3651 = vmatprep.subr.bf16.mxu0 %v3567_v33  ;;  %3733 = vmatprep.subr.bf16.mxu1 %v3569_v36 }
0x1378   :  { %3652 = vmatpush1.bf16.msra.mxu0 %v3566_v38  ;;  %3734 = vmatpush1.bf16.msra.mxu1 %v3568_v39 }
0x1379   :  { %3653 = vmatprep.subr.bf16.mxu0 %v3571_v35  ;;  %3735 = vmatprep.subr.bf16.mxu1 %v3573_v40 }
0x137c   :  { %3654 = vmatpush1.bf16.msra.mxu0 %v3570_v63  ;;  %3736 = vmatpush1.bf16.msra.mxu1 %v3572_v44 }
0x137d   :  { %3655 = vmatprep.subr.bf16.mxu0 %v3575_v46  ;;  %3737 = vmatprep.subr.bf16.mxu1 %v3577_v49 }
0x1380   :  { %3656 = vmatpush1.bf16.msra.mxu0 %v3574_v52  ;;  %3738 = vmatpush1.bf16.msra.mxu1 %v3576_v54  ;;  %v1636_v54 = vpop.xlane.xlu1 %1635 }
0x1381   :  { %3657 = vmatprep.subr.bf16.mxu0 %v3579_v47  ;;  %3739 = vmatprep.subr.bf16.mxu1 %v3581_v56 }
0x1384   :  { %3658 = vmatpush1.bf16.msra.mxu0 %v3578_v57  ;;  %3740 = vmatpush1.bf16.msra.mxu1 %v3580_v61 }
0x1385   :  { %3833 = vmatprep.subr.bf16.mxu0 %v4219_v59 }
0x1387   :  { %3660 = vmatmul.mubr.bf16.vlgmr.msra.gmra.mrb[52].mxu0 %v3584_v58  ;;  %3742 = vmatmul.mubr.bf16.vlgmr.msra.gmra.mrb[48].mxu1 %v3584_v58 }
0x138d   :  { %3834 = vmatpush1.bf16.xpose.msra.mxu0 %v4217_v43 }
0x138e   :  { %3873 = vmatprep.subr.bf16.mxu0 %v4222_v6 }
0x145a   :  { %v3661_v8 = vpop.f32.mrb[52].mxu0  ;;  %v3743_v13 = vpop.f32.mrb[48].mxu1 }
0x145b   :  { %v3771_v14 = vmul.f32 %v3754_v0, %v3661_v8  ;;  %v3663_v15 = vpop.f32.mrb[53].mxu0  ;;  %v3745_v17 = vpop.f32.mrb[49].mxu1  ;;  %v3773_v29 = vmul.f32 %v3762_v62, %v3743_v13 }
0x145c   :  { %v3772_v18 = vmul.f32 %v3758_v9, %v3663_v15  ;;  %v3774_v19 = vmul.f32 %v3766_v10, %v3745_v17  ;;  %v3665_v20 = vpop.f32.mrb[54].mxu0  ;;  %v3747_v21 = vpop.f32.mrb[50].mxu1 }
0x145d   :  { %v3796_v60 = vadd.f32 %v3779_v1, %v3771_v14  ;;  %v3666_v34 = vpop.f32.mrb[55].mxu0  ;;  %v3748_v24 = vpop.f32.mrb[51].mxu1  ;;  %v3798_v7 = vadd.f32 %v3787_v31, %v3773_v29 }
0x145e   :  { %v3797_v23 = vadd.f32 %v3783_v11, %v3772_v18  ;;  %v3799_v16 = vadd.f32 %v3791_v12, %v3774_v19 }
0x145f   :  { %v3800_v25 = vmax.f32 %v3796_v60, 0.0  ;;  %v3802_v33 = vmax.f32 %v3798_v7, 0.0 }
0x1460   :  { %v3801_v26 = vmax.f32 %v3797_v23, 0.0  ;;  %v3803_v27 = vmax.f32 %v3799_v16, 0.0 }
0x1461   :  { %v3804_v3 = vpack.c.bf16 %v3800_v25, %v3800_v25  ;;  %v3806_v36 = vpack.c.bf16 %v3802_v33, %v3802_v33 }
0x1462   :  { %v3805_v2 = vpack.c.bf16 %v3801_v26, %v3801_v26  ;;  %v3807_v32 = vpack.c.bf16 %v3803_v27, %v3803_v27 }
0x1464   :  { %3865 = vmatprep.mubr.bf16.mxu0 %v3805_v2 }
0x1465   :  { %3866 = vmatmul.mubr.bf16.vlgmr.msra.gmra.mrb[56].mxu0 %v3804_v3 }
0x1466   :  { %3874 = vmatpush1.bf16.xpose.msra.mxu0 %v4220_v28  ;;  %3905 = vmatprep.mubr.bf16.mxu0 %v3807_v32 }
0x1471   :  { %3906 = vmatmul.mubr.bf16.vlgmr.msra.gmra.mrb[56].mxu0 %v3806_v36 }
0x1544   :  { %v3907_v30 = vpop.f32.mrb[56].mxu0 }
0x1545   :  { %v4095_v38 = vadd.f32 %v3907_v30, %v3252_v37  ;;  %v3909_v39 = vpop.f32.mrb[57].mxu0 }
0x1546   :  { %v3910_v35 = vpop.f32.mrb[58].mxu0 }
0x1547   :  { %v3913_v40 = vadd.f32 2.0, %v4095_v38  ;;  %v3911_v41 = vpop.f32.mrb[59].mxu0  ;;  %v3922_v42 = vadd.f32 %v4095_v38, %v4778_v22 }
0x1549   :  { %v3914_v63 = vsub.f32 0.0, %v3913_v40 }
0x154b   :  { %v3915_v48 = vmul.f32 1.442695, %v3914_v63 }
0x154d   :  { %4247 = vpow2.f32 %v3915_v48 }
0x1557   :  { %v4248_v44 = vpop.eup %4247 }
0x1558   :  { %v3917_v45 = vadd.f32 1.0, %v4248_v44 }
0x155a   :  { %4249 = vrcp.f32 %v3917_v45 }
0x155b   :  { %4251 = vlog2.f32 %v3917_v45 }
0x1564   :  { %v4250_v46 = vpop.eup %4249 }
0x1565   :  { %v4252_v49 = vpop.eup %4251  ;;  %3924 = vrot.lane.b32.xlu1 %v4250_v46, %s4424_s9 }
0x1566   :  { %v3920_v50 = vmul.f32 0.6931472, %v4252_v49 }
0x1568   :  { %v3921_v51 = vsub.f32 0.0, %v3920_v50 }
0x156a   :  { %v3929_v52 = vsel %vm228_vm3, %v3921_v51, 0.0 }
0x156b   :  { %3930 = vadd.xlane.f32.xlu0 %v3929_v52 }
0x15d7   :  { %v3925_v55 = vpop.permute.xlu1 %3924 }
0x15d8   :  { %v3927_v47 = vmul.f32 %v3925_v55, %v3922_v42 }
0x15da   :  { %v3928_v56 = vsel %vm228_vm3, %v4778_v22, %v3927_v47 }
0x15db   :  { %3933 = vst.msk [vmem:[#allocation14] sm:$0xff] %vm114_vm2, %v3928_v56 }
0x15dc   :  { %4396 = shalt.err (!%p4393_p10)
}
0x15dd   :  { %s4397_s16 = scalar_lea.hbm %s4836_s7, 128 }
0x15de   :  { %p4398_p11 = scmp.ne.s32.totalorder %s4836_s7, %s4397_s16  ;;  %p4401_p12 = scmp.lt.u32.totalorder %s4397_s16, %s4836_s7 }
0x15e0   :  { %p4403_p13 = pnand %p4401_p12, %p4398_p11 }
0x15e2   :  { %4406 = shalt.err (!%p4403_p13)
}
0x15e3   :  { %3948 = dma.vmem_to_hbm [thread:$0]  %s3946_s1, 128, %s4836_s7, [#allocation5]   ;;  %v871_v22 = vpop.xlane.xlu0 %870  ;;  %v3935_v43 = vstv %s4832_s3  ;;  %vm3937_vm4 = vcmask 7168  }
0x15e4   :  { %v1637_v57 = vadd.f32 %v1636_v54, %v871_v22 }
0x15e7   :  { %v2401_v61 = vpop.xlane.xlu0 %2400 }
0x15e8   :  { %v2402_v53 = vadd.f32 %v2401_v61, %v1637_v57 }
0x15eb   :  { %v3166_v58 = vpop.xlane.xlu0 %3165 }
0x15ec   :  { %v3167_v59 = vadd.f32 %v3166_v58, %v2402_v53 }
0x15f8   :  { %v3931_v6 = vpop.xlane.xlu0 %3930 }
0x15f9   :  { %v3932_v4 = vadd.f32 %v3931_v6, %v3167_v59 }
0x15fb   :  { %v3936_v5 = vadd.f32 %v3935_v43, %v3932_v4 }
0x15fd   :  { %3938 = vst.msk [vmem:[%s4837_s8] sm:$0xff] %vm3937_vm4, %v3936_v5 }
0x15fe   :  { %4415 = dma.done.wait [#allocation5], 128  }
0x15ff   :  { %4416 = vsyncadd [#allocation5], 4294967168 }
0x1600   :  { %3956 = vsyncpa [#allocation4], 1 }
0x1601   :  { %3957 = vsyncpa [#allocation7], 1 }
0x1602   :  { %3958 = vsyncpa [#allocation10], 1 }
0x1603   :  { %3959 = vsyncpa [#allocation13], 1 }
0x1604   :  { %3960 = vsyncpa [#allocation5], 1 }

</bundles_post_ra>
